<compile_context>
chip_gen: v7x
topology: tpu7x:2x2x1
jax: 0.10.0
libtpu: 0.0.40
codegen_flags: <defaults>
</compile_context>

<pallas_src>
import functools

import jax
import jax.numpy as jnp
import numpy as np
from jax.experimental import pallas as pl
from jax.experimental.pallas import tpu as pltpu


def _round_up(v, m):
    return (v + m - 1) // m * m


_CPARAMS = pltpu.CompilerParams(
    dimension_semantics=("parallel",),        # batch axis -> megacore sharding
    vmem_limit_bytes=32 * 1024 * 1024,        # explicit, fits v5e/v6e/v7x
)


# ---------------------------------------------------------------------------
# Kernel 1: LeakyReLU(0.2) -> Conv2d(k=4, s=2, p=1) -> ReLU (epilogue)
# ---------------------------------------------------------------------------
def _down_kernel(x_ref, w_ref, y_ref, *, Ho, Wo, C_in, inner_pad, slope):
    # x_ref: (1, 4, Ho+1, Wo+1, C_in)   bf16  parity-split, spatially padded input
    #        plane p = 2*ph + pw holds x_pad[2r+ph, 2c+pw, :]
    # w_ref: (16, C_in, inner_pad)      bf16  one (C_in, inner_nc) matrix per tap
    # y_ref: (1, Ho+2, Wo+2, inner_pad) bf16  ReLU(conv) with a 1-px zero border
    x = x_ref[...].astype(jnp.float32)
    x = jnp.where(x >= 0.0, x, slope * x).astype(jnp.bfloat16)   # LeakyReLU, once

    acc = jnp.zeros((Ho * Wo, inner_pad), jnp.float32)           # f32 accumulator
    for kh in range(4):                                          # in-kernel K loop
        ph, a = kh % 2, kh // 2
        for kw in range(4):
            pw, b = kw % 2, kw // 2
            tap = x[0, ph * 2 + pw, a:a + Ho, b:b + Wo, :]
            tap = tap.reshape(Ho * Wo, C_in)
            acc = acc + jnp.dot(tap, w_ref[kh * 4 + kw],
                                preferred_element_type=jnp.float32)

    # ReLU of the *up* path applied once here (its only consumer is the
    # transposed conv), instead of on 16x-duplicated patches.
    y = jnp.maximum(acc, 0.0)
    y_ref[...] = jnp.zeros(y_ref.shape, y_ref.dtype)
    y_ref[0, 1:1 + Ho, 1:1 + Wo, :] = (
        y.reshape(Ho, Wo, inner_pad).astype(y_ref.dtype))


# ---------------------------------------------------------------------------
# Kernel 2: ConvTranspose2d(k=4, s=2, p=1) via 4 sub-pixel phases
#           + per-image BatchNorm partial statistics (fused epilogue)
# ---------------------------------------------------------------------------
def _up_kernel(y_ref, w_ref, u_ref, st_ref, *, Ho, Wo, inner_pad, outer_pad):
    # y_ref:  (1, Ho+2, Wo+2, inner_pad)   bf16 (ReLU already applied, zero border)
    # w_ref:  (16, inner_pad, outer_pad)   bf16 flipped/transposed ConvT taps
    # u_ref:  (1, 2, 2, Ho, Wo, outer_pad) f32  phase-separated ConvT output
    # st_ref: (1, 2, outer_pad)            f32  rows: [sum, sum-of-squares]
    y = y_ref[...]
    s0 = jnp.zeros((1, outer_pad), jnp.float32)
    s1 = jnp.zeros((1, outer_pad), jnp.float32)
    for ph in range(2):
        for pw in range(2):
            # output pixel (2i+ph, 2j+pw) only sees taps kh≡ph, kw≡pw (mod 2):
            # 75% of the zero-stuffed MACs of the naive lowering are skipped.
            acc = jnp.zeros((Ho * Wo, outer_pad), jnp.float32)
            for kh in (ph, ph + 2):
                sh = (kh + 1) // 2
                for kw in (pw, pw + 2):
                    sw = (kw + 1) // 2
                    tap = y[0, sh:sh + Ho, sw:sw + Wo, :]
                    tap = tap.reshape(Ho * Wo, inner_pad)
                    acc = acc + jnp.dot(tap, w_ref[kh * 4 + kw],
                                        preferred_element_type=jnp.float32)
            u_ref[0, ph, pw] = acc.reshape(Ho, Wo, outer_pad)
            s0 = s0 + jnp.sum(acc, axis=0, keepdims=True)
            s1 = s1 + jnp.sum(acc * acc, axis=0, keepdims=True)
    st_ref[0, 0:1, :] = s0
    st_ref[0, 1:2, :] = s1


# ---------------------------------------------------------------------------
# Kernel 3: BatchNorm2d (training-mode batch stats) + skip concat, fused
# ---------------------------------------------------------------------------
def _bn_concat_kernel(x_ref, u_ref, st_ref, g_ref, b_ref, o_ref, *,
                      C_in, outer_nc, count, eps):
    # x_ref:  (1, 2, 2, Ho, Wo, C_in)              f32  phase-split original input
    # u_ref:  (1, 2, 2, Ho, Wo, outer_pad)         f32
    # st_ref: (N, 2, outer_pad)                    f32  per-image partial sums
    # g_ref / b_ref: (1, outer_pad)                f32
    # o_ref:  (1, 2, 2, Ho, Wo, C_in + outer_nc)   f32
    st = jnp.sum(st_ref[...], axis=0)                       # (2, outer_pad)
    mean = st[0:1, :] * (1.0 / count)
    var = jnp.maximum(st[1:2, :] * (1.0 / count) - mean * mean, 0.0)
    scale = g_ref[...] * jax.lax.rsqrt(var + eps)           # (1, outer_pad)
    shift = b_ref[...] - mean * scale

    o_ref[0, :, :, :, :, 0:C_in] = x_ref[0]                 # skip branch
    u = u_ref[0, :, :, :, :, 0:outer_nc]
    o_ref[0, :, :, :, :, C_in:] = (
        u * scale[0, 0:outer_nc] + shift[0, 0:outer_nc])    # normalized branch


# ---------------------------------------------------------------------------
# Forward pass of the innermost UnetSkipConnectionBlock
# ---------------------------------------------------------------------------
def unet_innermost_forward(x, w_down, w_up_t, bn_gamma, bn_beta, eps=1e-5):
    """x: (N, input_nc, H, W) NCHW.  Returns (N, input_nc + outer_nc, H, W)."""
    N, C_in, H, W = x.shape
    inner_nc = w_down.shape[0]
    outer_nc = w_up_t.shape[1]
    assert H % 2 == 0 and W % 2 == 0
    Ho, Wo = H // 2, W // 2
    inner_pad = _round_up(inner_nc, 128)       # lane-dense intermediate channels
    outer_pad = _round_up(outer_nc, 128)
    C_tot = C_in + outer_nc

    x = x.astype(jnp.float32)

    # ---- boundary layout plumbing (small; activations stay inside Pallas) ----
    x_nhwc = jnp.transpose(x, (0, 2, 3, 1))
    x_padded = jnp.pad(x_nhwc, ((0, 0), (1, 1), (1, 1), (0, 0)))
    # parity planes: x_split[n, 2*ph+pw, r, c, :] = x_pad[n, 2r+ph, 2c+pw, :]
    x_split = (x_padded.reshape(N, Ho + 1, 2, Wo + 1, 2, C_in)
               .transpose(0, 2, 4, 1, 3, 5)
               .reshape(N, 4, Ho + 1, Wo + 1, C_in)
               .astype(jnp.bfloat16))

    # per-tap weight matrices, output channels zero-padded to 128, bf16
    wd = jnp.transpose(w_down, (2, 3, 1, 0)).reshape(16, C_in, inner_nc)
    wd = jnp.pad(wd, ((0, 0), (0, 0), (0, inner_pad - inner_nc))
                 ).astype(jnp.bfloat16)

    w_conv = jnp.flip(w_up_t, axis=(2, 3)).transpose(1, 0, 2, 3)  # (outer, inner, 4, 4)
    wu = jnp.transpose(w_conv, (2, 3, 1, 0)).reshape(16, inner_nc, outer_nc)
    wu = jnp.pad(wu, ((0, 0), (0, inner_pad - inner_nc),
                      (0, outer_pad - outer_nc))).astype(jnp.bfloat16)

    g = jnp.pad(bn_gamma.astype(jnp.float32), (0, outer_pad - outer_nc)
                ).reshape(1, outer_pad)
    b = jnp.pad(bn_beta.astype(jnp.float32), (0, outer_pad - outer_nc)
                ).reshape(1, outer_pad)

    # ---- down: LeakyReLU -> Conv(4,2,1) -> ReLU, grid over batch ------------
    y_pad = pl.pallas_call(
        functools.partial(_down_kernel, Ho=Ho, Wo=Wo, C_in=C_in,
                          inner_pad=inner_pad, slope=0.2),
        out_shape=jax.ShapeDtypeStruct((N, Ho + 2, Wo + 2, inner_pad),
                                       jnp.bfloat16),
        grid=(N,),
        in_specs=[
            pl.BlockSpec((1, 4, Ho + 1, Wo + 1, C_in),
                         lambda n: (n, 0, 0, 0, 0)),
            pl.BlockSpec((16, C_in, inner_pad), lambda n: (0, 0, 0)),
        ],
        out_specs=pl.BlockSpec((1, Ho + 2, Wo + 2, inner_pad),
                               lambda n: (n, 0, 0, 0)),
        compiler_params=_CPARAMS,
    )(x_split, wd)

    # ---- up: ConvTranspose(4,2,1) as 4 sub-pixel phases + BN partial stats --
    u_ph, stats = pl.pallas_call(
        functools.partial(_up_kernel, Ho=Ho, Wo=Wo,
                          inner_pad=inner_pad, outer_pad=outer_pad),
        out_shape=(
            jax.ShapeDtypeStruct((N, 2, 2, Ho, Wo, outer_pad), jnp.float32),
            jax.ShapeDtypeStruct((N, 2, outer_pad), jnp.float32),
        ),
        grid=(N,),
        in_specs=[
            pl.BlockSpec((1, Ho + 2, Wo + 2, inner_pad),
                         lambda n: (n, 0, 0, 0)),
            pl.BlockSpec((16, inner_pad, outer_pad), lambda n: (0, 0, 0)),
        ],
        out_specs=(
            pl.BlockSpec((1, 2, 2, Ho, Wo, outer_pad),
                         lambda n: (n, 0, 0, 0, 0, 0)),
            pl.BlockSpec((1, 2, outer_pad), lambda n: (n, 0, 0)),
        ),
        compiler_params=_CPARAMS,
    )(y_pad, wu)

    # ---- finalize: BatchNorm (batch statistics) + skip concat, fused --------
    x_ph = (x_nhwc.reshape(N, Ho, 2, Wo, 2, C_in)
            .transpose(0, 2, 4, 1, 3, 5))            # (N, 2, 2, Ho, Wo, C_in)
    out_ph = pl.pallas_call(
        functools.partial(_bn_concat_kernel, C_in=C_in, outer_nc=outer_nc,
                          count=float(N * H * W), eps=float(eps)),
        out_shape=jax.ShapeDtypeStruct((N, 2, 2, Ho, Wo, C_tot), jnp.float32),
        grid=(N,),
        in_specs=[
            pl.BlockSpec((1, 2, 2, Ho, Wo, C_in),
                         lambda n: (n, 0, 0, 0, 0, 0)),
            pl.BlockSpec((1, 2, 2, Ho, Wo, outer_pad),
                         lambda n: (n, 0, 0, 0, 0, 0)),
            pl.BlockSpec((N, 2, outer_pad), lambda n: (0, 0, 0)),
            pl.BlockSpec((1, outer_pad), lambda n: (0, 0)),
            pl.BlockSpec((1, outer_pad), lambda n: (0, 0)),
        ],
        out_specs=pl.BlockSpec((1, 2, 2, Ho, Wo, C_tot),
                               lambda n: (n, 0, 0, 0, 0, 0)),
        compiler_params=_CPARAMS,
    )(x_ph, u_ph, stats, g, b)

    # phase-separated -> NCHW: single boundary transpose + free reshape
    out = out_ph.transpose(0, 5, 3, 1, 4, 2).reshape(N, C_tot, H, W)
    return out


# ---------------------------------------------------------------------------
if __name__ == "__main__":
    key = jax.random.PRNGKey(0)
    N, outer_nc, inner_nc, H, W = 2, 4, 8, 16, 16
    input_nc = outer_nc                     # input_nc=None -> input_nc = outer_nc

    k1, k2, k3 = jax.random.split(key, 3)
    x = jax.random.normal(k1, (N, input_nc, H, W), jnp.float32)
    # Deterministic synthetic parameters (shapes from nn.Module __init__).
    w_down = 0.1 * jax.random.normal(k2, (inner_nc, input_nc, 4, 4), jnp.float32)
    w_up_t = 0.1 * jax.random.normal(k3, (inner_nc, outer_nc, 4, 4), jnp.float32)
    bn_gamma = jnp.ones((outer_nc,), jnp.float32)      # BatchNorm2d default init
    bn_beta = jnp.zeros((outer_nc,), jnp.float32)

    out = jax.jit(unet_innermost_forward)(x, w_down, w_up_t, bn_gamma, bn_beta)
    out = jax.block_until_ready(out)
    assert out.shape == (N, input_nc + outer_nc, H, W)

    # Reference with plain lax convs (f32) — same semantics as the nn.Module.
    def ref(xr):
        h = jnp.where(xr >= 0, xr, 0.2 * xr)
        y = jax.lax.conv_general_dilated(
            h, w_down, window_strides=(2, 2), padding=((1, 1), (1, 1)),
            dimension_numbers=("NCHW", "OIHW", "NCHW"))
        h2 = jnp.maximum(y, 0.0)
        w_conv = jnp.flip(w_up_t, axis=(2, 3)).transpose(1, 0, 2, 3)
        u = jax.lax.conv_general_dilated(
            h2, w_conv, window_strides=(1, 1), padding=((2, 2), (2, 2)),
            lhs_dilation=(2, 2), dimension_numbers=("NCHW", "OIHW", "NCHW"))
        mean = u.mean(axis=(0, 2, 3), keepdims=True)
        var = ((u - mean) ** 2).mean(axis=(0, 2, 3), keepdims=True)
        un = (u - mean) * jax.lax.rsqrt(var + 1e-5)
        un = un * bn_gamma.reshape(1, -1, 1, 1) + bn_beta.reshape(1, -1, 1, 1)
        return jnp.concatenate([xr, un], axis=1)

    # bf16 MXU operands (f32 accumulation / stats) => slightly looser tolerance.
    np.testing.assert_allclose(np.asarray(out), np.asarray(ref(x)),
                               rtol=2e-2, atol=2e-2)
    print("KERNEL_OK")
</pallas_src>

<mosaic_0001>
module attributes {stable_mosaic.version = 11 : i64} {
  func.func @_down_kernel(%arg0: i32, %arg1: memref<1x4x9x9x4xbf16, #tpu.memory_space<vmem>>, %arg2: memref<16x4x128xbf16, #tpu.memory_space<vmem>>, %arg3: memref<1x10x10x128xbf16, #tpu.memory_space<vmem>>) attributes {dimension_semantics = [#tpu.dimension_semantics<parallel>], iteration_bounds = array<i64: 2>, scalar_prefetch = 0 : i64, scratch_operands = 0 : i64, tpu.core_type = #tpu.core_type<tc>, window_params = [{transform_indices = @transform_0, window_bounds = array<i64: 1, 4, 9, 9, 4>}, {pipeline_mode = #tpu.pipeline_mode<synchronous>, transform_indices = @transform_1, window_bounds = array<i64: 16, 4, 128>}, {transform_indices = @transform_2, window_bounds = array<i64: 1, 10, 10, 128>}]} {
    %c0 = arith.constant 0 : index
    %c0_0 = arith.constant 0 : index
    %c0_1 = arith.constant 0 : index
    %c0_2 = arith.constant 0 : index
    %c0_3 = arith.constant 0 : index
    %0 = vector.load %arg1[%c0, %c0_0, %c0_1, %c0_2, %c0_3] : memref<1x4x9x9x4xbf16, #tpu.memory_space<vmem>>, vector<1x4x9x9x4xbf16>
    %1 = arith.extf %0 : vector<1x4x9x9x4xbf16> to vector<1x4x9x9x4xf32>
    %cst = arith.constant 0.000000e+00 : f32
    %2 = vector.broadcast %cst : f32 to vector<1x4x9x9x4xf32>
    %3 = arith.cmpf oge, %1, %2 : vector<1x4x9x9x4xf32>
    %cst_4 = arith.constant 2.000000e-01 : f32
    %4 = vector.broadcast %cst_4 : f32 to vector<1x4x9x9x4xf32>
    %5 = arith.mulf %4, %1 : vector<1x4x9x9x4xf32>
    %6 = arith.select %3, %1, %5 : vector<1x4x9x9x4xi1>, vector<1x4x9x9x4xf32>
    %7 = arith.truncf %6 : vector<1x4x9x9x4xf32> to vector<1x4x9x9x4xbf16>
    %cst_5 = arith.constant 0.000000e+00 : f32
    %8 = vector.broadcast %cst_5 : f32 to vector<64x128xf32>
    %9 = vector.extract_strided_slice %7 {offsets = [0, 0, 0, 0, 0], sizes = [1, 1, 8, 8, 4], strides = [1, 1, 1, 1, 1]} : vector<1x4x9x9x4xbf16> to vector<1x1x8x8x4xbf16>
    %10 = vector.shape_cast %9 : vector<1x1x8x8x4xbf16> to vector<8x8x4xbf16>
    %11 = vector.shape_cast %10 : vector<8x8x4xbf16> to vector<64x4xbf16>
    %c0_6 = arith.constant 0 : index
    %c0_7 = arith.constant 0 : index
    %c0_8 = arith.constant 0 : index
    %12 = vector.load %arg2[%c0_6, %c0_7, %c0_8] : memref<16x4x128xbf16, #tpu.memory_space<vmem>>, vector<1x4x128xbf16>
    %13 = vector.shape_cast %12 : vector<1x4x128xbf16> to vector<4x128xbf16>
    %cst_9 = arith.constant dense<0.000000e+00> : vector<64x128xf32>
    %14 = tpu.matmul %11, %13, %cst_9 {dimension_numbers = #tpu.dot_dimension_numbers<[1], [0], [0], [1], [0, 0, 1, 1], [], []>} : vector<64x4xbf16>, vector<4x128xbf16>, vector<64x128xf32> -> vector<64x128xf32>
    %15 = arith.addf %8, %14 : vector<64x128xf32>
    %16 = vector.extract_strided_slice %7 {offsets = [0, 1, 0, 0, 0], sizes = [1, 1, 8, 8, 4], strides = [1, 1, 1, 1, 1]} : vector<1x4x9x9x4xbf16> to vector<1x1x8x8x4xbf16>
    %17 = vector.shape_cast %16 : vector<1x1x8x8x4xbf16> to vector<8x8x4xbf16>
    %18 = vector.shape_cast %17 : vector<8x8x4xbf16> to vector<64x4xbf16>
    %c1 = arith.constant 1 : index
    %c0_10 = arith.constant 0 : index
    %c0_11 = arith.constant 0 : index
    %19 = vector.load %arg2[%c1, %c0_10, %c0_11] : memref<16x4x128xbf16, #tpu.memory_space<vmem>>, vector<1x4x128xbf16>
    %20 = vector.shape_cast %19 : vector<1x4x128xbf16> to vector<4x128xbf16>
    %cst_12 = arith.constant dense<0.000000e+00> : vector<64x128xf32>
    %21 = tpu.matmul %18, %20, %cst_12 {dimension_numbers = #tpu.dot_dimension_numbers<[1], [0], [0], [1], [0, 0, 1, 1], [], []>} : vector<64x4xbf16>, vector<4x128xbf16>, vector<64x128xf32> -> vector<64x128xf32>
    %22 = arith.addf %15, %21 : vector<64x128xf32>
    %23 = vector.extract_strided_slice %7 {offsets = [0, 0, 0, 1, 0], sizes = [1, 1, 8, 8, 4], strides = [1, 1, 1, 1, 1]} : vector<1x4x9x9x4xbf16> to vector<1x1x8x8x4xbf16>
    %24 = vector.shape_cast %23 : vector<1x1x8x8x4xbf16> to vector<8x8x4xbf16>
    %25 = vector.shape_cast %24 : vector<8x8x4xbf16> to vector<64x4xbf16>
    %c2 = arith.constant 2 : index
    %c0_13 = arith.constant 0 : index
    %c0_14 = arith.constant 0 : index
    %26 = vector.load %arg2[%c2, %c0_13, %c0_14] : memref<16x4x128xbf16, #tpu.memory_space<vmem>>, vector<1x4x128xbf16>
    %27 = vector.shape_cast %26 : vector<1x4x128xbf16> to vector<4x128xbf16>
    %cst_15 = arith.constant dense<0.000000e+00> : vector<64x128xf32>
    %28 = tpu.matmul %25, %27, %cst_15 {dimension_numbers = #tpu.dot_dimension_numbers<[1], [0], [0], [1], [0, 0, 1, 1], [], []>} : vector<64x4xbf16>, vector<4x128xbf16>, vector<64x128xf32> -> vector<64x128xf32>
    %29 = arith.addf %22, %28 : vector<64x128xf32>
    %30 = vector.extract_strided_slice %7 {offsets = [0, 1, 0, 1, 0], sizes = [1, 1, 8, 8, 4], strides = [1, 1, 1, 1, 1]} : vector<1x4x9x9x4xbf16> to vector<1x1x8x8x4xbf16>
    %31 = vector.shape_cast %30 : vector<1x1x8x8x4xbf16> to vector<8x8x4xbf16>
    %32 = vector.shape_cast %31 : vector<8x8x4xbf16> to vector<64x4xbf16>
    %c3 = arith.constant 3 : index
    %c0_16 = arith.constant 0 : index
    %c0_17 = arith.constant 0 : index
    %33 = vector.load %arg2[%c3, %c0_16, %c0_17] : memref<16x4x128xbf16, #tpu.memory_space<vmem>>, vector<1x4x128xbf16>
    %34 = vector.shape_cast %33 : vector<1x4x128xbf16> to vector<4x128xbf16>
    %cst_18 = arith.constant dense<0.000000e+00> : vector<64x128xf32>
    %35 = tpu.matmul %32, %34, %cst_18 {dimension_numbers = #tpu.dot_dimension_numbers<[1], [0], [0], [1], [0, 0, 1, 1], [], []>} : vector<64x4xbf16>, vector<4x128xbf16>, vector<64x128xf32> -> vector<64x128xf32>
    %36 = arith.addf %29, %35 : vector<64x128xf32>
    %37 = vector.extract_strided_slice %7 {offsets = [0, 2, 0, 0, 0], sizes = [1, 1, 8, 8, 4], strides = [1, 1, 1, 1, 1]} : vector<1x4x9x9x4xbf16> to vector<1x1x8x8x4xbf16>
    %38 = vector.shape_cast %37 : vector<1x1x8x8x4xbf16> to vector<8x8x4xbf16>
    %39 = vector.shape_cast %38 : vector<8x8x4xbf16> to vector<64x4xbf16>
    %c4 = arith.constant 4 : index
    %c0_19 = arith.constant 0 : index
    %c0_20 = arith.constant 0 : index
    %40 = vector.load %arg2[%c4, %c0_19, %c0_20] : memref<16x4x128xbf16, #tpu.memory_space<vmem>>, vector<1x4x128xbf16>
    %41 = vector.shape_cast %40 : vector<1x4x128xbf16> to vector<4x128xbf16>
    %cst_21 = arith.constant dense<0.000000e+00> : vector<64x128xf32>
    %42 = tpu.matmul %39, %41, %cst_21 {dimension_numbers = #tpu.dot_dimension_numbers<[1], [0], [0], [1], [0, 0, 1, 1], [], []>} : vector<64x4xbf16>, vector<4x128xbf16>, vector<64x128xf32> -> vector<64x128xf32>
    %43 = arith.addf %36, %42 : vector<64x128xf32>
    %44 = vector.extract_strided_slice %7 {offsets = [0, 3, 0, 0, 0], sizes = [1, 1, 8, 8, 4], strides = [1, 1, 1, 1, 1]} : vector<1x4x9x9x4xbf16> to vector<1x1x8x8x4xbf16>
    %45 = vector.shape_cast %44 : vector<1x1x8x8x4xbf16> to vector<8x8x4xbf16>
    %46 = vector.shape_cast %45 : vector<8x8x4xbf16> to vector<64x4xbf16>
    %c5 = arith.constant 5 : index
    %c0_22 = arith.constant 0 : index
    %c0_23 = arith.constant 0 : index
    %47 = vector.load %arg2[%c5, %c0_22, %c0_23] : memref<16x4x128xbf16, #tpu.memory_space<vmem>>, vector<1x4x128xbf16>
    %48 = vector.shape_cast %47 : vector<1x4x128xbf16> to vector<4x128xbf16>
    %cst_24 = arith.constant dense<0.000000e+00> : vector<64x128xf32>
    %49 = tpu.matmul %46, %48, %cst_24 {dimension_numbers = #tpu.dot_dimension_numbers<[1], [0], [0], [1], [0, 0, 1, 1], [], []>} : vector<64x4xbf16>, vector<4x128xbf16>, vector<64x128xf32> -> vector<64x128xf32>
    %50 = arith.addf %43, %49 : vector<64x128xf32>
    %51 = vector.extract_strided_slice %7 {offsets = [0, 2, 0, 1, 0], sizes = [1, 1, 8, 8, 4], strides = [1, 1, 1, 1, 1]} : vector<1x4x9x9x4xbf16> to vector<1x1x8x8x4xbf16>
    %52 = vector.shape_cast %51 : vector<1x1x8x8x4xbf16> to vector<8x8x4xbf16>
    %53 = vector.shape_cast %52 : vector<8x8x4xbf16> to vector<64x4xbf16>
    %c6 = arith.constant 6 : index
    %c0_25 = arith.constant 0 : index
    %c0_26 = arith.constant 0 : index
    %54 = vector.load %arg2[%c6, %c0_25, %c0_26] : memref<16x4x128xbf16, #tpu.memory_space<vmem>>, vector<1x4x128xbf16>
    %55 = vector.shape_cast %54 : vector<1x4x128xbf16> to vector<4x128xbf16>
    %cst_27 = arith.constant dense<0.000000e+00> : vector<64x128xf32>
    %56 = tpu.matmul %53, %55, %cst_27 {dimension_numbers = #tpu.dot_dimension_numbers<[1], [0], [0], [1], [0, 0, 1, 1], [], []>} : vector<64x4xbf16>, vector<4x128xbf16>, vector<64x128xf32> -> vector<64x128xf32>
    %57 = arith.addf %50, %56 : vector<64x128xf32>
    %58 = vector.extract_strided_slice %7 {offsets = [0, 3, 0, 1, 0], sizes = [1, 1, 8, 8, 4], strides = [1, 1, 1, 1, 1]} : vector<1x4x9x9x4xbf16> to vector<1x1x8x8x4xbf16>
    %59 = vector.shape_cast %58 : vector<1x1x8x8x4xbf16> to vector<8x8x4xbf16>
    %60 = vector.shape_cast %59 : vector<8x8x4xbf16> to vector<64x4xbf16>
    %c7 = arith.constant 7 : index
    %c0_28 = arith.constant 0 : index
    %c0_29 = arith.constant 0 : index
    %61 = vector.load %arg2[%c7, %c0_28, %c0_29] : memref<16x4x128xbf16, #tpu.memory_space<vmem>>, vector<1x4x128xbf16>
    %62 = vector.shape_cast %61 : vector<1x4x128xbf16> to vector<4x128xbf16>
    %cst_30 = arith.constant dense<0.000000e+00> : vector<64x128xf32>
    %63 = tpu.matmul %60, %62, %cst_30 {dimension_numbers = #tpu.dot_dimension_numbers<[1], [0], [0], [1], [0, 0, 1, 1], [], []>} : vector<64x4xbf16>, vector<4x128xbf16>, vector<64x128xf32> -> vector<64x128xf32>
    %64 = arith.addf %57, %63 : vector<64x128xf32>
    %65 = vector.extract_strided_slice %7 {offsets = [0, 0, 1, 0, 0], sizes = [1, 1, 8, 8, 4], strides = [1, 1, 1, 1, 1]} : vector<1x4x9x9x4xbf16> to vector<1x1x8x8x4xbf16>
    %66 = vector.shape_cast %65 : vector<1x1x8x8x4xbf16> to vector<8x8x4xbf16>
    %67 = vector.shape_cast %66 : vector<8x8x4xbf16> to vector<64x4xbf16>
    %c8 = arith.constant 8 : index
    %c0_31 = arith.constant 0 : index
    %c0_32 = arith.constant 0 : index
    %68 = vector.load %arg2[%c8, %c0_31, %c0_32] : memref<16x4x128xbf16, #tpu.memory_space<vmem>>, vector<1x4x128xbf16>
    %69 = vector.shape_cast %68 : vector<1x4x128xbf16> to vector<4x128xbf16>
    %cst_33 = arith.constant dense<0.000000e+00> : vector<64x128xf32>
    %70 = tpu.matmul %67, %69, %cst_33 {dimension_numbers = #tpu.dot_dimension_numbers<[1], [0], [0], [1], [0, 0, 1, 1], [], []>} : vector<64x4xbf16>, vector<4x128xbf16>, vector<64x128xf32> -> vector<64x128xf32>
    %71 = arith.addf %64, %70 : vector<64x128xf32>
    %72 = vector.extract_strided_slice %7 {offsets = [0, 1, 1, 0, 0], sizes = [1, 1, 8, 8, 4], strides = [1, 1, 1, 1, 1]} : vector<1x4x9x9x4xbf16> to vector<1x1x8x8x4xbf16>
    %73 = vector.shape_cast %72 : vector<1x1x8x8x4xbf16> to vector<8x8x4xbf16>
    %74 = vector.shape_cast %73 : vector<8x8x4xbf16> to vector<64x4xbf16>
    %c9 = arith.constant 9 : index
    %c0_34 = arith.constant 0 : index
    %c0_35 = arith.constant 0 : index
    %75 = vector.load %arg2[%c9, %c0_34, %c0_35] : memref<16x4x128xbf16, #tpu.memory_space<vmem>>, vector<1x4x128xbf16>
    %76 = vector.shape_cast %75 : vector<1x4x128xbf16> to vector<4x128xbf16>
    %cst_36 = arith.constant dense<0.000000e+00> : vector<64x128xf32>
    %77 = tpu.matmul %74, %76, %cst_36 {dimension_numbers = #tpu.dot_dimension_numbers<[1], [0], [0], [1], [0, 0, 1, 1], [], []>} : vector<64x4xbf16>, vector<4x128xbf16>, vector<64x128xf32> -> vector<64x128xf32>
    %78 = arith.addf %71, %77 : vector<64x128xf32>
    %79 = vector.extract_strided_slice %7 {offsets = [0, 0, 1, 1, 0], sizes = [1, 1, 8, 8, 4], strides = [1, 1, 1, 1, 1]} : vector<1x4x9x9x4xbf16> to vector<1x1x8x8x4xbf16>
    %80 = vector.shape_cast %79 : vector<1x1x8x8x4xbf16> to vector<8x8x4xbf16>
    %81 = vector.shape_cast %80 : vector<8x8x4xbf16> to vector<64x4xbf16>
    %c10 = arith.constant 10 : index
    %c0_37 = arith.constant 0 : index
    %c0_38 = arith.constant 0 : index
    %82 = vector.load %arg2[%c10, %c0_37, %c0_38] : memref<16x4x128xbf16, #tpu.memory_space<vmem>>, vector<1x4x128xbf16>
    %83 = vector.shape_cast %82 : vector<1x4x128xbf16> to vector<4x128xbf16>
    %cst_39 = arith.constant dense<0.000000e+00> : vector<64x128xf32>
    %84 = tpu.matmul %81, %83, %cst_39 {dimension_numbers = #tpu.dot_dimension_numbers<[1], [0], [0], [1], [0, 0, 1, 1], [], []>} : vector<64x4xbf16>, vector<4x128xbf16>, vector<64x128xf32> -> vector<64x128xf32>
    %85 = arith.addf %78, %84 : vector<64x128xf32>
    %86 = vector.extract_strided_slice %7 {offsets = [0, 1, 1, 1, 0], sizes = [1, 1, 8, 8, 4], strides = [1, 1, 1, 1, 1]} : vector<1x4x9x9x4xbf16> to vector<1x1x8x8x4xbf16>
    %87 = vector.shape_cast %86 : vector<1x1x8x8x4xbf16> to vector<8x8x4xbf16>
    %88 = vector.shape_cast %87 : vector<8x8x4xbf16> to vector<64x4xbf16>
    %c11 = arith.constant 11 : index
    %c0_40 = arith.constant 0 : index
    %c0_41 = arith.constant 0 : index
    %89 = vector.load %arg2[%c11, %c0_40, %c0_41] : memref<16x4x128xbf16, #tpu.memory_space<vmem>>, vector<1x4x128xbf16>
    %90 = vector.shape_cast %89 : vector<1x4x128xbf16> to vector<4x128xbf16>
    %cst_42 = arith.constant dense<0.000000e+00> : vector<64x128xf32>
    %91 = tpu.matmul %88, %90, %cst_42 {dimension_numbers = #tpu.dot_dimension_numbers<[1], [0], [0], [1], [0, 0, 1, 1], [], []>} : vector<64x4xbf16>, vector<4x128xbf16>, vector<64x128xf32> -> vector<64x128xf32>
    %92 = arith.addf %85, %91 : vector<64x128xf32>
    %93 = vector.extract_strided_slice %7 {offsets = [0, 2, 1, 0, 0], sizes = [1, 1, 8, 8, 4], strides = [1, 1, 1, 1, 1]} : vector<1x4x9x9x4xbf16> to vector<1x1x8x8x4xbf16>
    %94 = vector.shape_cast %93 : vector<1x1x8x8x4xbf16> to vector<8x8x4xbf16>
    %95 = vector.shape_cast %94 : vector<8x8x4xbf16> to vector<64x4xbf16>
    %c12 = arith.constant 12 : index
    %c0_43 = arith.constant 0 : index
    %c0_44 = arith.constant 0 : index
    %96 = vector.load %arg2[%c12, %c0_43, %c0_44] : memref<16x4x128xbf16, #tpu.memory_space<vmem>>, vector<1x4x128xbf16>
    %97 = vector.shape_cast %96 : vector<1x4x128xbf16> to vector<4x128xbf16>
    %cst_45 = arith.constant dense<0.000000e+00> : vector<64x128xf32>
    %98 = tpu.matmul %95, %97, %cst_45 {dimension_numbers = #tpu.dot_dimension_numbers<[1], [0], [0], [1], [0, 0, 1, 1], [], []>} : vector<64x4xbf16>, vector<4x128xbf16>, vector<64x128xf32> -> vector<64x128xf32>
    %99 = arith.addf %92, %98 : vector<64x128xf32>
    %100 = vector.extract_strided_slice %7 {offsets = [0, 3, 1, 0, 0], sizes = [1, 1, 8, 8, 4], strides = [1, 1, 1, 1, 1]} : vector<1x4x9x9x4xbf16> to vector<1x1x8x8x4xbf16>
    %101 = vector.shape_cast %100 : vector<1x1x8x8x4xbf16> to vector<8x8x4xbf16>
    %102 = vector.shape_cast %101 : vector<8x8x4xbf16> to vector<64x4xbf16>
    %c13 = arith.constant 13 : index
    %c0_46 = arith.constant 0 : index
    %c0_47 = arith.constant 0 : index
    %103 = vector.load %arg2[%c13, %c0_46, %c0_47] : memref<16x4x128xbf16, #tpu.memory_space<vmem>>, vector<1x4x128xbf16>
    %104 = vector.shape_cast %103 : vector<1x4x128xbf16> to vector<4x128xbf16>
    %cst_48 = arith.constant dense<0.000000e+00> : vector<64x128xf32>
    %105 = tpu.matmul %102, %104, %cst_48 {dimension_numbers = #tpu.dot_dimension_numbers<[1], [0], [0], [1], [0, 0, 1, 1], [], []>} : vector<64x4xbf16>, vector<4x128xbf16>, vector<64x128xf32> -> vector<64x128xf32>
    %106 = arith.addf %99, %105 : vector<64x128xf32>
    %107 = vector.extract_strided_slice %7 {offsets = [0, 2, 1, 1, 0], sizes = [1, 1, 8, 8, 4], strides = [1, 1, 1, 1, 1]} : vector<1x4x9x9x4xbf16> to vector<1x1x8x8x4xbf16>
    %108 = vector.shape_cast %107 : vector<1x1x8x8x4xbf16> to vector<8x8x4xbf16>
    %109 = vector.shape_cast %108 : vector<8x8x4xbf16> to vector<64x4xbf16>
    %c14 = arith.constant 14 : index
    %c0_49 = arith.constant 0 : index
    %c0_50 = arith.constant 0 : index
    %110 = vector.load %arg2[%c14, %c0_49, %c0_50] : memref<16x4x128xbf16, #tpu.memory_space<vmem>>, vector<1x4x128xbf16>
    %111 = vector.shape_cast %110 : vector<1x4x128xbf16> to vector<4x128xbf16>
    %cst_51 = arith.constant dense<0.000000e+00> : vector<64x128xf32>
    %112 = tpu.matmul %109, %111, %cst_51 {dimension_numbers = #tpu.dot_dimension_numbers<[1], [0], [0], [1], [0, 0, 1, 1], [], []>} : vector<64x4xbf16>, vector<4x128xbf16>, vector<64x128xf32> -> vector<64x128xf32>
    %113 = arith.addf %106, %112 : vector<64x128xf32>
    %114 = vector.extract_strided_slice %7 {offsets = [0, 3, 1, 1, 0], sizes = [1, 1, 8, 8, 4], strides = [1, 1, 1, 1, 1]} : vector<1x4x9x9x4xbf16> to vector<1x1x8x8x4xbf16>
    %115 = vector.shape_cast %114 : vector<1x1x8x8x4xbf16> to vector<8x8x4xbf16>
    %116 = vector.shape_cast %115 : vector<8x8x4xbf16> to vector<64x4xbf16>
    %c15 = arith.constant 15 : index
    %c0_52 = arith.constant 0 : index
    %c0_53 = arith.constant 0 : index
    %117 = vector.load %arg2[%c15, %c0_52, %c0_53] : memref<16x4x128xbf16, #tpu.memory_space<vmem>>, vector<1x4x128xbf16>
    %118 = vector.shape_cast %117 : vector<1x4x128xbf16> to vector<4x128xbf16>
    %cst_54 = arith.constant dense<0.000000e+00> : vector<64x128xf32>
    %119 = tpu.matmul %116, %118, %cst_54 {dimension_numbers = #tpu.dot_dimension_numbers<[1], [0], [0], [1], [0, 0, 1, 1], [], []>} : vector<64x4xbf16>, vector<4x128xbf16>, vector<64x128xf32> -> vector<64x128xf32>
    %120 = arith.addf %113, %119 : vector<64x128xf32>
    %cst_55 = arith.constant 0.000000e+00 : f32
    %121 = vector.broadcast %cst_55 : f32 to vector<64x128xf32>
    %122 = arith.maximumf %120, %121 : vector<64x128xf32>
    %cst_56 = arith.constant 0.000000e+00 : bf16
    %123 = vector.broadcast %cst_56 : bf16 to vector<1x10x10x128xbf16>
    %c0_57 = arith.constant 0 : index
    %c0_58 = arith.constant 0 : index
    %c0_59 = arith.constant 0 : index
    %c0_60 = arith.constant 0 : index
    %124 = vector.load %arg3[%c0_57, %c0_58, %c0_59, %c0_60] : memref<1x10x10x128xbf16, #tpu.memory_space<vmem>>, vector<1x10x10x128xbf16>
    tpu.vector_store %arg3[%c0_57, %c0_58, %c0_59, %c0_60], %123 {strides = array<i32>} : memref<1x10x10x128xbf16, #tpu.memory_space<vmem>>, vector<1x10x10x128xbf16>,
    %125 = vector.shape_cast %122 : vector<64x128xf32> to vector<8x8x128xf32>
    %126 = arith.truncf %125 : vector<8x8x128xf32> to vector<8x8x128xbf16>
    %c0_61 = arith.constant 0 : index
    %c1_62 = arith.constant 1 : index
    %c1_63 = arith.constant 1 : index
    %c0_64 = arith.constant 0 : index
    %127 = vector.load %arg3[%c0_61, %c1_62, %c1_63, %c0_64] : memref<1x10x10x128xbf16, #tpu.memory_space<vmem>>, vector<1x8x8x128xbf16>
    %128 = vector.shape_cast %127 : vector<1x8x8x128xbf16> to vector<8x8x128xbf16>
    %129 = vector.shape_cast %126 : vector<8x8x128xbf16> to vector<1x8x8x128xbf16>
    tpu.vector_store %arg3[%c0_61, %c1_62, %c1_63, %c0_64], %129 {strides = array<i32>} : memref<1x10x10x128xbf16, #tpu.memory_space<vmem>>, vector<1x8x8x128xbf16>,
    return
  }
  func.func @transform_0(%arg0: i32) -> (i32, i32, i32, i32, i32) {
    %c0_i32 = arith.constant 0 : i32
    %c0_i32_0 = arith.constant 0 : i32
    %c0_i32_1 = arith.constant 0 : i32
    %c0_i32_2 = arith.constant 0 : i32
    %c0_i32_3 = arith.constant 0 : i32
    return %arg0, %c0_i32, %c0_i32_0, %c0_i32_1, %c0_i32_2 : i32, i32, i32, i32, i32
  }
  func.func @transform_1(%arg0: i32) -> (i32, i32, i32) {
    %c0_i32 = arith.constant 0 : i32
    %c0_i32_0 = arith.constant 0 : i32
    %c0_i32_1 = arith.constant 0 : i32
    %c0_i32_2 = arith.constant 0 : i32
    return %c0_i32, %c0_i32_0, %c0_i32_1 : i32, i32, i32
  }
  func.func @transform_2(%arg0: i32) -> (i32, i32, i32, i32) {
    %c0_i32 = arith.constant 0 : i32
    %c0_i32_0 = arith.constant 0 : i32
    %c0_i32_1 = arith.constant 0 : i32
    %c0_i32_2 = arith.constant 0 : i32
    return %arg0, %c0_i32, %c0_i32_0, %c0_i32_1 : i32, i32, i32, i32
  }
}

module attributes {stable_mosaic.version = 11 : i64} {
  func.func @_up_kernel(%arg0: i32, %arg1: memref<1x10x10x128xbf16, #tpu.memory_space<vmem>>, %arg2: memref<16x128x128xbf16, #tpu.memory_space<vmem>>, %arg3: memref<1x2x2x8x8x128xf32, #tpu.memory_space<vmem>>, %arg4: memref<1x2x128xf32, #tpu.memory_space<vmem>>) attributes {dimension_semantics = [#tpu.dimension_semantics<parallel>], iteration_bounds = array<i64: 2>, scalar_prefetch = 0 : i64, scratch_operands = 0 : i64, tpu.core_type = #tpu.core_type<tc>, window_params = [{transform_indices = @transform_0, window_bounds = array<i64: 1, 10, 10, 128>}, {pipeline_mode = #tpu.pipeline_mode<synchronous>, transform_indices = @transform_1, window_bounds = array<i64: 16, 128, 128>}, {transform_indices = @transform_2, window_bounds = array<i64: 1, 2, 2, 8, 8, 128>}, {transform_indices = @transform_3, window_bounds = array<i64: 1, 2, 128>}]} {
    %c0 = arith.constant 0 : index
    %c0_0 = arith.constant 0 : index
    %c0_1 = arith.constant 0 : index
    %c0_2 = arith.constant 0 : index
    %0 = vector.load %arg1[%c0, %c0_0, %c0_1, %c0_2] : memref<1x10x10x128xbf16, #tpu.memory_space<vmem>>, vector<1x10x10x128xbf16>
    %cst = arith.constant 0.000000e+00 : f32
    %1 = vector.broadcast %cst : f32 to vector<1x128xf32>
    %cst_3 = arith.constant 0.000000e+00 : f32
    %2 = vector.broadcast %cst_3 : f32 to vector<1x128xf32>
    %cst_4 = arith.constant 0.000000e+00 : f32
    %3 = vector.broadcast %cst_4 : f32 to vector<64x128xf32>
    %4 = vector.extract_strided_slice %0 {offsets = [0, 0, 0, 0], sizes = [1, 8, 8, 128], strides = [1, 1, 1, 1]} : vector<1x10x10x128xbf16> to vector<1x8x8x128xbf16>
    %5 = vector.shape_cast %4 : vector<1x8x8x128xbf16> to vector<8x8x128xbf16>
    %6 = vector.shape_cast %5 : vector<8x8x128xbf16> to vector<64x128xbf16>
    %c0_5 = arith.constant 0 : index
    %c0_6 = arith.constant 0 : index
    %c0_7 = arith.constant 0 : index
    %7 = vector.load %arg2[%c0_5, %c0_6, %c0_7] : memref<16x128x128xbf16, #tpu.memory_space<vmem>>, vector<1x128x128xbf16>
    %8 = vector.shape_cast %7 : vector<1x128x128xbf16> to vector<128x128xbf16>
    %cst_8 = arith.constant dense<0.000000e+00> : vector<64x128xf32>
    %9 = tpu.matmul %6, %8, %cst_8 {dimension_numbers = #tpu.dot_dimension_numbers<[1], [0], [0], [1], [0, 0, 1, 1], [], []>} : vector<64x128xbf16>, vector<128x128xbf16>, vector<64x128xf32> -> vector<64x128xf32>
    %10 = arith.addf %3, %9 : vector<64x128xf32>
    %11 = vector.extract_strided_slice %0 {offsets = [0, 0, 1, 0], sizes = [1, 8, 8, 128], strides = [1, 1, 1, 1]} : vector<1x10x10x128xbf16> to vector<1x8x8x128xbf16>
    %12 = vector.shape_cast %11 : vector<1x8x8x128xbf16> to vector<8x8x128xbf16>
    %13 = vector.shape_cast %12 : vector<8x8x128xbf16> to vector<64x128xbf16>
    %c2 = arith.constant 2 : index
    %c0_9 = arith.constant 0 : index
    %c0_10 = arith.constant 0 : index
    %14 = vector.load %arg2[%c2, %c0_9, %c0_10] : memref<16x128x128xbf16, #tpu.memory_space<vmem>>, vector<1x128x128xbf16>
    %15 = vector.shape_cast %14 : vector<1x128x128xbf16> to vector<128x128xbf16>
    %cst_11 = arith.constant dense<0.000000e+00> : vector<64x128xf32>
    %16 = tpu.matmul %13, %15, %cst_11 {dimension_numbers = #tpu.dot_dimension_numbers<[1], [0], [0], [1], [0, 0, 1, 1], [], []>} : vector<64x128xbf16>, vector<128x128xbf16>, vector<64x128xf32> -> vector<64x128xf32>
    %17 = arith.addf %10, %16 : vector<64x128xf32>
    %18 = vector.extract_strided_slice %0 {offsets = [0, 1, 0, 0], sizes = [1, 8, 8, 128], strides = [1, 1, 1, 1]} : vector<1x10x10x128xbf16> to vector<1x8x8x128xbf16>
    %19 = vector.shape_cast %18 : vector<1x8x8x128xbf16> to vector<8x8x128xbf16>
    %20 = vector.shape_cast %19 : vector<8x8x128xbf16> to vector<64x128xbf16>
    %c8 = arith.constant 8 : index
    %c0_12 = arith.constant 0 : index
    %c0_13 = arith.constant 0 : index
    %21 = vector.load %arg2[%c8, %c0_12, %c0_13] : memref<16x128x128xbf16, #tpu.memory_space<vmem>>, vector<1x128x128xbf16>
    %22 = vector.shape_cast %21 : vector<1x128x128xbf16> to vector<128x128xbf16>
    %cst_14 = arith.constant dense<0.000000e+00> : vector<64x128xf32>
    %23 = tpu.matmul %20, %22, %cst_14 {dimension_numbers = #tpu.dot_dimension_numbers<[1], [0], [0], [1], [0, 0, 1, 1], [], []>} : vector<64x128xbf16>, vector<128x128xbf16>, vector<64x128xf32> -> vector<64x128xf32>
    %24 = arith.addf %17, %23 : vector<64x128xf32>
    %25 = vector.extract_strided_slice %0 {offsets = [0, 1, 1, 0], sizes = [1, 8, 8, 128], strides = [1, 1, 1, 1]} : vector<1x10x10x128xbf16> to vector<1x8x8x128xbf16>
    %26 = vector.shape_cast %25 : vector<1x8x8x128xbf16> to vector<8x8x128xbf16>
    %27 = vector.shape_cast %26 : vector<8x8x128xbf16> to vector<64x128xbf16>
    %c10 = arith.constant 10 : index
    %c0_15 = arith.constant 0 : index
    %c0_16 = arith.constant 0 : index
    %28 = vector.load %arg2[%c10, %c0_15, %c0_16] : memref<16x128x128xbf16, #tpu.memory_space<vmem>>, vector<1x128x128xbf16>
    %29 = vector.shape_cast %28 : vector<1x128x128xbf16> to vector<128x128xbf16>
    %cst_17 = arith.constant dense<0.000000e+00> : vector<64x128xf32>
    %30 = tpu.matmul %27, %29, %cst_17 {dimension_numbers = #tpu.dot_dimension_numbers<[1], [0], [0], [1], [0, 0, 1, 1], [], []>} : vector<64x128xbf16>, vector<128x128xbf16>, vector<64x128xf32> -> vector<64x128xf32>
    %31 = arith.addf %24, %30 : vector<64x128xf32>
    %32 = vector.shape_cast %31 : vector<64x128xf32> to vector<8x8x128xf32>
    %c0_18 = arith.constant 0 : index
    %c0_19 = arith.constant 0 : index
    %c0_20 = arith.constant 0 : index
    %c0_21 = arith.constant 0 : index
    %c0_22 = arith.constant 0 : index
    %c0_23 = arith.constant 0 : index
    %33 = vector.load %arg3[%c0_18, %c0_19, %c0_20, %c0_21, %c0_22, %c0_23] : memref<1x2x2x8x8x128xf32, #tpu.memory_space<vmem>>, vector<1x1x1x8x8x128xf32>
    %34 = vector.shape_cast %33 : vector<1x1x1x8x8x128xf32> to vector<8x8x128xf32>
    %35 = vector.shape_cast %32 : vector<8x8x128xf32> to vector<1x1x1x8x8x128xf32>
    tpu.vector_store %arg3[%c0_18, %c0_19, %c0_20, %c0_21, %c0_22, %c0_23], %35 {strides = array<i32>} : memref<1x2x2x8x8x128xf32, #tpu.memory_space<vmem>>, vector<1x1x1x8x8x128xf32>,
    %cst_24 = arith.constant dense<0.000000e+00> : vector<128xf32>
    %36 = vector.multi_reduction <add>, %31, %cst_24 [0] : vector<64x128xf32> to vector<128xf32>
    %37 = vector.shape_cast %36 : vector<128xf32> to vector<1x128xf32>
    %38 = arith.addf %1, %37 : vector<1x128xf32>
    %39 = arith.mulf %31, %31 : vector<64x128xf32>
    %cst_25 = arith.constant dense<0.000000e+00> : vector<128xf32>
    %40 = vector.multi_reduction <add>, %39, %cst_25 [0] : vector<64x128xf32> to vector<128xf32>
    %41 = vector.shape_cast %40 : vector<128xf32> to vector<1x128xf32>
    %42 = arith.addf %2, %41 : vector<1x128xf32>
    %cst_26 = arith.constant 0.000000e+00 : f32
    %43 = vector.broadcast %cst_26 : f32 to vector<64x128xf32>
    %44 = vector.extract_strided_slice %0 {offsets = [0, 0, 1, 0], sizes = [1, 8, 8, 128], strides = [1, 1, 1, 1]} : vector<1x10x10x128xbf16> to vector<1x8x8x128xbf16>
    %45 = vector.shape_cast %44 : vector<1x8x8x128xbf16> to vector<8x8x128xbf16>
    %46 = vector.shape_cast %45 : vector<8x8x128xbf16> to vector<64x128xbf16>
    %c1 = arith.constant 1 : index
    %c0_27 = arith.constant 0 : index
    %c0_28 = arith.constant 0 : index
    %47 = vector.load %arg2[%c1, %c0_27, %c0_28] : memref<16x128x128xbf16, #tpu.memory_space<vmem>>, vector<1x128x128xbf16>
    %48 = vector.shape_cast %47 : vector<1x128x128xbf16> to vector<128x128xbf16>
    %cst_29 = arith.constant dense<0.000000e+00> : vector<64x128xf32>
    %49 = tpu.matmul %46, %48, %cst_29 {dimension_numbers = #tpu.dot_dimension_numbers<[1], [0], [0], [1], [0, 0, 1, 1], [], []>} : vector<64x128xbf16>, vector<128x128xbf16>, vector<64x128xf32> -> vector<64x128xf32>
    %50 = arith.addf %43, %49 : vector<64x128xf32>
    %51 = vector.extract_strided_slice %0 {offsets = [0, 0, 2, 0], sizes = [1, 8, 8, 128], strides = [1, 1, 1, 1]} : vector<1x10x10x128xbf16> to vector<1x8x8x128xbf16>
    %52 = vector.shape_cast %51 : vector<1x8x8x128xbf16> to vector<8x8x128xbf16>
    %53 = vector.shape_cast %52 : vector<8x8x128xbf16> to vector<64x128xbf16>
    %c3 = arith.constant 3 : index
    %c0_30 = arith.constant 0 : index
    %c0_31 = arith.constant 0 : index
    %54 = vector.load %arg2[%c3, %c0_30, %c0_31] : memref<16x128x128xbf16, #tpu.memory_space<vmem>>, vector<1x128x128xbf16>
    %55 = vector.shape_cast %54 : vector<1x128x128xbf16> to vector<128x128xbf16>
    %cst_32 = arith.constant dense<0.000000e+00> : vector<64x128xf32>
    %56 = tpu.matmul %53, %55, %cst_32 {dimension_numbers = #tpu.dot_dimension_numbers<[1], [0], [0], [1], [0, 0, 1, 1], [], []>} : vector<64x128xbf16>, vector<128x128xbf16>, vector<64x128xf32> -> vector<64x128xf32>
    %57 = arith.addf %50, %56 : vector<64x128xf32>
    %58 = vector.extract_strided_slice %0 {offsets = [0, 1, 1, 0], sizes = [1, 8, 8, 128], strides = [1, 1, 1, 1]} : vector<1x10x10x128xbf16> to vector<1x8x8x128xbf16>
    %59 = vector.shape_cast %58 : vector<1x8x8x128xbf16> to vector<8x8x128xbf16>
    %60 = vector.shape_cast %59 : vector<8x8x128xbf16> to vector<64x128xbf16>
    %c9 = arith.constant 9 : index
    %c0_33 = arith.constant 0 : index
    %c0_34 = arith.constant 0 : index
    %61 = vector.load %arg2[%c9, %c0_33, %c0_34] : memref<16x128x128xbf16, #tpu.memory_space<vmem>>, vector<1x128x128xbf16>
    %62 = vector.shape_cast %61 : vector<1x128x128xbf16> to vector<128x128xbf16>
    %cst_35 = arith.constant dense<0.000000e+00> : vector<64x128xf32>
    %63 = tpu.matmul %60, %62, %cst_35 {dimension_numbers = #tpu.dot_dimension_numbers<[1], [0], [0], [1], [0, 0, 1, 1], [], []>} : vector<64x128xbf16>, vector<128x128xbf16>, vector<64x128xf32> -> vector<64x128xf32>
    %64 = arith.addf %57, %63 : vector<64x128xf32>
    %65 = vector.extract_strided_slice %0 {offsets = [0, 1, 2, 0], sizes = [1, 8, 8, 128], strides = [1, 1, 1, 1]} : vector<1x10x10x128xbf16> to vector<1x8x8x128xbf16>
    %66 = vector.shape_cast %65 : vector<1x8x8x128xbf16> to vector<8x8x128xbf16>
    %67 = vector.shape_cast %66 : vector<8x8x128xbf16> to vector<64x128xbf16>
    %c11 = arith.constant 11 : index
    %c0_36 = arith.constant 0 : index
    %c0_37 = arith.constant 0 : index
    %68 = vector.load %arg2[%c11, %c0_36, %c0_37] : memref<16x128x128xbf16, #tpu.memory_space<vmem>>, vector<1x128x128xbf16>
    %69 = vector.shape_cast %68 : vector<1x128x128xbf16> to vector<128x128xbf16>
    %cst_38 = arith.constant dense<0.000000e+00> : vector<64x128xf32>
    %70 = tpu.matmul %67, %69, %cst_38 {dimension_numbers = #tpu.dot_dimension_numbers<[1], [0], [0], [1], [0, 0, 1, 1], [], []>} : vector<64x128xbf16>, vector<128x128xbf16>, vector<64x128xf32> -> vector<64x128xf32>
    %71 = arith.addf %64, %70 : vector<64x128xf32>
    %72 = vector.shape_cast %71 : vector<64x128xf32> to vector<8x8x128xf32>
    %c0_39 = arith.constant 0 : index
    %c0_40 = arith.constant 0 : index
    %c1_41 = arith.constant 1 : index
    %c0_42 = arith.constant 0 : index
    %c0_43 = arith.constant 0 : index
    %c0_44 = arith.constant 0 : index
    %73 = vector.load %arg3[%c0_39, %c0_40, %c1_41, %c0_42, %c0_43, %c0_44] : memref<1x2x2x8x8x128xf32, #tpu.memory_space<vmem>>, vector<1x1x1x8x8x128xf32>
    %74 = vector.shape_cast %73 : vector<1x1x1x8x8x128xf32> to vector<8x8x128xf32>
    %75 = vector.shape_cast %72 : vector<8x8x128xf32> to vector<1x1x1x8x8x128xf32>
    tpu.vector_store %arg3[%c0_39, %c0_40, %c1_41, %c0_42, %c0_43, %c0_44], %75 {strides = array<i32>} : memref<1x2x2x8x8x128xf32, #tpu.memory_space<vmem>>, vector<1x1x1x8x8x128xf32>,
    %cst_45 = arith.constant dense<0.000000e+00> : vector<128xf32>
    %76 = vector.multi_reduction <add>, %71, %cst_45 [0] : vector<64x128xf32> to vector<128xf32>
    %77 = vector.shape_cast %76 : vector<128xf32> to vector<1x128xf32>
    %78 = arith.addf %38, %77 : vector<1x128xf32>
    %79 = arith.mulf %71, %71 : vector<64x128xf32>
    %cst_46 = arith.constant dense<0.000000e+00> : vector<128xf32>
    %80 = vector.multi_reduction <add>, %79, %cst_46 [0] : vector<64x128xf32> to vector<128xf32>
    %81 = vector.shape_cast %80 : vector<128xf32> to vector<1x128xf32>
    %82 = arith.addf %42, %81 : vector<1x128xf32>
    %cst_47 = arith.constant 0.000000e+00 : f32
    %83 = vector.broadcast %cst_47 : f32 to vector<64x128xf32>
    %84 = vector.extract_strided_slice %0 {offsets = [0, 1, 0, 0], sizes = [1, 8, 8, 128], strides = [1, 1, 1, 1]} : vector<1x10x10x128xbf16> to vector<1x8x8x128xbf16>
    %85 = vector.shape_cast %84 : vector<1x8x8x128xbf16> to vector<8x8x128xbf16>
    %86 = vector.shape_cast %85 : vector<8x8x128xbf16> to vector<64x128xbf16>
    %c4 = arith.constant 4 : index
    %c0_48 = arith.constant 0 : index
    %c0_49 = arith.constant 0 : index
    %87 = vector.load %arg2[%c4, %c0_48, %c0_49] : memref<16x128x128xbf16, #tpu.memory_space<vmem>>, vector<1x128x128xbf16>
    %88 = vector.shape_cast %87 : vector<1x128x128xbf16> to vector<128x128xbf16>
    %cst_50 = arith.constant dense<0.000000e+00> : vector<64x128xf32>
    %89 = tpu.matmul %86, %88, %cst_50 {dimension_numbers = #tpu.dot_dimension_numbers<[1], [0], [0], [1], [0, 0, 1, 1], [], []>} : vector<64x128xbf16>, vector<128x128xbf16>, vector<64x128xf32> -> vector<64x128xf32>
    %90 = arith.addf %83, %89 : vector<64x128xf32>
    %91 = vector.extract_strided_slice %0 {offsets = [0, 1, 1, 0], sizes = [1, 8, 8, 128], strides = [1, 1, 1, 1]} : vector<1x10x10x128xbf16> to vector<1x8x8x128xbf16>
    %92 = vector.shape_cast %91 : vector<1x8x8x128xbf16> to vector<8x8x128xbf16>
    %93 = vector.shape_cast %92 : vector<8x8x128xbf16> to vector<64x128xbf16>
    %c6 = arith.constant 6 : index
    %c0_51 = arith.constant 0 : index
    %c0_52 = arith.constant 0 : index
    %94 = vector.load %arg2[%c6, %c0_51, %c0_52] : memref<16x128x128xbf16, #tpu.memory_space<vmem>>, vector<1x128x128xbf16>
    %95 = vector.shape_cast %94 : vector<1x128x128xbf16> to vector<128x128xbf16>
    %cst_53 = arith.constant dense<0.000000e+00> : vector<64x128xf32>
    %96 = tpu.matmul %93, %95, %cst_53 {dimension_numbers = #tpu.dot_dimension_numbers<[1], [0], [0], [1], [0, 0, 1, 1], [], []>} : vector<64x128xbf16>, vector<128x128xbf16>, vector<64x128xf32> -> vector<64x128xf32>
    %97 = arith.addf %90, %96 : vector<64x128xf32>
    %98 = vector.extract_strided_slice %0 {offsets = [0, 2, 0, 0], sizes = [1, 8, 8, 128], strides = [1, 1, 1, 1]} : vector<1x10x10x128xbf16> to vector<1x8x8x128xbf16>
    %99 = vector.shape_cast %98 : vector<1x8x8x128xbf16> to vector<8x8x128xbf16>
    %100 = vector.shape_cast %99 : vector<8x8x128xbf16> to vector<64x128xbf16>
    %c12 = arith.constant 12 : index
    %c0_54 = arith.constant 0 : index
    %c0_55 = arith.constant 0 : index
    %101 = vector.load %arg2[%c12, %c0_54, %c0_55] : memref<16x128x128xbf16, #tpu.memory_space<vmem>>, vector<1x128x128xbf16>
    %102 = vector.shape_cast %101 : vector<1x128x128xbf16> to vector<128x128xbf16>
    %cst_56 = arith.constant dense<0.000000e+00> : vector<64x128xf32>
    %103 = tpu.matmul %100, %102, %cst_56 {dimension_numbers = #tpu.dot_dimension_numbers<[1], [0], [0], [1], [0, 0, 1, 1], [], []>} : vector<64x128xbf16>, vector<128x128xbf16>, vector<64x128xf32> -> vector<64x128xf32>
    %104 = arith.addf %97, %103 : vector<64x128xf32>
    %105 = vector.extract_strided_slice %0 {offsets = [0, 2, 1, 0], sizes = [1, 8, 8, 128], strides = [1, 1, 1, 1]} : vector<1x10x10x128xbf16> to vector<1x8x8x128xbf16>
    %106 = vector.shape_cast %105 : vector<1x8x8x128xbf16> to vector<8x8x128xbf16>
    %107 = vector.shape_cast %106 : vector<8x8x128xbf16> to vector<64x128xbf16>
    %c14 = arith.constant 14 : index
    %c0_57 = arith.constant 0 : index
    %c0_58 = arith.constant 0 : index
    %108 = vector.load %arg2[%c14, %c0_57, %c0_58] : memref<16x128x128xbf16, #tpu.memory_space<vmem>>, vector<1x128x128xbf16>
    %109 = vector.shape_cast %108 : vector<1x128x128xbf16> to vector<128x128xbf16>
    %cst_59 = arith.constant dense<0.000000e+00> : vector<64x128xf32>
    %110 = tpu.matmul %107, %109, %cst_59 {dimension_numbers = #tpu.dot_dimension_numbers<[1], [0], [0], [1], [0, 0, 1, 1], [], []>} : vector<64x128xbf16>, vector<128x128xbf16>, vector<64x128xf32> -> vector<64x128xf32>
    %111 = arith.addf %104, %110 : vector<64x128xf32>
    %112 = vector.shape_cast %111 : vector<64x128xf32> to vector<8x8x128xf32>
    %c0_60 = arith.constant 0 : index
    %c1_61 = arith.constant 1 : index
    %c0_62 = arith.constant 0 : index
    %c0_63 = arith.constant 0 : index
    %c0_64 = arith.constant 0 : index
    %c0_65 = arith.constant 0 : index
    %113 = vector.load %arg3[%c0_60, %c1_61, %c0_62, %c0_63, %c0_64, %c0_65] : memref<1x2x2x8x8x128xf32, #tpu.memory_space<vmem>>, vector<1x1x1x8x8x128xf32>
    %114 = vector.shape_cast %113 : vector<1x1x1x8x8x128xf32> to vector<8x8x128xf32>
    %115 = vector.shape_cast %112 : vector<8x8x128xf32> to vector<1x1x1x8x8x128xf32>
    tpu.vector_store %arg3[%c0_60, %c1_61, %c0_62, %c0_63, %c0_64, %c0_65], %115 {strides = array<i32>} : memref<1x2x2x8x8x128xf32, #tpu.memory_space<vmem>>, vector<1x1x1x8x8x128xf32>,
    %cst_66 = arith.constant dense<0.000000e+00> : vector<128xf32>
    %116 = vector.multi_reduction <add>, %111, %cst_66 [0] : vector<64x128xf32> to vector<128xf32>
    %117 = vector.shape_cast %116 : vector<128xf32> to vector<1x128xf32>
    %118 = arith.addf %78, %117 : vector<1x128xf32>
    %119 = arith.mulf %111, %111 : vector<64x128xf32>
    %cst_67 = arith.constant dense<0.000000e+00> : vector<128xf32>
    %120 = vector.multi_reduction <add>, %119, %cst_67 [0] : vector<64x128xf32> to vector<128xf32>
    %121 = vector.shape_cast %120 : vector<128xf32> to vector<1x128xf32>
    %122 = arith.addf %82, %121 : vector<1x128xf32>
    %cst_68 = arith.constant 0.000000e+00 : f32
    %123 = vector.broadcast %cst_68 : f32 to vector<64x128xf32>
    %124 = vector.extract_strided_slice %0 {offsets = [0, 1, 1, 0], sizes = [1, 8, 8, 128], strides = [1, 1, 1, 1]} : vector<1x10x10x128xbf16> to vector<1x8x8x128xbf16>
    %125 = vector.shape_cast %124 : vector<1x8x8x128xbf16> to vector<8x8x128xbf16>
    %126 = vector.shape_cast %125 : vector<8x8x128xbf16> to vector<64x128xbf16>
    %c5 = arith.constant 5 : index
    %c0_69 = arith.constant 0 : index
    %c0_70 = arith.constant 0 : index
    %127 = vector.load %arg2[%c5, %c0_69, %c0_70] : memref<16x128x128xbf16, #tpu.memory_space<vmem>>, vector<1x128x128xbf16>
    %128 = vector.shape_cast %127 : vector<1x128x128xbf16> to vector<128x128xbf16>
    %cst_71 = arith.constant dense<0.000000e+00> : vector<64x128xf32>
    %129 = tpu.matmul %126, %128, %cst_71 {dimension_numbers = #tpu.dot_dimension_numbers<[1], [0], [0], [1], [0, 0, 1, 1], [], []>} : vector<64x128xbf16>, vector<128x128xbf16>, vector<64x128xf32> -> vector<64x128xf32>
    %130 = arith.addf %123, %129 : vector<64x128xf32>
    %131 = vector.extract_strided_slice %0 {offsets = [0, 1, 2, 0], sizes = [1, 8, 8, 128], strides = [1, 1, 1, 1]} : vector<1x10x10x128xbf16> to vector<1x8x8x128xbf16>
    %132 = vector.shape_cast %131 : vector<1x8x8x128xbf16> to vector<8x8x128xbf16>
    %133 = vector.shape_cast %132 : vector<8x8x128xbf16> to vector<64x128xbf16>
    %c7 = arith.constant 7 : index
    %c0_72 = arith.constant 0 : index
    %c0_73 = arith.constant 0 : index
    %134 = vector.load %arg2[%c7, %c0_72, %c0_73] : memref<16x128x128xbf16, #tpu.memory_space<vmem>>, vector<1x128x128xbf16>
    %135 = vector.shape_cast %134 : vector<1x128x128xbf16> to vector<128x128xbf16>
    %cst_74 = arith.constant dense<0.000000e+00> : vector<64x128xf32>
    %136 = tpu.matmul %133, %135, %cst_74 {dimension_numbers = #tpu.dot_dimension_numbers<[1], [0], [0], [1], [0, 0, 1, 1], [], []>} : vector<64x128xbf16>, vector<128x128xbf16>, vector<64x128xf32> -> vector<64x128xf32>
    %137 = arith.addf %130, %136 : vector<64x128xf32>
    %138 = vector.extract_strided_slice %0 {offsets = [0, 2, 1, 0], sizes = [1, 8, 8, 128], strides = [1, 1, 1, 1]} : vector<1x10x10x128xbf16> to vector<1x8x8x128xbf16>
    %139 = vector.shape_cast %138 : vector<1x8x8x128xbf16> to vector<8x8x128xbf16>
    %140 = vector.shape_cast %139 : vector<8x8x128xbf16> to vector<64x128xbf16>
    %c13 = arith.constant 13 : index
    %c0_75 = arith.constant 0 : index
    %c0_76 = arith.constant 0 : index
    %141 = vector.load %arg2[%c13, %c0_75, %c0_76] : memref<16x128x128xbf16, #tpu.memory_space<vmem>>, vector<1x128x128xbf16>
    %142 = vector.shape_cast %141 : vector<1x128x128xbf16> to vector<128x128xbf16>
    %cst_77 = arith.constant dense<0.000000e+00> : vector<64x128xf32>
    %143 = tpu.matmul %140, %142, %cst_77 {dimension_numbers = #tpu.dot_dimension_numbers<[1], [0], [0], [1], [0, 0, 1, 1], [], []>} : vector<64x128xbf16>, vector<128x128xbf16>, vector<64x128xf32> -> vector<64x128xf32>
    %144 = arith.addf %137, %143 : vector<64x128xf32>
    %145 = vector.extract_strided_slice %0 {offsets = [0, 2, 2, 0], sizes = [1, 8, 8, 128], strides = [1, 1, 1, 1]} : vector<1x10x10x128xbf16> to vector<1x8x8x128xbf16>
    %146 = vector.shape_cast %145 : vector<1x8x8x128xbf16> to vector<8x8x128xbf16>
    %147 = vector.shape_cast %146 : vector<8x8x128xbf16> to vector<64x128xbf16>
    %c15 = arith.constant 15 : index
    %c0_78 = arith.constant 0 : index
    %c0_79 = arith.constant 0 : index
    %148 = vector.load %arg2[%c15, %c0_78, %c0_79] : memref<16x128x128xbf16, #tpu.memory_space<vmem>>, vector<1x128x128xbf16>
    %149 = vector.shape_cast %148 : vector<1x128x128xbf16> to vector<128x128xbf16>
    %cst_80 = arith.constant dense<0.000000e+00> : vector<64x128xf32>
    %150 = tpu.matmul %147, %149, %cst_80 {dimension_numbers = #tpu.dot_dimension_numbers<[1], [0], [0], [1], [0, 0, 1, 1], [], []>} : vector<64x128xbf16>, vector<128x128xbf16>, vector<64x128xf32> -> vector<64x128xf32>
    %151 = arith.addf %144, %150 : vector<64x128xf32>
    %152 = vector.shape_cast %151 : vector<64x128xf32> to vector<8x8x128xf32>
    %c0_81 = arith.constant 0 : index
    %c1_82 = arith.constant 1 : index
    %c1_83 = arith.constant 1 : index
    %c0_84 = arith.constant 0 : index
    %c0_85 = arith.constant 0 : index
    %c0_86 = arith.constant 0 : index
    %153 = vector.load %arg3[%c0_81, %c1_82, %c1_83, %c0_84, %c0_85, %c0_86] : memref<1x2x2x8x8x128xf32, #tpu.memory_space<vmem>>, vector<1x1x1x8x8x128xf32>
    %154 = vector.shape_cast %153 : vector<1x1x1x8x8x128xf32> to vector<8x8x128xf32>
    %155 = vector.shape_cast %152 : vector<8x8x128xf32> to vector<1x1x1x8x8x128xf32>
    tpu.vector_store %arg3[%c0_81, %c1_82, %c1_83, %c0_84, %c0_85, %c0_86], %155 {strides = array<i32>} : memref<1x2x2x8x8x128xf32, #tpu.memory_space<vmem>>, vector<1x1x1x8x8x128xf32>,
    %cst_87 = arith.constant dense<0.000000e+00> : vector<128xf32>
    %156 = vector.multi_reduction <add>, %151, %cst_87 [0] : vector<64x128xf32> to vector<128xf32>
    %157 = vector.shape_cast %156 : vector<128xf32> to vector<1x128xf32>
    %158 = arith.addf %118, %157 : vector<1x128xf32>
    %159 = arith.mulf %151, %151 : vector<64x128xf32>
    %cst_88 = arith.constant dense<0.000000e+00> : vector<128xf32>
    %160 = vector.multi_reduction <add>, %159, %cst_88 [0] : vector<64x128xf32> to vector<128xf32>
    %161 = vector.shape_cast %160 : vector<128xf32> to vector<1x128xf32>
    %162 = arith.addf %122, %161 : vector<1x128xf32>
    %c0_89 = arith.constant 0 : index
    %c0_90 = arith.constant 0 : index
    %c0_91 = arith.constant 0 : index
    %163 = vector.load %arg4[%c0_89, %c0_90, %c0_91] : memref<1x2x128xf32, #tpu.memory_space<vmem>>, vector<1x1x128xf32>
    %164 = vector.shape_cast %163 : vector<1x1x128xf32> to vector<1x128xf32>
    %165 = vector.shape_cast %158 : vector<1x128xf32> to vector<1x1x128xf32>
    tpu.vector_store %arg4[%c0_89, %c0_90, %c0_91], %165 {strides = array<i32>} : memref<1x2x128xf32, #tpu.memory_space<vmem>>, vector<1x1x128xf32>,
    %c0_92 = arith.constant 0 : index
    %c1_93 = arith.constant 1 : index
    %c0_94 = arith.constant 0 : index
    %166 = vector.load %arg4[%c0_92, %c1_93, %c0_94] : memref<1x2x128xf32, #tpu.memory_space<vmem>>, vector<1x1x128xf32>
    %167 = vector.shape_cast %166 : vector<1x1x128xf32> to vector<1x128xf32>
    %168 = vector.shape_cast %162 : vector<1x128xf32> to vector<1x1x128xf32>
    tpu.vector_store %arg4[%c0_92, %c1_93, %c0_94], %168 {strides = array<i32>} : memref<1x2x128xf32, #tpu.memory_space<vmem>>, vector<1x1x128xf32>,
    return
  }
  func.func @transform_0(%arg0: i32) -> (i32, i32, i32, i32) {
    %c0_i32 = arith.constant 0 : i32
    %c0_i32_0 = arith.constant 0 : i32
    %c0_i32_1 = arith.constant 0 : i32
    %c0_i32_2 = arith.constant 0 : i32
    return %arg0, %c0_i32, %c0_i32_0, %c0_i32_1 : i32, i32, i32, i32
  }
  func.func @transform_1(%arg0: i32) -> (i32, i32, i32) {
    %c0_i32 = arith.constant 0 : i32
    %c0_i32_0 = arith.constant 0 : i32
    %c0_i32_1 = arith.constant 0 : i32
    %c0_i32_2 = arith.constant 0 : i32
    return %c0_i32, %c0_i32_0, %c0_i32_1 : i32, i32, i32
  }
  func.func @transform_2(%arg0: i32) -> (i32, i32, i32, i32, i32, i32) {
    %c0_i32 = arith.constant 0 : i32
    %c0_i32_0 = arith.constant 0 : i32
    %c0_i32_1 = arith.constant 0 : i32
    %c0_i32_2 = arith.constant 0 : i32
    %c0_i32_3 = arith.constant 0 : i32
    %c0_i32_4 = arith.constant 0 : i32
    return %arg0, %c0_i32, %c0_i32_0, %c0_i32_1, %c0_i32_2, %c0_i32_3 : i32, i32, i32, i32, i32, i32
  }
  func.func @transform_3(%arg0: i32) -> (i32, i32, i32) {
    %c0_i32 = arith.constant 0 : i32
    %c0_i32_0 = arith.constant 0 : i32
    %c0_i32_1 = arith.constant 0 : i32
    return %arg0, %c0_i32, %c0_i32_0 : i32, i32, i32
  }
}

module attributes {stable_mosaic.version = 11 : i64} {
  func.func @_bn_concat_kernel(%arg0: i32, %arg1: memref<1x2x2x8x8x4xf32, #tpu.memory_space<vmem>>, %arg2: memref<1x2x2x8x8x128xf32, #tpu.memory_space<vmem>>, %arg3: memref<2x2x128xf32, #tpu.memory_space<vmem>>, %arg4: memref<1x128xf32, #tpu.memory_space<vmem>>, %arg5: memref<1x128xf32, #tpu.memory_space<vmem>>, %arg6: memref<1x2x2x8x8x8xf32, #tpu.memory_space<vmem>>) attributes {dimension_semantics = [#tpu.dimension_semantics<parallel>], iteration_bounds = array<i64: 2>, scalar_prefetch = 0 : i64, scratch_operands = 0 : i64, tpu.core_type = #tpu.core_type<tc>, window_params = [{transform_indices = @transform_0, window_bounds = array<i64: 1, 2, 2, 8, 8, 4>}, {transform_indices = @transform_1, window_bounds = array<i64: 1, 2, 2, 8, 8, 128>}, {pipeline_mode = #tpu.pipeline_mode<synchronous>, transform_indices = @transform_2, window_bounds = array<i64: 2, 2, 128>}, {pipeline_mode = #tpu.pipeline_mode<synchronous>, transform_indices = @transform_3, window_bounds = array<i64: 1, 128>}, {pipeline_mode = #tpu.pipeline_mode<synchronous>, transform_indices = @transform_4, window_bounds = array<i64: 1, 128>}, {transform_indices = @transform_5, window_bounds = array<i64: 1, 2, 2, 8, 8, 8>}]} {
    %c0 = arith.constant 0 : index
    %c0_0 = arith.constant 0 : index
    %c0_1 = arith.constant 0 : index
    %0 = vector.load %arg3[%c0, %c0_0, %c0_1] : memref<2x2x128xf32, #tpu.memory_space<vmem>>, vector<2x2x128xf32>
    %cst = arith.constant dense<0.000000e+00> : vector<2x128xf32>
    %1 = vector.multi_reduction <add>, %0, %cst [0] : vector<2x2x128xf32> to vector<2x128xf32>
    %2 = vector.extract_strided_slice %1 {offsets = [0, 0], sizes = [1, 128], strides = [1, 1]} : vector<2x128xf32> to vector<1x128xf32>
    %cst_2 = arith.constant 0.001953125 : f32
    %3 = vector.broadcast %cst_2 : f32 to vector<1x128xf32>
    %4 = arith.mulf %2, %3 : vector<1x128xf32>
    %5 = vector.extract_strided_slice %1 {offsets = [1, 0], sizes = [1, 128], strides = [1, 1]} : vector<2x128xf32> to vector<1x128xf32>
    %cst_3 = arith.constant 0.001953125 : f32
    %6 = vector.broadcast %cst_3 : f32 to vector<1x128xf32>
    %7 = arith.mulf %5, %6 : vector<1x128xf32>
    %8 = arith.mulf %4, %4 : vector<1x128xf32>
    %9 = arith.subf %7, %8 : vector<1x128xf32>
    %cst_4 = arith.constant 0.000000e+00 : f32
    %10 = vector.broadcast %cst_4 : f32 to vector<1x128xf32>
    %11 = arith.maximumf %9, %10 : vector<1x128xf32>
    %c0_5 = arith.constant 0 : index
    %c0_6 = arith.constant 0 : index
    %12 = vector.load %arg4[%c0_5, %c0_6] : memref<1x128xf32, #tpu.memory_space<vmem>>, vector<1x128xf32>
    %cst_7 = arith.constant 9.99999974E-6 : f32
    %13 = vector.broadcast %cst_7 : f32 to vector<1x128xf32>
    %14 = arith.addf %11, %13 : vector<1x128xf32>
    %15 = math.rsqrt %14 : vector<1x128xf32>
    %16 = arith.mulf %12, %15 : vector<1x128xf32>
    %c0_8 = arith.constant 0 : index
    %c0_9 = arith.constant 0 : index
    %17 = vector.load %arg5[%c0_8, %c0_9] : memref<1x128xf32, #tpu.memory_space<vmem>>, vector<1x128xf32>
    %18 = arith.mulf %4, %16 : vector<1x128xf32>
    %19 = arith.subf %17, %18 : vector<1x128xf32>
    %c0_10 = arith.constant 0 : index
    %c0_11 = arith.constant 0 : index
    %c0_12 = arith.constant 0 : index
    %c0_13 = arith.constant 0 : index
    %c0_14 = arith.constant 0 : index
    %c0_15 = arith.constant 0 : index
    %20 = vector.load %arg1[%c0_10, %c0_11, %c0_12, %c0_13, %c0_14, %c0_15] : memref<1x2x2x8x8x4xf32, #tpu.memory_space<vmem>>, vector<1x2x2x8x8x4xf32>
    %21 = vector.shape_cast %20 : vector<1x2x2x8x8x4xf32> to vector<2x2x8x8x4xf32>
    %c0_16 = arith.constant 0 : index
    %c0_17 = arith.constant 0 : index
    %c0_18 = arith.constant 0 : index
    %c0_19 = arith.constant 0 : index
    %c0_20 = arith.constant 0 : index
    %c0_21 = arith.constant 0 : index
    %22 = vector.load %arg6[%c0_16, %c0_17, %c0_18, %c0_19, %c0_20, %c0_21] : memref<1x2x2x8x8x8xf32, #tpu.memory_space<vmem>>, vector<1x2x2x8x8x4xf32>
    %23 = vector.shape_cast %22 : vector<1x2x2x8x8x4xf32> to vector<2x2x8x8x4xf32>
    %24 = vector.shape_cast %21 : vector<2x2x8x8x4xf32> to vector<1x2x2x8x8x4xf32>
    tpu.vector_store %arg6[%c0_16, %c0_17, %c0_18, %c0_19, %c0_20, %c0_21], %24 {strides = array<i32>} : memref<1x2x2x8x8x8xf32, #tpu.memory_space<vmem>>, vector<1x2x2x8x8x4xf32>,
    %c0_22 = arith.constant 0 : index
    %c0_23 = arith.constant 0 : index
    %c0_24 = arith.constant 0 : index
    %c0_25 = arith.constant 0 : index
    %c0_26 = arith.constant 0 : index
    %c0_27 = arith.constant 0 : index
    %25 = vector.load %arg2[%c0_22, %c0_23, %c0_24, %c0_25, %c0_26, %c0_27] : memref<1x2x2x8x8x128xf32, #tpu.memory_space<vmem>>, vector<1x2x2x8x8x4xf32>
    %26 = vector.shape_cast %25 : vector<1x2x2x8x8x4xf32> to vector<2x2x8x8x4xf32>
    %27 = vector.extract_strided_slice %16 {offsets = [0, 0], sizes = [1, 4], strides = [1, 1]} : vector<1x128xf32> to vector<1x4xf32>
    %28 = vector.shape_cast %27 : vector<1x4xf32> to vector<4xf32>
    %29 = vector.shape_cast %28 : vector<4xf32> to vector<1x1x1x1x4xf32>
    %30 = vector.broadcast %29 : vector<1x1x1x1x4xf32> to vector<2x2x8x8x4xf32>
    %31 = arith.mulf %26, %30 : vector<2x2x8x8x4xf32>
    %32 = vector.extract_strided_slice %19 {offsets = [0, 0], sizes = [1, 4], strides = [1, 1]} : vector<1x128xf32> to vector<1x4xf32>
    %33 = vector.shape_cast %32 : vector<1x4xf32> to vector<4xf32>
    %34 = vector.shape_cast %33 : vector<4xf32> to vector<1x1x1x1x4xf32>
    %35 = vector.broadcast %34 : vector<1x1x1x1x4xf32> to vector<2x2x8x8x4xf32>
    %36 = arith.addf %31, %35 : vector<2x2x8x8x4xf32>
    %c0_28 = arith.constant 0 : index
    %c0_29 = arith.constant 0 : index
    %c0_30 = arith.constant 0 : index
    %c0_31 = arith.constant 0 : index
    %c0_32 = arith.constant 0 : index
    %c4 = arith.constant 4 : index
    %37 = vector.load %arg6[%c0_28, %c0_29, %c0_30, %c0_31, %c0_32, %c4] : memref<1x2x2x8x8x8xf32, #tpu.memory_space<vmem>>, vector<1x2x2x8x8x4xf32>
    %38 = vector.shape_cast %37 : vector<1x2x2x8x8x4xf32> to vector<2x2x8x8x4xf32>
    %39 = vector.shape_cast %36 : vector<2x2x8x8x4xf32> to vector<1x2x2x8x8x4xf32>
    tpu.vector_store %arg6[%c0_28, %c0_29, %c0_30, %c0_31, %c0_32, %c4], %39 {strides = array<i32>} : memref<1x2x2x8x8x8xf32, #tpu.memory_space<vmem>>, vector<1x2x2x8x8x4xf32>,
    return
  }
  func.func @transform_0(%arg0: i32) -> (i32, i32, i32, i32, i32, i32) {
    %c0_i32 = arith.constant 0 : i32
    %c0_i32_0 = arith.constant 0 : i32
    %c0_i32_1 = arith.constant 0 : i32
    %c0_i32_2 = arith.constant 0 : i32
    %c0_i32_3 = arith.constant 0 : i32
    %c0_i32_4 = arith.constant 0 : i32
    return %arg0, %c0_i32, %c0_i32_0, %c0_i32_1, %c0_i32_2, %c0_i32_3 : i32, i32, i32, i32, i32, i32
  }
  func.func @transform_1(%arg0: i32) -> (i32, i32, i32, i32, i32, i32) {
    %c0_i32 = arith.constant 0 : i32
    %c0_i32_0 = arith.constant 0 : i32
    %c0_i32_1 = arith.constant 0 : i32
    %c0_i32_2 = arith.constant 0 : i32
    %c0_i32_3 = arith.constant 0 : i32
    %c0_i32_4 = arith.constant 0 : i32
    return %arg0, %c0_i32, %c0_i32_0, %c0_i32_1, %c0_i32_2, %c0_i32_3 : i32, i32, i32, i32, i32, i32
  }
  func.func @transform_2(%arg0: i32) -> (i32, i32, i32) {
    %c0_i32 = arith.constant 0 : i32
    %c0_i32_0 = arith.constant 0 : i32
    %c0_i32_1 = arith.constant 0 : i32
    %c0_i32_2 = arith.constant 0 : i32
    return %c0_i32, %c0_i32_0, %c0_i32_1 : i32, i32, i32
  }
  func.func @transform_3(%arg0: i32) -> (i32, i32) {
    %c0_i32 = arith.constant 0 : i32
    %c0_i32_0 = arith.constant 0 : i32
    %c0_i32_1 = arith.constant 0 : i32
    return %c0_i32, %c0_i32_0 : i32, i32
  }
  func.func @transform_4(%arg0: i32) -> (i32, i32) {
    %c0_i32 = arith.constant 0 : i32
    %c0_i32_0 = arith.constant 0 : i32
    %c0_i32_1 = arith.constant 0 : i32
    return %c0_i32, %c0_i32_0 : i32, i32
  }
  func.func @transform_5(%arg0: i32) -> (i32, i32, i32, i32, i32, i32) {
    %c0_i32 = arith.constant 0 : i32
    %c0_i32_0 = arith.constant 0 : i32
    %c0_i32_1 = arith.constant 0 : i32
    %c0_i32_2 = arith.constant 0 : i32
    %c0_i32_3 = arith.constant 0 : i32
    %c0_i32_4 = arith.constant 0 : i32
    return %arg0, %c0_i32, %c0_i32_0, %c0_i32_1, %c0_i32_2, %c0_i32_3 : i32, i32, i32, i32, i32, i32
  }
}

</mosaic_0001>

<bundles_post_ra>
// kernel: unet_innermost_forward.5
= control target key start
LH: loop header
LB: loop body
LE: loop exit
PB: predicated region body
PF: predicated region fallthrough
CT: control target
= control target key end

     0   :  { %s751_s18 = smov 0   ;;  %s1081_s0 = inlined_call_operand.vmem [shape: f32[2,2,2,8,8,4], index: 0, kind: input, shape index: {}]   ;;  %s1082_s1 = inlined_call_operand.vmem [shape: f32[2,2,2,8,8,128], index: 1, kind: input, shape index: {}]   ;;  %s1083_s2 = inlined_call_operand.vmem [shape: f32[2,2,128], index: 2, kind: input, shape index: {}]   ;;  %s1084_s3 = inlined_call_operand.vmem [shape: f32[1,128], index: 3, kind: input, shape index: {}]   ;;  %s1085_s4 = inlined_call_operand.vmem [shape: f32[1,128], index: 4, kind: input, shape index: {}]   ;;  %s1086_s5 = inlined_call_operand.vmem [shape: f32[2,2,2,8,8,8], index: 5, kind: output, shape index: {}]  }
   0x1 LB: > { %s683_s19 = sadd.s32 4294967295, %s717_s18   ;;  %p687_p0 = scmp.ge.s32.totalorder %s717_s18, 1  ;;  %s717_s18 = sphi %s751_s18, %s15_s18  }
   0x2   : > { %p197_p1 = scmp.lt.s32.totalorder %s717_s18, 3 }
   0x4   : > { %p198_p2 = pnand %p687_p0, %p197_p1 }
   0x5   : > { %v245_v0 = vld [vmem:[%s1083_s2] sm:$0x3] (!%p198_p2)  ;;  %v246_v1 = vld [vmem:[%s1083_s2 + $0x2] sm:$0x3] (!%p198_p2)  ;;  %vm247_vm0 = vcmask (!%p198_p2), 1041408   ;;  %v265_v13 = vlaneseq (!%p198_p2)  ;;  %p230_p3 = scmp.lt.s32.totalorder (!%p198_p2), %s683_s19, 1 }
   0x6   : > { %201 = sbr.rel (%p198_p2) target bundleno = 224 (0xe0), region = 40  ;;  %v248_v2 = vsel (!%p198_p2), %vm247_vm0, %v245_v0, 0.0  ;;  %v249_v3 = vsel (!%p198_p2), %vm247_vm0, %v246_v1, 0.0  ;;  %v719_v11 = vmov (!%p198_p2), 1966171168   ;;  %vm314_vm1 = vcmask (!%p198_p2), 31744  }
   0x7   : > { %v250_v4 = vadd.f32 (!%p198_p2), %v249_v3, %v248_v2  ;;  %v263_v12 = vunpack.c.l.s4 (!%p198_p2), %v719_v11  ;;  %v266_v15 = vshrl.u32 (!%p198_p2), %v265_v13, 7  ;;  %v258_v22 = vld [vmem:[%s1084_s3] sm:$0x1] (!%p198_p2)  ;;  %s720_s13 = smov (!%p198_p2), 4   ;;  %vm583_vm2 = vcmask (!%p198_p2), 64544  }
   0x8   : > { %v279_v28 = vld [vmem:[%s1085_s4] sm:$0x1] (!%p198_p2) }
   0x9   : > { %v251_v5 = vmul.f32 (!%p198_p2), 0.001953125, %v250_v4  ;;  %v264_v14 = vunpack.c.0.s8 (!%p198_p2), %v263_v12  ;;  %v382_v24 = vsub.s32 (!%p198_p2), 0, %v266_v15 }
   0xb   : > { %v252_v6 = vmul.f32 (!%p198_p2), %v251_v5, %v251_v5  ;;  %v267_v16 = vsub.s32 (!%p198_p2), %v264_v14, %v266_v15 }
   0xd   : > { %v254_v7 = vrot.slane %v252_v6, 7  ;;  %s1088_s19 = smov (!%p230_p3, %s683_s19), 1 }
   0xe   : > { %s696_s24 = sshll.u32 %s1088_s19, 8 }
   0xf   : > { %v256_v8 = vsub.f32 %v251_v5, %v254_v7  ;;  %s768_s27 = scalar_lea.vmem %s1081_s0, %s696_s24  ;;  %s773_s30 = scalar_lea.vmem %s1086_s5, %s696_s24 }
  0x10   : > { %v284_v19 = vld [vmem:[%s768_s27 + $0x10] sm:$0xff]  ;;  %v282_v20 = vld [vmem:[%s768_s27] sm:$0xff]  ;;  %s787_s10 = scalar_lea.vmem %s1082_s1, %s696_s24  ;;  %v285_v25 = vld [vmem:[%s768_s27 + $0x18] sm:$0xff] }
  0x11   : > { %v257_v9 = vmax.f32 %v256_v8, 0.0  ;;  %317 = vst.msk [vmem:[%s773_s30 + $0x10] sm:$0xff] %vm314_vm1, %v284_v19  ;;  %315 = vst.msk [vmem:[%s773_s30] sm:$0xff] %vm314_vm1, %v282_v20  ;;  %v283_v26 = vld [vmem:[%s768_s27 + $0x8] sm:$0xff]  ;;  %v349_v29 = vld [vmem:[%s787_s10 + $0x10] sm:$0xff] }
  0x12   : > { %318 = vst.msk [vmem:[%s773_s30 + $0x18] sm:$0xff] %vm314_vm1, %v285_v25  ;;  %316 = vst.msk [vmem:[%s773_s30 + $0x8] sm:$0xff] %vm314_vm1, %v283_v26  ;;  %v347_v30 = vld [vmem:[%s787_s10] sm:$0xff]  ;;  %v350_v33 = vld [vmem:[%s787_s10 + $0x18] sm:$0xff] }
  0x13   : > { %v259_v10 = vadd.f32 1e-05, %v257_v9  ;;  %v348_v34 = vld [vmem:[%s787_s10 + $0x8] sm:$0xff]  ;;  %v286_v36 = vld [vmem:[%s768_s27 + $0x20] sm:$0xff]  ;;  %v289_v45 = vld [vmem:[%s768_s27 + $0x38] sm:$0xff] }
  0x14   : > { %v287_v35 = vld [vmem:[%s768_s27 + $0x28] sm:$0xff]  ;;  %319 = vst.msk [vmem:[%s773_s30 + $0x20] sm:$0xff] %vm314_vm1, %v286_v36  ;;  %v351_v44 = vld [vmem:[%s787_s10 + $0x20] sm:$0xff]  ;;  %v288_v46 = vld [vmem:[%s768_s27 + $0x30] sm:$0xff] }
  0x15   : > { %709 = vrsqrt.f32 %v259_v10  ;;  %320 = vst.msk [vmem:[%s773_s30 + $0x28] sm:$0xff] %vm314_vm1, %v287_v35  ;;  %v352_v43 = vld [vmem:[%s787_s10 + $0x28] sm:$0xff]  ;;  %322 = vst.msk [vmem:[%s773_s30 + $0x38] sm:$0xff] %vm314_vm1, %v289_v45  ;;  %v354_v53 = vld [vmem:[%s787_s10 + $0x38] sm:$0xff] }
  0x16   : > { %321 = vst.msk [vmem:[%s773_s30 + $0x30] sm:$0xff] %vm314_vm1, %v288_v46  ;;  %v353_v54 = vld [vmem:[%s787_s10 + $0x30] sm:$0xff]  ;;  %v291_v55 = vld [vmem:[%s768_s27 + $0x48] sm:$0xff]  ;;  %v290_v56 = vld [vmem:[%s768_s27 + $0x40] sm:$0xff] }
  0x17   : > { %324 = vst.msk [vmem:[%s773_s30 + $0x48] sm:$0xff] %vm314_vm1, %v291_v55  ;;  %323 = vst.msk [vmem:[%s773_s30 + $0x40] sm:$0xff] %vm314_vm1, %v290_v56  ;;  %v356_v61 = vld [vmem:[%s787_s10 + $0x48] sm:$0xff]  ;;  %v355_v62 = vld [vmem:[%s787_s10 + $0x40] sm:$0xff] }
  0x18   : > { %v293_v63 = vld [vmem:[%s768_s27 + $0x58] sm:$0xff]  ;;  %v292_v0 = vld [vmem:[%s768_s27 + $0x50] sm:$0xff]  ;;  %v295_v7 = vld [vmem:[%s768_s27 + $0x68] sm:$0xff] }
  0x19   : > { %326 = vst.msk [vmem:[%s773_s30 + $0x58] sm:$0xff] %vm314_vm1, %v293_v63  ;;  %325 = vst.msk [vmem:[%s773_s30 + $0x50] sm:$0xff] %vm314_vm1, %v292_v0  ;;  %v357_v6 = vld [vmem:[%s787_s10 + $0x50] sm:$0xff]  ;;  %v294_v8 = vld [vmem:[%s768_s27 + $0x60] sm:$0xff] }
  0x1a   : > { %328 = vst.msk [vmem:[%s773_s30 + $0x68] sm:$0xff] %vm314_vm1, %v295_v7  ;;  %327 = vst.msk [vmem:[%s773_s30 + $0x60] sm:$0xff] %vm314_vm1, %v294_v8  ;;  %v360_v13 = vld [vmem:[%s787_s10 + $0x68] sm:$0xff]  ;;  %v359_v14 = vld [vmem:[%s787_s10 + $0x60] sm:$0xff] }
  0x1b   : > { %v297_v15 = vld [vmem:[%s768_s27 + $0x78] sm:$0xff]  ;;  %v369_v56 = vld [vmem:[%s787_s10 + $0xb0] sm:$0xff]  ;;  %v372_v63 = vld [vmem:[%s787_s10 + $0xc8] sm:$0xff] }
  0x1c   : > { %330 = vst.msk [vmem:[%s773_s30 + $0x78] sm:$0xff] %vm314_vm1, %v297_v15  ;;  %v370_v55 = vld [vmem:[%s787_s10 + $0xb8] sm:$0xff]  ;;  %v371_v0 = vld [vmem:[%s787_s10 + $0xc0] sm:$0xff]  ;;  %v373_v8 = vld [vmem:[%s787_s10 + $0xd0] sm:$0xff] }
  0x1d   : > { %v374_v7 = vld [vmem:[%s787_s10 + $0xd8] sm:$0xff]  ;;  %v376_v15 = vld [vmem:[%s787_s10 + $0xe8] sm:$0xff] }
  0x1f   : > { %v710_v17 = vpop.eup %709 }
  0x20   : > { %v268_v18 = vrot.slane %v710_v17, %v267_v16 }
  0x22   : > { %v269_v21 = vcombine.high %v268_v18, %v268_v18 }
  0x24   : > { %v276_v23 = vrot.slane %v269_v21, %v267_v16  ;;  %v296_v16 = vld [vmem:[%s768_s27 + $0x70] sm:$0xff]  ;;  %v362_v21 = vld [vmem:[%s787_s10 + $0x78] sm:$0xff] }
  0x25   : > { %329 = vst.msk [vmem:[%s773_s30 + $0x70] sm:$0xff] %vm314_vm1, %v296_v16  ;;  %v375_v16 = vld [vmem:[%s787_s10 + $0xe0] sm:$0xff] }
  0x26   : > { %v278_v27 = vmul.f32 %v276_v23, %v258_v22  ;;  %v361_v22 = vld [vmem:[%s787_s10 + $0x70] sm:$0xff]  ;;  %v299_v23 = vld [vmem:[%s768_s27 + $0x88] sm:$0xff] }
  0x27   : > { %332 = vst.msk [vmem:[%s773_s30 + $0x88] sm:$0xff] %vm314_vm1, %v299_v23  ;;  %v378_v23 = vld [vmem:[%s787_s10 + $0xf8] sm:$0xff] }
  0x28   : > { %v280_v31 = vmul.f32 %v278_v27, %v251_v5  ;;  %v800_v32 = vrot.slane %v278_v27, %v382_v24  ;;  %v358_v5 = vld [vmem:[%s787_s10 + $0x58] sm:$0xff] }
  0x2a   : > { %v281_v37 = vsub.f32 %v279_v28, %v280_v31  ;;  %v387_v38 = vmul.f32 %v800_v32, %v349_v29  ;;  %v385_v39 = vmul.f32 %v800_v32, %v347_v30  ;;  %v388_v41 = vmul.f32 %v800_v32, %v350_v33  ;;  %v364_v29 = vld [vmem:[%s787_s10 + $0x88] sm:$0xff]  ;;  %v363_v30 = vld [vmem:[%s787_s10 + $0x80] sm:$0xff]  ;;  %v301_v31 = vld [vmem:[%s768_s27 + $0x98] sm:$0xff] }
  0x2b   : > { %v386_v42 = vmul.f32 %v800_v32, %v348_v34  ;;  %v390_v49 = vmul.f32 %v800_v32, %v352_v43  ;;  %v389_v52 = vmul.f32 %v800_v32, %v351_v44  ;;  %v392_v57 = vmul.f32 %v800_v32, %v354_v53  ;;  %v300_v33 = vld [vmem:[%s768_s27 + $0x90] sm:$0xff]  ;;  %334 = vst.msk [vmem:[%s773_s30 + $0x98] sm:$0xff] %vm314_vm1, %v301_v31 }
  0x2c   : > { %v812_v40 = vrot.slane %v281_v37, %v382_v24  ;;  %v391_v60 = vmul.f32 %v800_v32, %v353_v54  ;;  %v394_v1 = vmul.f32 %v800_v32, %v356_v61  ;;  %v393_v4 = vmul.f32 %v800_v32, %v355_v62  ;;  %v298_v24 = vld [vmem:[%s768_s27 + $0x80] sm:$0xff]  ;;  %333 = vst.msk [vmem:[%s773_s30 + $0x90] sm:$0xff] %vm314_vm1, %v300_v33 }
  0x2d   : > { %v396_v9 = vmul.f32 %v800_v32, %v358_v5  ;;  %v395_v12 = vmul.f32 %v800_v32, %v357_v6  ;;  %v398_v17 = vmul.f32 %v800_v32, %v360_v13  ;;  %v397_v20 = vmul.f32 %v800_v32, %v359_v14  ;;  %331 = vst.msk [vmem:[%s773_s30 + $0x80] sm:$0xff] %vm314_vm1, %v298_v24  ;;  %v377_v24 = vld [vmem:[%s787_s10 + $0xf0] sm:$0xff] }
  0x2e   : > { %v425_v47 = vadd.f32 %v812_v40, %v387_v38  ;;  %v423_v48 = vadd.f32 %v812_v40, %v385_v39  ;;  %v426_v50 = vadd.f32 %v812_v40, %v388_v41  ;;  %v424_v51 = vadd.f32 %v812_v40, %v386_v42  ;;  %v366_v38 = vld [vmem:[%s787_s10 + $0x98] sm:$0xff]  ;;  %v365_v39 = vld [vmem:[%s787_s10 + $0x90] sm:$0xff]  ;;  %v303_v41 = vld [vmem:[%s768_s27 + $0xa8] sm:$0xff] }
  0x2f   : > { %v428_v58 = vadd.f32 %v812_v40, %v390_v49  ;;  %v427_v59 = vadd.f32 %v812_v40, %v389_v52  ;;  %v430_v2 = vadd.f32 %v812_v40, %v392_v57  ;;  %v429_v3 = vadd.f32 %v812_v40, %v391_v60  ;;  %v302_v42 = vld [vmem:[%s768_s27 + $0xa0] sm:$0xff]  ;;  %336 = vst.msk [vmem:[%s773_s30 + $0xa8] sm:$0xff] %vm314_vm1, %v303_v41  ;;  %v305_v49 = vld [vmem:[%s768_s27 + $0xb8] sm:$0xff]  ;;  %v307_v57 = vld [vmem:[%s768_s27 + $0xc8] sm:$0xff] }
  0x30   : > { %491 = vrot.lane.b32.xlu1 %v425_v47, %s720_s13  ;;  %487 = vrot.lane.b32.xlu0 %v423_v48, %s720_s13  ;;  %v432_v10 = vadd.f32 %v812_v40, %v394_v1  ;;  %v431_v11 = vadd.f32 %v812_v40, %v393_v4  ;;  %v434_v18 = vadd.f32 %v812_v40, %v396_v9  ;;  %v368_v47 = vld [vmem:[%s787_s10 + $0xa8] sm:$0xff]  ;;  %v367_v48 = vld [vmem:[%s787_s10 + $0xa0] sm:$0xff] }
  0x31   : > { %v433_v19 = vadd.f32 %v812_v40, %v395_v12  ;;  %v436_v25 = vadd.f32 %v812_v40, %v398_v17  ;;  %v435_v26 = vadd.f32 %v812_v40, %v397_v20  ;;  %v400_v27 = vmul.f32 %v800_v32, %v362_v21  ;;  %335 = vst.msk [vmem:[%s773_s30 + $0xa0] sm:$0xff] %vm314_vm1, %v302_v42  ;;  %v309_v1 = vld [vmem:[%s768_s27 + $0xd8] sm:$0xff]  ;;  %v311_v9 = vld [vmem:[%s768_s27 + $0xe8] sm:$0xff] }
  0x32   : > { %v399_v28 = vmul.f32 %v800_v32, %v361_v22  ;;  %v402_v34 = vmul.f32 %v800_v32, %v364_v29  ;;  %v401_v37 = vmul.f32 %v800_v32, %v363_v30  ;;  %v404_v43 = vmul.f32 %v800_v32, %v366_v38  ;;  %338 = vst.msk [vmem:[%s773_s30 + $0xb8] sm:$0xff] %vm314_vm1, %v305_v49  ;;  %v313_v17 = vld [vmem:[%s768_s27 + $0xf8] sm:$0xff] }
  0x33   : > { %v438_v35 = vadd.f32 %v812_v40, %v400_v27  ;;  %v403_v46 = vmul.f32 %v800_v32, %v365_v39  ;;  %v405_v54 = vmul.f32 %v800_v32, %v367_v48  ;;  %340 = vst.msk [vmem:[%s773_s30 + $0xc8] sm:$0xff] %vm314_vm1, %v307_v57  ;;  %v408_v61 = vmul.f32 %v800_v32, %v370_v55 }
  0x34   : > { %493 = vrot.lane.b32.xlu1 %v426_v50, %s720_s13  ;;  %489 = vrot.lane.b32.xlu0 %v424_v51, %s720_s13  ;;  %v437_v36 = vadd.f32 %v812_v40, %v399_v28  ;;  %v440_v44 = vadd.f32 %v812_v40, %v402_v34  ;;  %v439_v45 = vadd.f32 %v812_v40, %v401_v37  ;;  %v304_v50 = vld [vmem:[%s768_s27 + $0xb0] sm:$0xff] }
  0x35   : > { %337 = vst.msk [vmem:[%s773_s30 + $0xb0] sm:$0xff] %vm314_vm1, %v304_v50  ;;  %v406_v51 = vmul.f32 %v800_v32, %v368_v47  ;;  %v442_v52 = vadd.f32 %v812_v40, %v404_v43  ;;  %v441_v53 = vadd.f32 %v812_v40, %v403_v46  ;;  %v443_v60 = vadd.f32 %v812_v40, %v405_v54 }
  0x36   : > { %v407_v62 = vmul.f32 %v800_v32, %v369_v56  ;;  %342 = vst.msk [vmem:[%s773_s30 + $0xd8] sm:$0xff] %vm314_vm1, %v309_v1  ;;  %v446_v4 = vadd.f32 %v812_v40, %v408_v61  ;;  %v409_v6 = vmul.f32 %v800_v32, %v371_v0  ;;  %344 = vst.msk [vmem:[%s773_s30 + $0xe8] sm:$0xff] %vm314_vm1, %v311_v9 }
  0x37   : > { %v411_v14 = vmul.f32 %v800_v32, %v373_v8  ;;  %346 = vst.msk [vmem:[%s773_s30 + $0xf8] sm:$0xff] %vm314_vm1, %v313_v17  ;;  %v413_v22 = vmul.f32 %v800_v32, %v375_v16  ;;  %v416_v27 = vmul.f32 %v800_v32, %v378_v23  ;;  %v415_v28 = vmul.f32 %v800_v32, %v377_v24 }
  0x38   : > { %497 = vrot.lane.b32.xlu1 %v428_v58, %s720_s13  ;;  %495 = vrot.lane.b32.xlu0 %v427_v59, %s720_s13  ;;  %v306_v58 = vld [vmem:[%s768_s27 + $0xc0] sm:$0xff]  ;;  %v444_v59 = vadd.f32 %v812_v40, %v406_v51  ;;  %v445_v5 = vadd.f32 %v812_v40, %v407_v62  ;;  %v447_v13 = vadd.f32 %v812_v40, %v409_v6 }
  0x39   : > { %339 = vst.msk [vmem:[%s773_s30 + $0xc0] sm:$0xff] %vm314_vm1, %v306_v58  ;;  %v449_v21 = vadd.f32 %v812_v40, %v411_v14  ;;  %v454_v29 = vadd.f32 %v812_v40, %v416_v27  ;;  %v453_v30 = vadd.f32 %v812_v40, %v415_v28 }
  0x3c   : > { %501 = vrot.lane.b32.xlu1 %v430_v2, %s720_s13  ;;  %499 = vrot.lane.b32.xlu0 %v429_v3, %s720_s13  ;;  %v308_v2 = vld [vmem:[%s768_s27 + $0xd0] sm:$0xff]  ;;  %v410_v3 = vmul.f32 %v800_v32, %v372_v63 }
  0x3d   : > { %341 = vst.msk [vmem:[%s773_s30 + $0xd0] sm:$0xff] %vm314_vm1, %v308_v2 }
  0x3e   : > { %v448_v12 = vadd.f32 %v812_v40, %v410_v3 }
  0x40   : > { %505 = vrot.lane.b32.xlu1 %v432_v10, %s720_s13  ;;  %503 = vrot.lane.b32.xlu0 %v431_v11, %s720_s13  ;;  %v310_v10 = vld [vmem:[%s768_s27 + $0xe0] sm:$0xff]  ;;  %v412_v11 = vmul.f32 %v800_v32, %v374_v7 }
  0x41   : > { %343 = vst.msk [vmem:[%s773_s30 + $0xe0] sm:$0xff] %vm314_vm1, %v310_v10 }
  0x42   : > { %v450_v20 = vadd.f32 %v812_v40, %v412_v11 }
  0x44   : > { %509 = vrot.lane.b32.xlu1 %v434_v18, %s720_s13  ;;  %507 = vrot.lane.b32.xlu0 %v433_v19, %s720_s13  ;;  %v312_v18 = vld [vmem:[%s768_s27 + $0xf0] sm:$0xff]  ;;  %v414_v19 = vmul.f32 %v800_v32, %v376_v15 }
  0x45   : > { %345 = vst.msk [vmem:[%s773_s30 + $0xf0] sm:$0xff] %vm314_vm1, %v312_v18 }
  0x48   : > { %513 = vrot.lane.b32.xlu1 %v436_v25, %s720_s13  ;;  %511 = vrot.lane.b32.xlu0 %v435_v26, %s720_s13  ;;  %v452_v25 = vadd.f32 %v812_v40, %v414_v19  ;;  %v451_v26 = vadd.f32 %v812_v40, %v413_v22 }
  0x4c   : > { %517 = vrot.lane.b32.xlu1 %v438_v35, %s720_s13  ;;  %515 = vrot.lane.b32.xlu0 %v437_v36, %s720_s13 }
  0x50   : > { %521 = vrot.lane.b32.xlu1 %v440_v44, %s720_s13  ;;  %519 = vrot.lane.b32.xlu0 %v439_v45, %s720_s13 }
  0x54   : > { %525 = vrot.lane.b32.xlu1 %v442_v52, %s720_s13  ;;  %523 = vrot.lane.b32.xlu0 %v441_v53, %s720_s13 }
  0x58   : > { %529 = vrot.lane.b32.xlu1 %v444_v59, %s720_s13  ;;  %527 = vrot.lane.b32.xlu0 %v443_v60, %s720_s13 }
  0x5c   : > { %533 = vrot.lane.b32.xlu1 %v446_v4, %s720_s13  ;;  %531 = vrot.lane.b32.xlu0 %v445_v5, %s720_s13 }
  0x60   : > { %537 = vrot.lane.b32.xlu1 %v448_v12, %s720_s13  ;;  %535 = vrot.lane.b32.xlu0 %v447_v13, %s720_s13 }
  0x64   : > { %541 = vrot.lane.b32.xlu1 %v450_v20, %s720_s13  ;;  %539 = vrot.lane.b32.xlu0 %v449_v21, %s720_s13 }
  0x68   : > { %545 = vrot.lane.b32.xlu1 %v452_v25, %s720_s13  ;;  %543 = vrot.lane.b32.xlu0 %v451_v26, %s720_s13 }
  0x6c   : > { %549 = vrot.lane.b32.xlu1 %v454_v29, %s720_s13  ;;  %547 = vrot.lane.b32.xlu0 %v453_v30, %s720_s13 }
  0xa2   : > { %v492_v31 = vpop.permute.xlu1 %491  ;;  %v488_v33 = vpop.permute.xlu0 %487 }
  0xa3   : > { %586 = vst.msk [vmem:[%s773_s30 + $0x10] sm:$0xff] %vm583_vm2, %v492_v31  ;;  %584 = vst.msk [vmem:[%s773_s30] sm:$0xff] %vm583_vm2, %v488_v33 }
  0xa6   : > { %v494_v32 = vpop.permute.xlu1 %493  ;;  %v490_v34 = vpop.permute.xlu0 %489 }
  0xa7   : > { %587 = vst.msk [vmem:[%s773_s30 + $0x18] sm:$0xff] %vm583_vm2, %v494_v32  ;;  %585 = vst.msk [vmem:[%s773_s30 + $0x8] sm:$0xff] %vm583_vm2, %v490_v34 }
  0xaa   : > { %v498_v40 = vpop.permute.xlu1 %497  ;;  %v496_v35 = vpop.permute.xlu0 %495 }
  0xab   : > { %589 = vst.msk [vmem:[%s773_s30 + $0x28] sm:$0xff] %vm583_vm2, %v498_v40  ;;  %588 = vst.msk [vmem:[%s773_s30 + $0x20] sm:$0xff] %vm583_vm2, %v496_v35 }
  0xae   : > { %v502_v36 = vpop.permute.xlu1 %501  ;;  %v500_v37 = vpop.permute.xlu0 %499 }
  0xaf   : > { %591 = vst.msk [vmem:[%s773_s30 + $0x38] sm:$0xff] %vm583_vm2, %v502_v36  ;;  %590 = vst.msk [vmem:[%s773_s30 + $0x30] sm:$0xff] %vm583_vm2, %v500_v37 }
  0xb2   : > { %v506_v38 = vpop.permute.xlu1 %505  ;;  %v504_v39 = vpop.permute.xlu0 %503 }
  0xb3   : > { %593 = vst.msk [vmem:[%s773_s30 + $0x48] sm:$0xff] %vm583_vm2, %v506_v38  ;;  %592 = vst.msk [vmem:[%s773_s30 + $0x40] sm:$0xff] %vm583_vm2, %v504_v39 }
  0xb6   : > { %v510_v41 = vpop.permute.xlu1 %509  ;;  %v508_v42 = vpop.permute.xlu0 %507 }
  0xb7   : > { %595 = vst.msk [vmem:[%s773_s30 + $0x58] sm:$0xff] %vm583_vm2, %v510_v41  ;;  %594 = vst.msk [vmem:[%s773_s30 + $0x50] sm:$0xff] %vm583_vm2, %v508_v42 }
  0xba   : > { %v514_v43 = vpop.permute.xlu1 %513  ;;  %v512_v44 = vpop.permute.xlu0 %511 }
  0xbb   : > { %597 = vst.msk [vmem:[%s773_s30 + $0x68] sm:$0xff] %vm583_vm2, %v514_v43  ;;  %596 = vst.msk [vmem:[%s773_s30 + $0x60] sm:$0xff] %vm583_vm2, %v512_v44 }
  0xbe   : > { %v518_v45 = vpop.permute.xlu1 %517  ;;  %v516_v46 = vpop.permute.xlu0 %515 }
  0xbf   : > { %599 = vst.msk [vmem:[%s773_s30 + $0x78] sm:$0xff] %vm583_vm2, %v518_v45  ;;  %598 = vst.msk [vmem:[%s773_s30 + $0x70] sm:$0xff] %vm583_vm2, %v516_v46 }
  0xc2   : > { %v522_v47 = vpop.permute.xlu1 %521  ;;  %v520_v48 = vpop.permute.xlu0 %519 }
  0xc3   : > { %601 = vst.msk [vmem:[%s773_s30 + $0x88] sm:$0xff] %vm583_vm2, %v522_v47  ;;  %600 = vst.msk [vmem:[%s773_s30 + $0x80] sm:$0xff] %vm583_vm2, %v520_v48 }
  0xc6   : > { %v526_v49 = vpop.permute.xlu1 %525  ;;  %v524_v50 = vpop.permute.xlu0 %523 }
  0xc7   : > { %603 = vst.msk [vmem:[%s773_s30 + $0x98] sm:$0xff] %vm583_vm2, %v526_v49  ;;  %602 = vst.msk [vmem:[%s773_s30 + $0x90] sm:$0xff] %vm583_vm2, %v524_v50 }
  0xca   : > { %v530_v51 = vpop.permute.xlu1 %529  ;;  %v528_v52 = vpop.permute.xlu0 %527 }
  0xcb   : > { %605 = vst.msk [vmem:[%s773_s30 + $0xa8] sm:$0xff] %vm583_vm2, %v530_v51  ;;  %604 = vst.msk [vmem:[%s773_s30 + $0xa0] sm:$0xff] %vm583_vm2, %v528_v52 }
  0xce   : > { %v534_v53 = vpop.permute.xlu1 %533  ;;  %v532_v54 = vpop.permute.xlu0 %531 }
  0xcf   : > { %607 = vst.msk [vmem:[%s773_s30 + $0xb8] sm:$0xff] %vm583_vm2, %v534_v53  ;;  %606 = vst.msk [vmem:[%s773_s30 + $0xb0] sm:$0xff] %vm583_vm2, %v532_v54 }
  0xd2   : > { %v538_v55 = vpop.permute.xlu1 %537  ;;  %v536_v56 = vpop.permute.xlu0 %535 }
  0xd3   : > { %609 = vst.msk [vmem:[%s773_s30 + $0xc8] sm:$0xff] %vm583_vm2, %v538_v55  ;;  %608 = vst.msk [vmem:[%s773_s30 + $0xc0] sm:$0xff] %vm583_vm2, %v536_v56 }
  0xd6   : > { %v542_v57 = vpop.permute.xlu1 %541  ;;  %v540_v58 = vpop.permute.xlu0 %539 }
  0xd7   : > { %611 = vst.msk [vmem:[%s773_s30 + $0xd8] sm:$0xff] %vm583_vm2, %v542_v57  ;;  %610 = vst.msk [vmem:[%s773_s30 + $0xd0] sm:$0xff] %vm583_vm2, %v540_v58 }
  0xda   : > { %v546_v59 = vpop.permute.xlu1 %545  ;;  %v544_v60 = vpop.permute.xlu0 %543 }
  0xdb   : > { %613 = vst.msk [vmem:[%s773_s30 + $0xe8] sm:$0xff] %vm583_vm2, %v546_v59  ;;  %612 = vst.msk [vmem:[%s773_s30 + $0xe0] sm:$0xff] %vm583_vm2, %v544_v60 }
  0xde   : > { %v550_v61 = vpop.permute.xlu1 %549  ;;  %v548_v62 = vpop.permute.xlu0 %547 }
  0xdf   : > { %615 = vst.msk [vmem:[%s773_s30 + $0xf8] sm:$0xff] %vm583_vm2, %v550_v61  ;;  %614 = vst.msk [vmem:[%s773_s30 + $0xf0] sm:$0xff] %vm583_vm2, %v548_v62 }
  0xe0 PF: > { %s15_s18 = sadd.s32 1, %s717_s18  }
  0xe1   : > { %p12_p4 = scmp.ge.s32.totalorder %s15_s18, 4  }
  0xe3   :  { %14 = sbr.rel (!%p12_p4) target bundleno = 1 (0x1), region = 73 }

// kernel: unet_innermost_forward.3
= control target key start
LH: loop header
LB: loop body
LE: loop exit
PB: predicated region body
PF: predicated region fallthrough
CT: control target
= control target key end

     0   :  { %s3790_s9 = smov 0   ;;  %s4592_s0 = inlined_call_operand.vmem [shape: bf16[2,4,9,9,4], index: 0, kind: input, shape index: {}]   ;;  %s4593_s1 = inlined_call_operand.vmem [shape: bf16[16,4,128], index: 1, kind: input, shape index: {}]   ;;  %s4594_s2 = inlined_call_operand.vmem [shape: bf16[2,10,10,128], index: 2, kind: output, shape index: {}]  }
   0x1 LB: > { %s3003_s10 = sadd.s32 4294967295, %s3772_s9   ;;  %p3007_p0 = scmp.ge.s32.totalorder %s3772_s9, 1  ;;  %s3772_s9 = sphi %s3790_s9, %s12_s9  }
   0x2   : > { %p112_p1 = scmp.lt.s32.totalorder %s3772_s9, 3 }
   0x4   : > { %p113_p2 = pnand %p3007_p0, %p112_p1 }
   0x6   : > { %116 = sbr.rel (%p113_p2) target bundleno = 447 (0x1bf), region = 28 }
   0xd   : > { %v3010_v0 = vld [vmem:[%s4593_s1 + $0x2] sm:$0x3]  ;;  %vm577_vm0 = vcmask 1041408   ;;  %v3145_v1 = vld [vmem:[%s4593_s1 + $0x10] sm:$0x3]  ;;  %p134_p3 = scmp.lt.s32.totalorder %s3003_s10, 1 }
   0xe   : > { %3739 = vmatprep.subr.msk.bf16.mxu1 %vm577_vm0, %v3010_v0  ;;  %3747 = vmatprep.subr.msk.bf16.mxu0 %vm577_vm0, %v3145_v1  ;;  %v579_v2 = vsel %vm577_vm0, %v3010_v0, 0  ;;  %v1942_v3 = vsel %vm577_vm0, %v3145_v1, 0  ;;  %v541_v4 = vld [vmem:[%s4593_s1] sm:$0x3]  ;;  %v3154_v5 = vld [vmem:[%s4593_s1 + $0x12] sm:$0x3] }
   0xf   : > { %3460 = vmatpush3.bf16.msra.mxu1 %v579_v2  ;;  %3540 = vmatpush3.bf16.msra.mxu0 %v1942_v3  ;;  %s4615_s10 = smov (!%p134_p3, %s3003_s10), 1  ;;  %v3821_v6 = vld [vmem:[%s4593_s1 + $0x4] sm:$0x3]  ;;  %v3826_v7 = vld [vmem:[%s4593_s1 + $0x14] sm:$0x3]  ;;  %vm564_vm1 = vcmask 31744  }
  0x10   : > { %3740 = vmatprep.subr.msk.bf16.mxu1 %vm577_vm0, %v541_v4  ;;  %3748 = vmatprep.subr.msk.bf16.mxu0 %vm577_vm0, %v3154_v5  ;;  %s3755_s23 = smul.u32 288, %s4615_s10  ;;  %v3832_v8 = vld [vmem:[%s4593_s1 + $0x6] sm:$0x3]  ;;  %v3835_v9 = vsel %vm577_vm0, %v541_v4, 0  ;;  %v3838_v10 = vsel %vm577_vm0, %v3154_v5, 0  ;;  %v3852_v12 = vsel %vm577_vm0, %v3821_v6, 0 }
  0x11   : > { %v3843_v11 = vld [vmem:[%s4593_s1 + $0x16] sm:$0x3]  ;;  %v3856_v13 = vsel %vm577_vm0, %v3826_v7, 0  ;;  %v3860_v14 = vsel %vm577_vm0, %v3832_v8, 0  ;;  %v3869_v16 = vld [vmem:[%s4593_s1 + $0x8] sm:$0x3] }
  0x12   : > { %s3848_s30 = scalar_lea.vmem %s4592_s0, %s3755_s23  ;;  %v3864_v15 = vsel %vm577_vm0, %v3843_v11, 0  ;;  %v3877_v28 = vsel %vm577_vm0, %v3869_v16, 0  ;;  %s3756_s21 = smul.u32 80, %s4615_s10 }
  0x13   : > { %v163_v17 = vld [vmem:[%s3848_s30 + $0x48] ss:$8 sps:$4 sm:$0xff]   ;;  %v167_v18 = vld [vmem:[%s3848_s30] ss:$88 sps:$4 sm:$0xff]   ;;  %4595 = vst [vmem:[#allocation2_spill] sm:$0xff] %v3877_v28 }
  0x14   : > { %v147_v19 = vld [vmem:[%s3848_s30 + $0x8] ss:$8 sps:$4 sm:$0xff]   ;;  %v235_v20 = vunpack.c.l.bf16 %v163_v17  ;;  %v237_v21 = vunpack.c.h.bf16 %v163_v17  ;;  %v239_v22 = vunpack.c.h.bf16 %v167_v18  ;;  %v151_v23 = vld [vmem:[%s3848_s30 + $0x18] ss:$72 sps:$4 sm:$0xff]   ;;  %v217_v24 = vunpack.c.l.bf16 %v167_v18  ;;  %v148_v52 = vld [vmem:[%s3848_s30 + $0xc] sm:$0x1]  ;;  %s4495_s24 = scalar_lea.vmem %s4594_s2, %s3756_s21 }
  0x15   : > { %v219_v25 = vunpack.c.l.bf16 %v147_v19  ;;  %v221_v26 = vunpack.c.h.bf16 %v147_v19  ;;  %v223_v27 = vunpack.c.l.bf16 %v151_v23  ;;  %v3879_v32 = vunpack.c.h.bf16 %v151_v23 }
  0x16   : > { %vm307_vm2 = vcmp.ge.f32.partialorder %v235_v20, 0.0  ;;  %vm309_vm3 = vcmp.ge.f32.partialorder %v237_v21, 0.0  ;;  %vm311_vm4 = vcmp.ge.f32.partialorder %v239_v22, 0.0  ;;  %v379_v29 = vmul.f32 0.2, %v235_v20 }
  0x17   : > { %v381_v30 = vmul.f32 0.2, %v237_v21  ;;  %v383_v31 = vmul.f32 0.2, %v239_v22  ;;  %vm289_vm5 = vcmp.ge.f32.partialorder %v217_v24, 0.0  ;;  %vm291_vm6 = vcmp.ge.f32.partialorder %v219_v25, 0.0 }
  0x18   : > { %v451_v33 = vsel %vm307_vm2, %v235_v20, %v379_v29  ;;  %vm293_vm7 = vcmp.ge.f32.partialorder %v221_v26, 0.0  ;;  %vm295_vm8 = vcmp.ge.f32.partialorder %v223_v27, 0.0  ;;  %v361_v37 = vmul.f32 0.2, %v217_v24 }
  0x19   : > { %v3881_v34 = vsel %vm309_vm3, %v237_v21, %v381_v30  ;;  %v3883_v35 = vsel %vm311_vm4, %v239_v22, %v383_v31  ;;  %v3291_v36 = vpack.c.bf16 %v451_v33, %v451_v33  ;;  %v363_v41 = vmul.f32 0.2, %v219_v25  ;;  %v153_v30 = vld [vmem:[%s3848_s30 + $0x20] ss:$72 sps:$4 sm:$0xff]  }
  0x1a   : > { %v3267_v38 = vpack.c.bf16 %v3881_v34, %v451_v33  ;;  %v3293_v39 = vpack.c.bf16 %v3881_v34, %v3881_v34  ;;  %v3295_v40 = vpack.c.bf16 %v3883_v35, %v3883_v35  ;;  %v365_v44 = vmul.f32 0.2, %v221_v26 }
  0x1b   : > { %v1012_v42 = vshrl.u32 %v3291_v36, 16  ;;  %v1015_v43 = vshll.u32 %v3291_v36, 16  ;;  %v367_v45 = vmul.f32 0.2, %v223_v27  ;;  %v3894_v53 = vsel %vm289_vm5, %v217_v24, %v361_v37 }
  0x1c   : > { %3461 = vmatprep.mubr.msk.bf16.mxu1 %vm564_vm1, %v3267_v38  ;;  %v1026_v46 = vshrl.u32 %v3293_v39, 16  ;;  %v1029_v47 = vshll.u32 %v3293_v39, 16  ;;  %v1040_v48 = vshrl.u32 %v3295_v40, 16  ;;  %v1043_v49 = vshll.u32 %v3295_v40, 16  ;;  %v173_v38 = vld [vmem:[%s3848_s30 + $0x28] ss:$72 sps:$4 sm:$0xff]  }
  0x1d   : > { %v1014_v50 = vrot.slane %v1012_v42, 4  ;;  %v1017_v51 = vrot.slane %v1015_v43, 5  ;;  %v3899_v57 = vsel %vm291_vm6, %v219_v25, %v363_v41  ;;  %v3904_v60 = vsel %vm293_vm7, %v221_v26, %v365_v44 }
  0x1e   : > { %v1028_v54 = vrot.slane %v1026_v46, 4  ;;  %v1031_v55 = vrot.slane %v1029_v47, 5  ;;  %v3896_v56 = vrot.slane %v1040_v48, 4  ;;  %v3901_v59 = vrot.slane %v1043_v49, 5  ;;  %v146_v46 = vld [vmem:[%s3848_s30 + $0x4] sm:$0x1] }
  0x1f   : > { %v1018_v58 = vor.u32 %v1017_v51, %v1014_v50  ;;  %v3907_v61 = vsel %vm295_vm8, %v223_v27, %v367_v45  ;;  %v3271_v63 = vpack.c.bf16 %v3899_v57, %v3894_v53  ;;  %v3275_v0 = vpack.c.bf16 %v3894_v53, %v3894_v53 }
  0x20   : > { %v1032_v62 = vor.u32 %v1031_v55, %v1028_v54  ;;  %v3277_v1 = vpack.c.bf16 %v3899_v57, %v3899_v57  ;;  %v3279_v3 = vpack.c.bf16 %v3904_v60, %v3904_v60  ;;  %v3281_v4 = vpack.c.bf16 %v3907_v61, %v3907_v61 }
  0x21   : > { %v3347_v5 = vpack.c.bf16 %v3904_v60, %v3899_v57  ;;  %v3923_v17 = vrot.slane %v1018_v58, 4  ;;  %v774_v18 = vshrl.u32 %v3275_v0, 16  ;;  %v777_v19 = vshll.u32 %v3275_v0, 16  ;;  %v157_v58 = vld [vmem:[%s3848_s30 + $0x30] ss:$72 sps:$4 sm:$0xff]  }
  0x22   : > { %v788_v20 = vshrl.u32 %v3277_v1, 16  ;;  %v791_v21 = vshll.u32 %v3277_v1, 16  ;;  %v802_v22 = vshrl.u32 %v3279_v3, 16  ;;  %v805_v23 = vshll.u32 %v3279_v3, 16 }
  0x23   : > { %v816_v24 = vshrl.u32 %v3281_v4, 16  ;;  %3541 = vmatprep.mubr.msk.bf16.mxu0 %vm564_vm1, %v3347_v5  ;;  %v3926_v25 = vrot.slane %v774_v18, 4  ;;  %v3928_v26 = vrot.slane %v777_v19, 5  ;;  %v819_v29 = vshll.u32 %v3281_v4, 16 }
  0x24   : > { %v790_v27 = vrot.slane %v788_v20, 4  ;;  %v793_v31 = vrot.slane %v791_v21, 5  ;;  %v804_v33 = vrot.slane %v802_v22, 4  ;;  %v807_v36 = vrot.slane %v805_v23, 5 }
  0x25   : > { %v3931_v37 = vrot.slane %v816_v24, 4  ;;  %v3934_v39 = vrot.slane %v1032_v62, 4  ;;  %v3936_v40 = vrot.slane %v819_v29, 5  ;;  %vm313_vm9 = vcmp.ge.f32.partialorder %v3879_v32, 0.0 }
  0x26   : > { %v385_v41 = vmul.f32 0.2, %v3879_v32  ;;  %v794_v42 = vor.u32 %v793_v31, %v790_v27  ;;  %v808_v43 = vor.u32 %v807_v36, %v804_v33  ;;  %v225_v44 = vunpack.c.l.bf16 %v153_v30 }
  0x27   : > { %v243_v45 = vunpack.c.h.bf16 %v153_v30  ;;  %v245_v48 = vunpack.c.h.bf16 %v173_v38  ;;  %v227_v49 = vunpack.c.l.bf16 %v173_v38  ;;  %v229_v18 = vunpack.c.l.bf16 %v157_v58 }
  0x28   : > { %v3943_v47 = vsel %vm313_vm9, %v3879_v32, %v385_v41  ;;  %v3945_v50 = vrot.slane %v794_v42, 4  ;;  %v3954_v62 = vrot.slane %v808_v43, 4  ;;  %vm297_vm10 = vcmp.ge.f32.partialorder %v225_v44, 0.0 }
  0x29   : > { %v3268_v54 = vpack.c.bf16 %v3943_v47, %v3883_v35  ;;  %v3297_v55 = vpack.c.bf16 %v3943_v47, %v3943_v47  ;;  %v369_v0 = vmul.f32 0.2, %v225_v44  ;;  %vm315_vm11 = vcmp.ge.f32.partialorder %v243_v45, 0.0 }
  0x2a   : > { %vm317_vm12 = vcmp.ge.f32.partialorder %v245_v48, 0.0  ;;  %v387_v1 = vmul.f32 0.2, %v243_v45  ;;  %v389_v3 = vmul.f32 0.2, %v245_v48  ;;  %vm299_vm13 = vcmp.ge.f32.partialorder %v227_v49, 0.0 }
  0x2b   : > { %3462 = vmatmul.mubr.msk.bf16.vlgmr.msra.gmra.mrb[0].mxu1 %vm564_vm1, %v3268_v54  ;;  %v1054_v32 = vshrl.u32 %v3297_v55, 16  ;;  %v1057_v4 = vshll.u32 %v3297_v55, 16  ;;  %v3958_v5 = vsel %vm297_vm10, %v225_v44, %v369_v0  ;;  %v371_v19 = vmul.f32 0.2, %v227_v49 }
  0x2c   : > { %3470 = vmatpush3.bf16.msra.mxu1 %v3835_v9  ;;  %v3283_v21 = vpack.c.bf16 %v3958_v5, %v3958_v5  ;;  %v3348_v22 = vpack.c.bf16 %v3958_v5, %v3907_v61  ;;  %v3969_v23 = vsel %vm315_vm11, %v243_v45, %v387_v1  ;;  %v3971_v9 = vsel %vm317_vm12, %v245_v48, %v389_v3 }
  0x2d   : > { %v3960_v20 = vrot.slane %v1054_v32, 4  ;;  %3741 = vmatprep.subr.msk.bf16.mxu1 %vm577_vm0, %v3821_v6  ;;  %vm301_vm14 = vcmp.ge.f32.partialorder %v229_v18, 0.0  ;;  %v373_v24 = vmul.f32 0.2, %v229_v18  ;;  %v3269_v30 = vpack.c.bf16 %v3971_v9, %v3969_v23 }
  0x2e   : > { %v830_v27 = vshrl.u32 %v3283_v21, 16  ;;  %v833_v29 = vshll.u32 %v3283_v21, 16  ;;  %3542 = vmatmul.mubr.msk.bf16.vlgmr.msra.gmra.mrb[0].mxu0 %vm564_vm1, %v3348_v22  ;;  %v3299_v31 = vpack.c.bf16 %v3969_v23, %v3969_v23  ;;  %v3978_v33 = vrot.slane %v1057_v4, 5 }
  0x2f   : > { %3550 = vmatpush3.bf16.msra.mxu0 %v3838_v10  ;;  %v3301_v6 = vpack.c.bf16 %v3971_v9, %v3971_v9  ;;  %v3983_v36 = vsel %vm299_vm13, %v227_v49, %v371_v19  ;;  %v3985_v38 = vsel %vm301_vm14, %v229_v18, %v373_v24  ;;  %3465 = vmatprep.mubr.msk.bf16.mxu1 %vm564_vm1, %v3269_v30  ;;  %v247_v24 = vunpack.c.h.bf16 %v157_v58 }
  0x30   : > { %v3987_v41 = vrot.slane %v830_v27, 4  ;;  %v3989_v42 = vrot.slane %v833_v29, 5  ;;  %v1068_v43 = vshrl.u32 %v3299_v31, 16  ;;  %v1071_v44 = vshll.u32 %v3299_v31, 16  ;;  %3749 = vmatprep.subr.msk.bf16.mxu0 %vm577_vm0, %v3826_v7  ;;  %v177_v7 = vld [vmem:[%s3848_s30 + $0x38] ss:$72 sps:$4 sm:$0xff]  }
  0x31   : > { %v1082_v10 = vshrl.u32 %v3301_v6, 16  ;;  %v1085_v45 = vshll.u32 %v3301_v6, 16  ;;  %v3285_v48 = vpack.c.bf16 %v3983_v36, %v3983_v36  ;;  %v3287_v49 = vpack.c.bf16 %v3985_v38, %v3985_v38  ;;  %v161_v27 = vld [vmem:[%s3848_s30 + $0x40] ss:$72 sps:$4 sm:$0xff]  }
  0x32   : > { %v3998_v54 = vrot.slane %v1068_v43, 4  ;;  %v4000_v55 = vrot.slane %v1071_v44, 5  ;;  %v3349_v32 = vpack.c.bf16 %v3985_v38, %v3983_v36  ;;  %v249_v31 = vunpack.c.h.bf16 %v177_v7 }
  0x33   : > { %v4009_v3 = vrot.slane %v1082_v10, 4  ;;  %v844_v4 = vshrl.u32 %v3285_v48, 16  ;;  %v847_v18 = vshll.u32 %v3285_v48, 16  ;;  %v4011_v19 = vrot.slane %v1085_v45, 5 }
  0x34   : > { %v858_v21 = vshrl.u32 %v3287_v49, 16  ;;  %v861_v22 = vshll.u32 %v3287_v49, 16  ;;  %3545 = vmatprep.mubr.msk.bf16.mxu0 %vm564_vm1, %v3349_v32  ;;  %v231_v6 = vunpack.c.l.bf16 %v177_v7  ;;  %vm319_vm15 = vcmp.ge.f32.partialorder %v247_v24, 0.0 }
  0x35   : > { %v4017_v30 = vrot.slane %v844_v4, 4  ;;  %v4019_v43 = vrot.slane %v847_v18, 5  ;;  %v391_v10 = vmul.f32 0.2, %v247_v24  ;;  %vm321_vm2 = vcmp.ge.f32.partialorder %v249_v31, 0.0 }
  0x36   : > { %v4021_v44 = vrot.slane %v858_v21, 4  ;;  %v393_v45 = vmul.f32 0.2, %v249_v31  ;;  %v233_v48 = vunpack.c.l.bf16 %v161_v27  ;;  %vm303_vm3 = vcmp.ge.f32.partialorder %v231_v6, 0.0 }
  0x37   : > { %v4023_v49 = vrot.slane %v861_v22, 5  ;;  %v4025_v58 = vsel %vm319_vm15, %v247_v24, %v391_v10  ;;  %v375_v32 = vmul.f32 0.2, %v231_v6  ;;  %v3273_v4 = vpack.c.bf16 %v3983_v36, %v3958_v5 }
  0x38   : > { %v4029_v29 = vsel %vm321_vm2, %v249_v31, %v393_v45  ;;  %v3303_v7 = vpack.c.bf16 %v4025_v58, %v4025_v58  ;;  %vm305_vm4 = vcmp.ge.f32.partialorder %v233_v48, 0.0  ;;  %v377_v18 = vmul.f32 0.2, %v233_v48 }
  0x39   : > { %v3270_v21 = vpack.c.bf16 %v4029_v29, %v4025_v58  ;;  %v3305_v22 = vpack.c.bf16 %v4029_v29, %v4029_v29  ;;  %v4037_v24 = vsel %vm303_vm3, %v231_v6, %v375_v32  ;;  %v251_v10 = vunpack.c.h.bf16 %v161_v27 }
  0x3a   : > { %v1096_v1 = vshrl.u32 %v3303_v7, 16  ;;  %v1099_v5 = vshll.u32 %v3303_v7, 16  ;;  %v449_v36 = vsel %vm305_vm4, %v233_v48, %v377_v18  ;;  %v3289_v31 = vpack.c.bf16 %v4037_v24, %v4037_v24  ;;  %v150_v7 = vld [vmem:[%s3848_s30 + $0x14] sm:$0x1] }
  0x3b   : > { %3466 = vmatmul.mubr.msk.bf16.gmra.mrb[4].mxu1 %vm564_vm1, %v3270_v21  ;;  %v1110_v45 = vshrl.u32 %v3305_v22, 16  ;;  %v1113_v51 = vshll.u32 %v3305_v22, 16  ;;  %v3350_v0 = vpack.c.bf16 %v449_v36, %v4037_v24  ;;  %v3355_v2 = vpack.c.bf16 %v449_v36, %v449_v36  ;;  %v152_v36 = vld [vmem:[%s3848_s30 + $0x1c] sm:$0x1] }
  0x3c   : > { %v4045_v6 = vrot.slane %v1096_v1, 4  ;;  %v872_v27 = vshrl.u32 %v3289_v31, 16  ;;  %v875_v32 = vshll.u32 %v3289_v31, 16  ;;  %3471 = vmatprep.mubr.msk.bf16.mxu1 %vm564_vm1, %v3271_v63  ;;  %v3353_v48 = vpack.c.bf16 %v4025_v58, %v3971_v9  ;;  %v154_v9 = vld [vmem:[%s3848_s30 + $0x24] sm:$0x1] }
  0x3d   : > { %vm770_vm5 = vsmask.f32 3328  ;;  %vm771_vm6 = vsmask.f32 7440  ;;  %v4054_v18 = vrot.slane %v1099_v5, 5  ;;  %v4056_v21 = vrot.slane %v1110_v45, 4  ;;  %3546 = vmatmul.mubr.msk.bf16.gmra.mrb[4].mxu0 %vm564_vm1, %v3350_v0 }
  0x3e   : > { %v2117_v1 = vshrl.u32 %v3355_v2, 16  ;;  %v2120_v22 = vshll.u32 %v3355_v2, 16  ;;  %v4060_v31 = vrot.slane %v1113_v51, 5  ;;  %v4062_v53 = vrot.slane %v872_v27, 4  ;;  %vm4107_vm13 = vmor %vm770_vm5, %vm771_vm6 }
  0x3f   : > { %4596 = vst [vmem:[#allocation3_spill] sm:$0xff] %v4056_v21  ;;  %v4064_v57 = vrot.slane %v875_v32, 5  ;;  %v4598_v63 = vpack.c.bf16 %v3883_v35, %v3881_v34  ;;  %vm323_vm7 = vcmp.ge.f32.partialorder %v251_v10, 0.0  ;;  %v3274_v0 = vpack.c.bf16 %v4037_v24, %v3985_v38 }
  0x40   : > { %4597 = vst [vmem:[#allocation4_spill] sm:$0xff] %v4060_v31  ;;  %v4071_v58 = vrot.slane %v2117_v1, 4  ;;  %v395_v2 = vmul.f32 0.2, %v251_v10  ;;  %v218_v5 = vunpack.c.l.bf16 %v146_v46  ;;  %v4075_v51 = vrot.slane %v2120_v22, 5 }
  0x41   : > { %3551 = vmatprep.mubr.msk.bf16.mxu0 %vm564_vm1, %v4598_v63  ;;  %v220_v45 = vunpack.c.l.bf16 %v148_v52  ;;  %v222_v27 = vunpack.c.l.bf16 %v150_v7  ;;  %v224_v32 = vunpack.c.l.bf16 %v152_v36  ;;  %v226_v34 = vunpack.c.l.bf16 %v154_v9  ;;  %v156_v22 = vld [vmem:[%s3848_s30 + $0x2c] sm:$0x1] }
  0x42   : > { %v467_v28 = vsel %vm323_vm7, %v251_v10, %v395_v2  ;;  %vm290_vm8 = vcmp.ge.f32.partialorder %v218_v5, 0.0  ;;  %v362_v31 = vmul.f32 0.2, %v218_v5  ;;  %v4599_v1 = vor.u32 %v3928_v26, %v3926_v25 }
  0x43   : > { %v4077_v35 = vpack.c.bf16 %v467_v28, %v467_v28  ;;  %vm292_vm9 = vcmp.ge.f32.partialorder %v220_v45, 0.0  ;;  %v364_v63 = vmul.f32 0.2, %v220_v45  ;;  %v4600_v46 = vpack.c.bf16 %v3907_v61, %v3904_v60 }
  0x44   : > { %v781_v21 = vrot.slane %v4599_v1, 4  ;;  %v3354_v52 = vpack.c.bf16 %v467_v28, %v4029_v29  ;;  %v434_v38 = vsel %vm290_vm8, %v218_v5, %v362_v31  ;;  %vm294_vm10 = vcmp.ge.f32.partialorder %v222_v27, 0.0 }
  0x45   : > { %3472 = vmatmul.mubr.msk.bf16.vlgmr.msra.gmra.mrb[0].mxu1 %vm564_vm1, %v4600_v46  ;;  %vm296_vm11 = vcmp.ge.f32.partialorder %v224_v32, 0.0  ;;  %v2229_v24 = vshrl.u32 %v4077_v35, 16  ;;  %v436_v10 = vsel %vm292_vm9, %v220_v45, %v364_v63  ;;  %v3276_v25 = vpack.c.bf16 %v434_v38, %v434_v38 }
  0x46   : > { %3480 = vmatpush3.bf16.msra.mxu1 %v3852_v12  ;;  %3475 = vmatprep.mubr.msk.bf16.mxu1 %vm564_vm1, %v3273_v4  ;;  %vm298_vm12 = vcmp.ge.f32.partialorder %v226_v34, 0.0  ;;  %v4601_v60 = vpack.c.bf16 %v3969_v23, %v3943_v47  ;;  %v3278_v61 = vpack.c.bf16 %v436_v10, %v436_v10  ;;  %v366_v28 = vmul.f32 0.2, %v222_v27 }
  0x47   : > { %3742 = vmatprep.subr.msk.bf16.mxu1 %vm577_vm0, %v3832_v8  ;;  %v368_v26 = vmul.f32 0.2, %v224_v32  ;;  %v370_v12 = vmul.f32 0.2, %v226_v34  ;;  %v4098_v29 = vrot.slane %v2229_v24, 4  ;;  %v2232_v4 = vshll.u32 %v4077_v35, 16 }
  0x48   : > { %3552 = vmatmul.mubr.msk.bf16.vlgmr.msra.gmra.mrb[0].mxu0 %vm564_vm1, %v4601_v60  ;;  %v783_v7 = vshll.u32 %v3276_v25, 16  ;;  %v4602_v47 = vor.u32 %v3936_v40, %v3931_v37  ;;  %v4605_v45 = vor.u32 %v3989_v42, %v3987_v41  ;;  %v228_v1 = vunpack.c.l.bf16 %v156_v22  ;;  %v160_v24 = vld [vmem:[%s3848_s30 + $0x3c] sm:$0x1] }
  0x49   : > { %3560 = vmatpush3.bf16.msra.mxu0 %v3856_v13  ;;  %3555 = vmatprep.mubr.msk.bf16.mxu0 %vm564_vm1, %v3353_v48  ;;  %v797_v13 = vshll.u32 %v3278_v61, 16  ;;  %v438_v48 = vsel %vm294_vm10, %v222_v27, %v366_v28  ;;  %v440_v36 = vsel %vm296_vm11, %v224_v32, %v368_v26  ;;  %v442_v31 = vsel %vm298_vm12, %v226_v34, %v370_v12  ;;  %v158_v32 = vld [vmem:[%s3848_s30 + $0x34] sm:$0x1] }
  0x4a   : > { %v823_v23 = vrot.slane %v4602_v47, 4  ;;  %3750 = vmatprep.subr.msk.bf16.mxu0 %vm577_vm0, %v3843_v11  ;;  %v785_v37 = vrot.slane %v783_v7, 5  ;;  %v3280_v40 = vpack.c.bf16 %v438_v48, %v438_v48  ;;  %v3282_v9 = vpack.c.bf16 %v440_v36, %v440_v36  ;;  %v162_v7 = vld [vmem:[%s3848_s30 + $0x44] sm:$0x1] }
  0x4b   : > { %v3284_v2 = vpack.c.bf16 %v442_v31, %v442_v31  ;;  %v799_v5 = vrot.slane %v797_v13, 5  ;;  %v837_v63 = vrot.slane %v4605_v45, 4  ;;  %v850_v27 = vor.u32 %v4019_v43, %v4017_v30 }
  0x4c   : > { %v786_v34 = vsel %vm4107_vm13, %v781_v21, %v785_v37  ;;  %v811_v46 = vshll.u32 %v3280_v40, 16  ;;  %v825_v38 = vshll.u32 %v3282_v9, 16  ;;  %vm300_vm14 = vcmp.ge.f32.partialorder %v228_v1, 0.0 }
  0x4d   : > { %v839_v11 = vshll.u32 %v3284_v2, 16  ;;  %3476 = vmatmul.mubr.msk.bf16.gmra.mrb[4].mxu1 %vm564_vm1, %v3274_v0  ;;  %v800_v10 = vsel %vm4107_vm13, %v3945_v50, %v799_v5  ;;  %v372_v41 = vmul.f32 0.2, %v228_v1  ;;  %v851_v42 = vrot.slane %v850_v27, 4 }
  0x4e   : > { %v3044_v25 = vcombine.low %v786_v34, %v800_v10  ;;  %v813_v30 = vrot.slane %v811_v46, 5  ;;  %v827_v43 = vrot.slane %v825_v38, 5  ;;  %v230_v61 = vunpack.c.l.bf16 %v158_v32  ;;  %v168_v32 = vld [vmem:[%s3848_s30 + $0x5c] sm:$0x1]  ;;  %v170_v46 = vld [vmem:[%s3848_s30 + $0x64] sm:$0x1] }
  0x4f   : > { %v841_v60 = vrot.slane %v839_v11, 5  ;;  %v444_v21 = vsel %vm300_vm14, %v228_v1, %v372_v41  ;;  %v864_v0 = vor.u32 %v4023_v49, %v4021_v44  ;;  %v232_v28 = vunpack.c.l.bf16 %v160_v24  ;;  %v164_v44 = vld [vmem:[%s3848_s30 + $0x4c] sm:$0x1]  ;;  %v166_v49 = vld [vmem:[%s3848_s30 + $0x54] sm:$0x1] }
  0x50   : > { %3556 = vmatmul.mubr.msk.bf16.gmra.mrb[4].mxu0 %vm564_vm1, %v3354_v52  ;;  %3481 = vmatprep.mubr.msk.bf16.mxu1 %vm564_vm1, %v3044_v25  ;;  %v814_v50 = vsel %vm4107_vm13, %v3954_v62, %v813_v30  ;;  %v828_v26 = vsel %vm4107_vm13, %v823_v23, %v827_v43  ;;  %v3286_v52 = vpack.c.bf16 %v444_v21, %v444_v21  ;;  %vm302_vm15 = vcmp.ge.f32.partialorder %v230_v61, 0.0  ;;  %v172_v24 = vld [vmem:[%s3848_s30 + $0x6c] sm:$0x1] }
  0x51   : > { %v842_v12 = vsel %vm4107_vm13, %v837_v63, %v841_v60  ;;  %v3045_v47 = vcombine.low %v814_v50, %v828_v26  ;;  %v3166_v22 = vcombine.low %v800_v10, %v814_v50  ;;  %v374_v36 = vmul.f32 0.2, %v230_v61 }
  0x52   : > { %v3167_v13 = vcombine.low %v828_v26, %v842_v12  ;;  %v853_v48 = vshll.u32 %v3286_v52, 16  ;;  %v865_v31 = vrot.slane %v864_v0, 4  ;;  %vm304_vm2 = vcmp.ge.f32.partialorder %v232_v28, 0.0 }
  0x53   : > { %3561 = vmatprep.mubr.msk.bf16.mxu0 %vm564_vm1, %v3166_v22  ;;  %v376_v62 = vmul.f32 0.2, %v232_v28  ;;  %v878_v23 = vor.u32 %v4064_v57, %v4062_v53  ;;  %v234_v37 = vunpack.c.l.bf16 %v162_v7  ;;  %v2123_v40 = vor.u32 %v4075_v51, %v4071_v58  ;;  %v4153_v53 = vld [vmem:[%s4593_s1 + $0x18] sm:$0x3] }
  0x54   : > { %v855_v9 = vrot.slane %v853_v48, 5  ;;  %v446_v2 = vsel %vm302_vm15, %v230_v61, %v374_v36  ;;  %v236_v5 = vunpack.c.l.bf16 %v164_v44  ;;  %v238_v45 = vunpack.c.l.bf16 %v166_v49 }
  0x55   : > { %3482 = vmatmul.mubr.msk.bf16.vlgmr.msra.gmra.mrb[0].mxu1 %vm564_vm1, %v3045_v47  ;;  %v3288_v63 = vpack.c.bf16 %v446_v2, %v446_v2  ;;  %v448_v1 = vsel %vm304_vm2, %v232_v28, %v376_v62  ;;  %v879_v27 = vrot.slane %v878_v23, 4  ;;  %vm306_vm3 = vcmp.ge.f32.partialorder %v234_v37, 0.0 }
  0x56   : > { %3490 = vmatpush3.bf16.msra.mxu1 %v3860_v14  ;;  %v856_v57 = vsel %vm4107_vm13, %v851_v42, %v855_v9  ;;  %v3290_v58 = vpack.c.bf16 %v448_v1, %v448_v1  ;;  %v378_v51 = vmul.f32 0.2, %v234_v37  ;;  %v2124_v34 = vrot.slane %v2123_v40, 4 }
  0x57   : > { %v3046_v38 = vcombine.low %v842_v12, %v856_v57  ;;  %v867_v11 = vshll.u32 %v3288_v63, 16  ;;  %vm308_vm4 = vcmp.ge.f32.partialorder %v236_v5, 0.0  ;;  %vm310_vm5 = vcmp.ge.f32.partialorder %v238_v45, 0.0  ;;  %3743 = vmatprep.subr.msk.bf16.mxu1 %vm577_vm0, %v3869_v16 }
  0x58   : > { %3562 = vmatmul.mubr.msk.bf16.vlgmr.msra.gmra.mrb[0].mxu0 %vm564_vm1, %v3167_v13  ;;  %v881_v14 = vshll.u32 %v3290_v58, 16  ;;  %v450_v10 = vsel %vm306_vm3, %v234_v37, %v378_v51  ;;  %v380_v41 = vmul.f32 0.2, %v236_v5  ;;  %v382_v42 = vmul.f32 0.2, %v238_v45 }
  0x59   : > { %3570 = vmatpush3.bf16.msra.mxu0 %v3864_v15  ;;  %3485 = vmatprep.mubr.msk.bf16.mxu1 %vm564_vm1, %v3046_v38  ;;  %v869_v25 = vrot.slane %v867_v11, 5  ;;  %v3356_v30 = vpack.c.bf16 %v450_v10, %v450_v10  ;;  %v240_v43 = vunpack.c.l.bf16 %v168_v32  ;;  %v242_v60 = vunpack.c.l.bf16 %v170_v46  ;;  %v176_v32 = vld [vmem:[%s3848_s30 + $0x7c] sm:$0x1] }
  0x5a   : > { %3751 = vmatprep.subr.msk.bf16.mxu0 %vm577_vm0, %v4153_v53  ;;  %v883_v21 = vrot.slane %v881_v14, 5  ;;  %v452_v16 = vsel %vm308_vm4, %v236_v5, %v380_v41  ;;  %v454_v61 = vsel %vm310_vm5, %v238_v45, %v382_v42  ;;  %v244_v15 = vunpack.c.l.bf16 %v172_v24  ;;  %v174_v5 = vld [vmem:[%s3848_s30 + $0x74] sm:$0x1] }
  0x5b   : > { %v870_v0 = vsel %vm4107_vm13, %v865_v31, %v869_v25  ;;  %v2126_v28 = vshll.u32 %v3356_v30, 16  ;;  %v3292_v50 = vpack.c.bf16 %v452_v16, %v452_v16  ;;  %v3294_v26 = vpack.c.bf16 %v454_v61, %v454_v61 }
  0x5c   : > { %v3168_v12 = vcombine.low %v856_v57, %v870_v0  ;;  %v884_v52 = vsel %vm4107_vm13, %v879_v27, %v883_v21  ;;  %vm312_vm6 = vcmp.ge.f32.partialorder %v240_v43, 0.0  ;;  %vm314_vm7 = vcmp.ge.f32.partialorder %v242_v60, 0.0  ;;  %v180_v21 = vld [vmem:[%s3848_s30 + $0x8c] sm:$0x1] }
  0x5d   : > { %v3047_v7 = vcombine.low %v870_v0, %v884_v52  ;;  %v2128_v47 = vrot.slane %v2126_v28, 5  ;;  %v1021_v22 = vshll.u32 %v3292_v50, 16  ;;  %v1035_v13 = vshll.u32 %v3294_v26, 16  ;;  %v4607_v50 = vld [vmem:[#allocation3_spill] sm:$0xff]  ;;  %v4608_v26 = vld [vmem:[#allocation4_spill] sm:$0xff] }
  0x5e   : > { %3565 = vmatprep.mubr.msk.bf16.mxu0 %vm564_vm1, %v3168_v12  ;;  %vm316_vm8 = vcmp.ge.f32.partialorder %v244_v15, 0.0  ;;  %v384_v44 = vmul.f32 0.2, %v240_v43  ;;  %v386_v49 = vmul.f32 0.2, %v242_v60  ;;  %v1046_v48 = vor.u32 %v3901_v59, %v3896_v56 }
  0x5f   : > { %3486 = vmatmul.mubr.msk.bf16.gmra.mrb[4].mxu1 %vm564_vm1, %v3047_v7  ;;  %v2129_v36 = vsel %vm4107_vm13, %v2124_v34, %v2128_v47  ;;  %v1023_v31 = vrot.slane %v1021_v22, 5  ;;  %v1037_v62 = vrot.slane %v1035_v13, 5  ;;  %v388_v23 = vmul.f32 0.2, %v244_v15  ;;  %v4228_v7 = vld [vmem:[%s4593_s1 + $0x1a] sm:$0x3] }
  0x60   : > { %v4182_v37 = vrot.slane %v2232_v4, 5  ;;  %v3169_v40 = vcombine.low %v884_v52, %v2129_v36  ;;  %v456_v9 = vsel %vm312_vm6, %v240_v43, %v384_v44  ;;  %v458_v2 = vsel %vm314_vm7, %v242_v60, %v386_v49  ;;  %v4223_v52 = vld [vmem:[%s4593_s1 + $0xa] sm:$0x3]  ;;  %v4609_v49 = vld [vmem:[#allocation2_spill] sm:$0xff] }
  0x61   : > { %v1024_v56 = vsel %vm4107_vm13, %v3923_v17, %v1023_v31  ;;  %v1038_v59 = vsel %vm4107_vm13, %v3934_v39, %v1037_v62  ;;  %v460_v45 = vsel %vm316_vm8, %v244_v15, %v388_v23  ;;  %v3296_v63 = vpack.c.bf16 %v456_v9, %v456_v9 }
  0x62   : > { %3566 = vmatmul.mubr.msk.bf16.gmra.mrb[4].mxu0 %vm564_vm1, %v3169_v40  ;;  %v3069_v35 = vcombine.low %v1024_v56, %v1038_v59  ;;  %v3298_v4 = vpack.c.bf16 %v458_v2, %v458_v2  ;;  %v3300_v1 = vpack.c.bf16 %v460_v45, %v460_v45  ;;  %v1060_v27 = vor.u32 %v3978_v33, %v3960_v20  ;;  %v185_v56 = vld [vmem:[%s3848_s30 + $0xa0] ss:$8 sps:$4 sm:$0xff]  }
  0x63   : > { %v1047_v57 = vrot.slane %v1046_v48, 4  ;;  %v1049_v58 = vshll.u32 %v3296_v63, 16  ;;  %v4606_v17 = vor.u32 %v4000_v55, %v3998_v54  ;;  %v246_v34 = vunpack.c.l.bf16 %v174_v5 }
  0x64   : > { %3491 = vmatprep.mubr.msk.bf16.mxu1 %vm564_vm1, %v3069_v35  ;;  %v1061_v39 = vrot.slane %v1060_v27, 4  ;;  %v1063_v46 = vshll.u32 %v3298_v4, 16  ;;  %v1077_v38 = vshll.u32 %v3300_v1, 16  ;;  %v1088_v11 = vor.u32 %v4011_v19, %v4009_v3  ;;  %v178_v19 = vld [vmem:[%s3848_s30 + $0x84] sm:$0x1] }
  0x65   : > { %v1075_v51 = vrot.slane %v4606_v17, 4  ;;  %v1051_v24 = vrot.slane %v1049_v58, 5  ;;  %vm318_vm9 = vcmp.ge.f32.partialorder %v246_v34, 0.0  ;;  %v390_v20 = vmul.f32 0.2, %v246_v34 }
  0x66   : > { %v248_v33 = vunpack.c.l.bf16 %v176_v32  ;;  %v1065_v14 = vrot.slane %v1063_v46, 5  ;;  %v1079_v10 = vrot.slane %v1077_v38, 5  ;;  %v2358_v54 = vsel %vm577_vm0, %v4153_v53, 0  ;;  %v181_v53 = vld [vmem:[%s3848_s30 + $0x90] ss:$8 sps:$4 sm:$0xff]  }
  0x67   : > { %v1102_v55 = vor.u32 %v4054_v18, %v4045_v6  ;;  %v1052_v41 = vsel %vm4107_vm13, %v1047_v57, %v1051_v24  ;;  %v462_v42 = vsel %vm318_vm9, %v246_v34, %v390_v20  ;;  %v1089_v6 = vrot.slane %v1088_v11, 4  ;;  %v189_v1 = vld [vmem:[%s3848_s30 + $0xb0] ss:$8 sps:$4 sm:$0xff]  }
  0x68   : > { %vm320_vm10 = vcmp.ge.f32.partialorder %v248_v33, 0.0  ;;  %v392_v3 = vmul.f32 0.2, %v248_v33  ;;  %v1066_v25 = vsel %vm4107_vm13, %v1061_v39, %v1065_v14  ;;  %v1080_v30 = vsel %vm4107_vm13, %v1075_v51, %v1079_v10 }
  0x69   : > { %v3177_v43 = vcombine.low %v1038_v59, %v1052_v41  ;;  %v3302_v60 = vpack.c.bf16 %v462_v42, %v462_v42  ;;  %v3070_v16 = vcombine.low %v1052_v41, %v1066_v25  ;;  %v3178_v61 = vcombine.low %v1066_v25, %v1080_v30 }
  0x6a   : > { %v464_v18 = vsel %vm320_vm10, %v248_v33, %v392_v3  ;;  %v250_v28 = vunpack.c.l.bf16 %v178_v19  ;;  %v1116_v12 = vor.u32 %v4608_v26, %v4607_v50  ;;  %v1103_v47 = vrot.slane %v1102_v55, 4 }
  0x6b   : > { %3571 = vmatprep.mubr.msk.bf16.mxu0 %vm564_vm1, %v3177_v43  ;;  %v1091_v15 = vshll.u32 %v3302_v60, 16  ;;  %v3304_v0 = vpack.c.bf16 %v464_v18, %v464_v18  ;;  %3492 = vmatmul.mubr.msk.bf16.vlgmr.msra.gmra.mrb[0].mxu1 %vm564_vm1, %v3070_v16  ;;  %v252_v22 = vunpack.c.l.bf16 %v180_v21  ;;  %v253_v13 = vunpack.c.l.bf16 %v181_v53 }
  0x6c   : > { %3572 = vmatmul.mubr.msk.bf16.vlgmr.msra.gmra.mrb[0].mxu0 %vm564_vm1, %v3178_v61  ;;  %v255_v44 = vunpack.c.h.bf16 %v181_v53  ;;  %3500 = vmatpush3.bf16.msra.mxu1 %v4609_v49  ;;  %vm322_vm11 = vcmp.ge.f32.partialorder %v250_v28, 0.0  ;;  %v394_v31 = vmul.f32 0.2, %v250_v28  ;;  %v1117_v62 = vrot.slane %v1116_v12, 4 }
  0x6d   : > { %3580 = vmatpush3.bf16.msra.mxu0 %v2358_v54  ;;  %v1093_v48 = vrot.slane %v1091_v15, 5  ;;  %v1105_v36 = vshll.u32 %v3304_v0, 16  ;;  %vm324_vm12 = vcmp.ge.f32.partialorder %v252_v22, 0.0  ;;  %v396_v23 = vmul.f32 0.2, %v252_v22  ;;  %3744 = vmatprep.subr.msk.bf16.mxu1 %vm577_vm0, %v4223_v52 }
  0x6e   : > { %v2235_v40 = vor.u32 %v4182_v37, %v4098_v29  ;;  %3752 = vmatprep.subr.msk.bf16.mxu0 %vm577_vm0, %v4228_v7  ;;  %v466_v5 = vsel %vm322_vm11, %v250_v28, %v394_v31  ;;  %vm325_vm14 = vcmp.ge.f32.partialorder %v253_v13, 0.0  ;;  %vm327_vm15 = vcmp.ge.f32.partialorder %v255_v44, 0.0 }
  0x6f   : > { %v1094_v9 = vsel %vm4107_vm13, %v1089_v6, %v1093_v48  ;;  %v1107_v2 = vrot.slane %v1105_v36, 5  ;;  %v3306_v45 = vpack.c.bf16 %v466_v5, %v466_v5  ;;  %v468_v63 = vsel %vm324_vm12, %v252_v22, %v396_v23 }
  0x70   : > { %v3071_v59 = vcombine.low %v1080_v30, %v1094_v9  ;;  %v3358_v37 = vpack.c.bf16 %v468_v63, %v468_v63  ;;  %v397_v35 = vmul.f32 0.2, %v253_v13  ;;  %v399_v4 = vmul.f32 0.2, %v255_v44  ;;  %v193_v30 = vld [vmem:[%s3848_s30 + $0xc0] ss:$8 sps:$4 sm:$0xff]  }
  0x71   : > { %v1108_v29 = vsel %vm4107_vm13, %v1103_v47, %v1107_v2  ;;  %v1119_v32 = vshll.u32 %v3306_v45, 16  ;;  %v2236_v57 = vrot.slane %v2235_v40, 4  ;;  %v257_v58 = vunpack.c.l.bf16 %v185_v56  ;;  %v201_v2 = vld [vmem:[%s3848_s30 + $0xe0] ss:$8 sps:$4 sm:$0xff]  }
  0x72   : > { %3495 = vmatprep.mubr.msk.bf16.mxu1 %vm564_vm1, %v3071_v59  ;;  %v3179_v27 = vcombine.low %v1094_v9, %v1108_v29  ;;  %v2238_v17 = vshll.u32 %v3358_v37, 16  ;;  %v469_v51 = vsel %vm325_vm14, %v253_v13, %v397_v35  ;;  %v471_v34 = vsel %vm327_vm15, %v255_v44, %v399_v4  ;;  %v197_v13 = vld [vmem:[%s3848_s30 + $0xd0] ss:$8 sps:$4 sm:$0xff]  }
  0x73   : > { %v259_v39 = vunpack.c.h.bf16 %v185_v56  ;;  %v1121_v46 = vrot.slane %v1119_v32, 5  ;;  %v3315_v38 = vpack.c.bf16 %v469_v51, %v469_v51  ;;  %v3317_v11 = vpack.c.bf16 %v471_v34, %v471_v34 }
  0x74   : > { %3575 = vmatprep.mubr.msk.bf16.mxu0 %vm564_vm1, %v3179_v27  ;;  %v261_v24 = vunpack.c.l.bf16 %v189_v1  ;;  %v2240_v20 = vrot.slane %v2238_v17, 5  ;;  %v3307_v33 = vpack.c.bf16 %v471_v34, %v469_v51  ;;  %vm329_vm2 = vcmp.ge.f32.partialorder %v257_v58, 0.0  ;;  %v4284_v27 = vld [vmem:[%s4593_s1 + $0x1c] sm:$0x3] }
  0x75   : > { %v1122_v14 = vsel %vm4107_vm13, %v1117_v62, %v1121_v46  ;;  %v1470_v10 = vshrl.u32 %v3315_v38, 16  ;;  %v1473_v54 = vshll.u32 %v3315_v38, 16  ;;  %v1484_v55 = vshrl.u32 %v3317_v11, 16  ;;  %v205_v46 = vld [vmem:[%s3848_s30 + $0xf0] ss:$8 sps:$4 sm:$0xff]  }
  0x76   : > { %v3072_v41 = vcombine.low %v1108_v29, %v1122_v14  ;;  %v2241_v42 = vsel %vm4107_vm13, %v2236_v57, %v2240_v20  ;;  %v401_v3 = vmul.f32 0.2, %v257_v58  ;;  %v1487_v25 = vshll.u32 %v3317_v11, 16  ;;  %v4278_v29 = vld [vmem:[%s4593_s1 + $0xc] sm:$0x3] }
  0x77   : > { %v3180_v19 = vcombine.low %v1122_v14, %v2241_v42  ;;  %vm331_vm3 = vcmp.ge.f32.partialorder %v259_v39, 0.0  ;;  %vm333_vm4 = vcmp.ge.f32.partialorder %v261_v24, 0.0  ;;  %v4254_v43 = vrot.slane %v1470_v10, 4 }
  0x78   : > { %3496 = vmatmul.mubr.msk.bf16.gmra.mrb[4].mxu1 %vm564_vm1, %v3072_v41  ;;  %v403_v60 = vmul.f32 0.2, %v259_v39  ;;  %v405_v21 = vmul.f32 0.2, %v261_v24  ;;  %v473_v53 = vsel %vm329_vm2, %v257_v58, %v401_v3  ;;  %v4259_v16 = vrot.slane %v1473_v54, 5 }
  0x79   : > { %3576 = vmatmul.mubr.msk.bf16.gmra.mrb[4].mxu0 %vm564_vm1, %v3180_v19  ;;  %3501 = vmatprep.mubr.msk.bf16.mxu1 %vm564_vm1, %v3307_v33  ;;  %v4261_v61 = vrot.slane %v1484_v55, 4  ;;  %v3319_v6 = vpack.c.bf16 %v473_v53, %v473_v53  ;;  %v3359_v18 = vpack.c.bf16 %v473_v53, %v471_v34  ;;  %v263_v28 = vunpack.c.h.bf16 %v189_v1 }
  0x7a   : > { %v475_v15 = vsel %vm331_vm3, %v259_v39, %v403_v60  ;;  %v477_v0 = vsel %vm333_vm4, %v261_v24, %v405_v21  ;;  %v265_v50 = vunpack.c.l.bf16 %v193_v30  ;;  %v4263_v26 = vrot.slane %v1487_v25, 5 }
  0x7b   : > { %v3308_v12 = vpack.c.bf16 %v475_v15, %v473_v53  ;;  %3581 = vmatprep.mubr.msk.bf16.mxu0 %vm564_vm1, %v3359_v18  ;;  %v1370_v47 = vsel %vm577_vm0, %v4223_v52, 0  ;;  %v2454_v22 = vsel %vm577_vm0, %v4228_v7, 0  ;;  %v4271_v44 = vpack.c.bf16 %v475_v15, %v475_v15 }
  0x7c   : > { %v1498_v49 = vshrl.u32 %v3319_v6, 16  ;;  %vm335_vm5 = vcmp.ge.f32.partialorder %v263_v28, 0.0  ;;  %v407_v48 = vmul.f32 0.2, %v263_v28  ;;  %v3360_v36 = vpack.c.bf16 %v477_v0, %v475_v15 }
  0x7d   : > { %vm337_vm6 = vcmp.ge.f32.partialorder %v265_v50, 0.0  ;;  %v409_v31 = vmul.f32 0.2, %v265_v50  ;;  %v267_v62 = vunpack.c.h.bf16 %v193_v30  ;;  %v1501_v23 = vshll.u32 %v3319_v6, 16 }
  0x7e   : > { %v479_v40 = vsel %vm335_vm5, %v263_v28, %v407_v48  ;;  %v269_v9 = vunpack.c.l.bf16 %v197_v13  ;;  %v271_v5 = vunpack.c.h.bf16 %v197_v13  ;;  %v273_v1 = vunpack.c.l.bf16 %v201_v2 }
  0x7f   : > { %v3309_v56 = vpack.c.bf16 %v479_v40, %v477_v0  ;;  %v3325_v52 = vpack.c.bf16 %v479_v40, %v479_v40  ;;  %v481_v59 = vsel %vm337_vm6, %v265_v50, %v409_v31  ;;  %vm339_vm7 = vcmp.ge.f32.partialorder %v267_v62, 0.0 }
  0x80   : > { %3502 = vmatmul.mubr.msk.bf16.vlgmr.msra.gmra.mrb[0].mxu1 %vm564_vm1, %v3308_v12  ;;  %v3327_v7 = vpack.c.bf16 %v481_v59, %v481_v59  ;;  %v3361_v45 = vpack.c.bf16 %v481_v59, %v479_v40  ;;  %v411_v63 = vmul.f32 0.2, %v267_v62  ;;  %vm341_vm8 = vcmp.ge.f32.partialorder %v269_v9, 0.0 }
  0x81   : > { %3510 = vmatpush3.bf16.msra.mxu1 %v1370_v47  ;;  %3582 = vmatmul.mubr.msk.bf16.vlgmr.msra.gmra.mrb[0].mxu0 %vm564_vm1, %v3360_v36  ;;  %v1540_v37 = vshrl.u32 %v3325_v52, 16  ;;  %v1543_v35 = vshll.u32 %v3325_v52, 16  ;;  %v413_v4 = vmul.f32 0.2, %v269_v9  ;;  %v4286_v32 = vpack.c.bf16 %v477_v0, %v477_v0 }
  0x82   : > { %v4288_v57 = vrot.slane %v1498_v49, 4  ;;  %v4290_v58 = vrot.slane %v1501_v23, 5  ;;  %3590 = vmatpush3.bf16.msra.mxu0 %v2454_v22  ;;  %3505 = vmatprep.mubr.msk.bf16.mxu1 %vm564_vm1, %v3309_v56  ;;  %v483_v17 = vsel %vm339_vm7, %v267_v62, %v411_v63  ;;  %v1554_v51 = vshrl.u32 %v3327_v7, 16 }
  0x83   : > { %v1557_v34 = vshll.u32 %v3327_v7, 16  ;;  %3585 = vmatprep.mubr.msk.bf16.mxu0 %vm564_vm1, %v3361_v45  ;;  %v3329_v39 = vpack.c.bf16 %v483_v17, %v483_v17  ;;  %vm343_vm9 = vcmp.ge.f32.partialorder %v271_v5, 0.0  ;;  %3745 = vmatprep.subr.msk.bf16.mxu1 %vm577_vm0, %v4278_v29  ;;  %v4298_v38 = vrot.slane %v1540_v37, 4  ;;  %v213_v7 = vld [vmem:[%s3848_s30 + $0x110] ss:$8 sps:$4 sm:$0xff]  }
  0x84   : > { %v4300_v11 = vrot.slane %v1543_v35, 5  ;;  %v3310_v24 = vpack.c.bf16 %v483_v17, %v481_v59  ;;  %v485_v20 = vsel %vm341_vm8, %v269_v9, %v413_v4  ;;  %3753 = vmatprep.subr.msk.bf16.mxu0 %vm577_vm0, %v4284_v27  ;;  %vm345_vm10 = vcmp.ge.f32.partialorder %v273_v1, 0.0  ;;  %v4334_v4 = vld [vmem:[%s4593_s1 + $0xe] sm:$0x3] }
  0x85   : > { %v1568_v33 = vshrl.u32 %v3329_v39, 16  ;;  %v3362_v14 = vpack.c.bf16 %v485_v20, %v483_v17  ;;  %v3367_v10 = vpack.c.bf16 %v485_v20, %v485_v20  ;;  %v415_v54 = vmul.f32 0.2, %v271_v5  ;;  %v182_v20 = vld [vmem:[%s3848_s30 + $0x94] sm:$0x1] }
  0x86   : > { %v417_v55 = vmul.f32 0.2, %v273_v1  ;;  %v275_v41 = vunpack.c.h.bf16 %v201_v2  ;;  %v277_v42 = vunpack.c.l.bf16 %v205_v46  ;;  %v4305_v3 = vrot.slane %v1554_v51, 4  ;;  %v209_v2 = vld [vmem:[%s3848_s30 + $0x100] ss:$8 sps:$4 sm:$0xff]  }
  0x87   : > { %v4307_v19 = vrot.slane %v1557_v34, 5  ;;  %v4309_v25 = vrot.slane %v1568_v33, 4  ;;  %v1571_v30 = vshll.u32 %v3329_v39, 16  ;;  %v2533_v60 = vshrl.u32 %v3367_v10, 16  ;;  %v4350_v33 = vld [vmem:[%s4593_s1 + $0x1e] sm:$0x3] }
  0x88   : > { %3506 = vmatmul.mubr.msk.bf16.gmra.mrb[4].mxu1 %vm564_vm1, %v3310_v24  ;;  %v487_v21 = vsel %vm343_vm9, %v271_v5, %v415_v54  ;;  %v489_v53 = vsel %vm345_vm10, %v273_v1, %v417_v55  ;;  %v279_v6 = vunpack.c.h.bf16 %v205_v46  ;;  %v2536_v18 = vshll.u32 %v3367_v10, 16 }
  0x89   : > { %3586 = vmatmul.mubr.msk.bf16.gmra.mrb[4].mxu0 %vm564_vm1, %v3362_v14  ;;  %v3311_v15 = vpack.c.bf16 %v489_v53, %v487_v21  ;;  %v3331_v0 = vpack.c.bf16 %v487_v21, %v487_v21  ;;  %vm347_vm11 = vcmp.ge.f32.partialorder %v275_v41, 0.0  ;;  %v3333_v28 = vpack.c.bf16 %v489_v53, %v489_v53 }
  0x8a   : > { %vm349_vm12 = vcmp.ge.f32.partialorder %v277_v42, 0.0  ;;  %vm351_vm14 = vcmp.ge.f32.partialorder %v279_v6, 0.0  ;;  %v419_v50 = vmul.f32 0.2, %v275_v41  ;;  %v421_v22 = vmul.f32 0.2, %v277_v42 }
  0x8b   : > { %3511 = vmatprep.mubr.msk.bf16.mxu1 %vm564_vm1, %v3311_v15  ;;  %v1708_v12 = vshrl.u32 %v3331_v0, 16  ;;  %v1711_v47 = vshll.u32 %v3331_v0, 16  ;;  %v423_v13 = vmul.f32 0.2, %v279_v6  ;;  %v4315_v49 = vrot.slane %v1571_v30, 5 }
  0x8c   : > { %v1722_v48 = vshrl.u32 %v3333_v28, 16  ;;  %v1725_v36 = vshll.u32 %v3333_v28, 16  ;;  %v491_v31 = vsel %vm347_vm11, %v275_v41, %v419_v50  ;;  %v4317_v62 = vrot.slane %v2533_v60, 4  ;;  %v184_v30 = vld [vmem:[%s3848_s30 + $0x9c] sm:$0x1] }
  0x8d   : > { %v4319_v23 = vrot.slane %v2536_v18, 5  ;;  %v493_v40 = vsel %vm349_vm12, %v277_v42, %v421_v22  ;;  %v495_v9 = vsel %vm351_vm14, %v279_v6, %v423_v13  ;;  %v4322_v5 = vrot.slane %v1708_v12, 4 }
  0x8e   : > { %v3312_v56 = vpack.c.bf16 %v493_v40, %v491_v31  ;;  %v3335_v52 = vpack.c.bf16 %v491_v31, %v491_v31  ;;  %v1608_v59 = vsel %vm577_vm0, %v4278_v29, 0  ;;  %v4327_v45 = vrot.slane %v1711_v47, 5 }
  0x8f   : > { %v4329_v63 = vrot.slane %v1722_v48, 4  ;;  %v3363_v37 = vpack.c.bf16 %v491_v31, %v489_v53  ;;  %v3364_v35 = vpack.c.bf16 %v495_v9, %v493_v40  ;;  %v4336_v1 = vrot.slane %v1725_v36, 5 }
  0x90   : > { %v4338_v17 = vpack.c.bf16 %v493_v40, %v493_v40  ;;  %3512 = vmatmul.mubr.msk.bf16.vlgmr.msra.gmra.mrb[0].mxu1 %vm564_vm1, %v3312_v56  ;;  %v2566_v29 = vsel %vm577_vm0, %v4284_v27, 0  ;;  %v281_v51 = vunpack.c.l.bf16 %v209_v2  ;;  %v4343_v34 = vpack.c.bf16 %v495_v9, %v495_v9 }
  0x91   : > { %3591 = vmatprep.mubr.msk.bf16.mxu0 %vm564_vm1, %v3363_v37  ;;  %3520 = vmatpush3.bf16.msra.mxu1 %v1608_v59  ;;  %v283_v39 = vunpack.c.h.bf16 %v209_v2  ;;  %v285_v46 = vunpack.c.l.bf16 %v213_v7  ;;  %v287_v24 = vunpack.c.h.bf16 %v213_v7  ;;  %v1736_v14 = vshrl.u32 %v3335_v52, 16  ;;  %v186_v59 = vld [vmem:[%s3848_s30 + $0xa4] sm:$0x1] }
  0x92   : > { %v1739_v10 = vshll.u32 %v3335_v52, 16  ;;  %3592 = vmatmul.mubr.msk.bf16.vlgmr.msra.gmra.mrb[0].mxu0 %vm564_vm1, %v3364_v35  ;;  %vm353_vm15 = vcmp.ge.f32.partialorder %v281_v51, 0.0  ;;  %v425_v27 = vmul.f32 0.2, %v281_v51  ;;  %3746 = vmatprep.subr.msk.bf16.mxu1 %vm577_vm0, %v4334_v4  ;;  %v254_v60 = vunpack.c.l.bf16 %v182_v20 }
  0x93   : > { %3600 = vmatpush3.bf16.msra.mxu0 %v2566_v29  ;;  %vm355_vm2 = vcmp.ge.f32.partialorder %v283_v39, 0.0  ;;  %v427_v54 = vmul.f32 0.2, %v283_v39  ;;  %vm357_vm3 = vcmp.ge.f32.partialorder %v285_v46, 0.0  ;;  %v429_v55 = vmul.f32 0.2, %v285_v46 }
  0x94   : > { %v497_v41 = vsel %vm353_vm15, %v281_v51, %v425_v27  ;;  %vm359_vm4 = vcmp.ge.f32.partialorder %v287_v24, 0.0  ;;  %v431_v42 = vmul.f32 0.2, %v287_v24  ;;  %3754 = vmatprep.subr.msk.bf16.mxu0 %vm577_vm0, %v4350_v33  ;;  %v256_v13 = vunpack.c.l.bf16 %v184_v30  ;;  %v188_v29 = vld [vmem:[%s3848_s30 + $0xac] sm:$0x1] }
  0x95   : > { %v3313_v21 = vpack.c.bf16 %v497_v41, %v495_v9  ;;  %v3341_v53 = vpack.c.bf16 %v497_v41, %v497_v41  ;;  %v499_v6 = vsel %vm355_vm2, %v283_v39, %v427_v54  ;;  %v501_v18 = vsel %vm357_vm3, %v285_v46, %v429_v55 }
  0x96   : > { %v3343_v15 = vpack.c.bf16 %v499_v6, %v499_v6  ;;  %v3365_v0 = vpack.c.bf16 %v499_v6, %v497_v41  ;;  %v3314_v28 = vpack.c.bf16 %v501_v18, %v499_v6  ;;  %v3345_v50 = vpack.c.bf16 %v501_v18, %v501_v18 }
  0x97   : > { %3515 = vmatprep.mubr.msk.bf16.mxu1 %vm564_vm1, %v3313_v21  ;;  %v1778_v12 = vshrl.u32 %v3341_v53, 16  ;;  %v1781_v47 = vshll.u32 %v3341_v53, 16  ;;  %v503_v22 = vsel %vm359_vm4, %v287_v24, %v431_v42  ;;  %v4360_v48 = vrot.slane %v1736_v14, 4 }
  0x98   : > { %v1792_v36 = vshrl.u32 %v3343_v15, 16  ;;  %v1795_v31 = vshll.u32 %v3343_v15, 16  ;;  %3595 = vmatprep.mubr.msk.bf16.mxu0 %vm564_vm1, %v3365_v0  ;;  %3516 = vmatmul.mubr.msk.bf16.gmra.mrb[4].mxu1 %vm564_vm1, %v3314_v28  ;;  %v1806_v40 = vshrl.u32 %v3345_v50, 16  ;;  %v4364_v9 = vrot.slane %v1739_v10, 5  ;;  %v190_v10 = vld [vmem:[%s3848_s30 + $0xb4] sm:$0x1] }
  0x99   : > { %v1809_v2 = vshll.u32 %v3345_v50, 16  ;;  %v3366_v56 = vpack.c.bf16 %v503_v22, %v501_v18  ;;  %v4366_v52 = vpack.c.bf16 %v503_v22, %v503_v22  ;;  %v4369_v7 = vrot.slane %v1778_v12, 4 }
  0x9a   : > { %v4371_v37 = vrot.slane %v1781_v47, 5  ;;  %v4373_v35 = vrot.slane %v1792_v36, 4  ;;  %vm326_vm5 = vcmp.ge.f32.partialorder %v254_v60, 0.0  ;;  %v4376_v51 = vrot.slane %v1795_v31, 5 }
  0x9b   : > { %v4378_v39 = vrot.slane %v1806_v40, 4  ;;  %3596 = vmatmul.mubr.msk.bf16.gmra.mrb[4].mxu0 %vm564_vm1, %v3366_v56  ;;  %vm328_vm6 = vcmp.ge.f32.partialorder %v256_v13, 0.0  ;;  %v398_v46 = vmul.f32 0.2, %v254_v60  ;;  %v400_v24 = vmul.f32 0.2, %v256_v13 }
  0x9c   : > { %v1476_v20 = vor.u32 %v4259_v16, %v4254_v43  ;;  %v1490_v14 = vor.u32 %v4263_v26, %v4261_v61  ;;  %v258_v27 = vunpack.c.l.bf16 %v186_v59  ;;  %v4386_v54 = vrot.slane %v1809_v2, 5 }
  0x9d   : > { %v2645_v55 = vshrl.u32 %v4366_v52, 16  ;;  %v470_v41 = vsel %vm326_vm5, %v254_v60, %v398_v46  ;;  %v260_v42 = vunpack.c.l.bf16 %v188_v29  ;;  %v472_v30 = vsel %vm328_vm6, %v256_v13, %v400_v24 }
  0x9e   : > { %v3316_v21 = vpack.c.bf16 %v470_v41, %v470_v41  ;;  %v1477_v53 = vrot.slane %v1476_v20, 4  ;;  %v1491_v6 = vrot.slane %v1490_v14, 4  ;;  %v3318_v18 = vpack.c.bf16 %v472_v30, %v472_v30  ;;  %v192_v20 = vld [vmem:[%s3848_s30 + $0xbc] sm:$0x1] }
  0x9f   : > { %v262_v15 = vunpack.c.l.bf16 %v190_v10  ;;  %vm330_vm7 = vcmp.ge.f32.partialorder %v258_v27, 0.0  ;;  %vm332_vm8 = vcmp.ge.f32.partialorder %v260_v42, 0.0  ;;  %v402_v16 = vmul.f32 0.2, %v258_v27 }
  0xa0   : > { %v1479_v43 = vshll.u32 %v3316_v21, 16  ;;  %v404_v0 = vmul.f32 0.2, %v260_v42  ;;  %v1504_v61 = vor.u32 %v4290_v58, %v4288_v57  ;;  %v1493_v26 = vshll.u32 %v3318_v18, 16 }
  0xa1   : > { %vm334_vm9 = vcmp.ge.f32.partialorder %v262_v15, 0.0  ;;  %v406_v28 = vmul.f32 0.2, %v262_v15  ;;  %v1512_v60 = vshrl.u32 %v4271_v44, 16  ;;  %v474_v12 = vsel %vm330_vm7, %v258_v27, %v402_v16 }
  0xa2   : > { %v1481_v50 = vrot.slane %v1479_v43, 5  ;;  %v476_v47 = vsel %vm332_vm8, %v260_v42, %v404_v0  ;;  %v1505_v22 = vrot.slane %v1504_v61, 4  ;;  %v1495_v13 = vrot.slane %v1493_v26, 5  ;;  %v194_v42 = vld [vmem:[%s3848_s30 + $0xc4] sm:$0x1] }
  0xa3   : > { %v478_v36 = vsel %vm334_vm9, %v262_v15, %v406_v28  ;;  %v3320_v31 = vpack.c.bf16 %v474_v12, %v474_v12  ;;  %v3322_v40 = vpack.c.bf16 %v476_v47, %v476_v47  ;;  %v1514_v57 = vrot.slane %v1512_v60, 4  ;;  %v198_v12 = vld [vmem:[%s3848_s30 + $0xd4] sm:$0x1] }
  0xa4   : > { %v1482_v2 = vsel %vm4107_vm13, %v1477_v53, %v1481_v50  ;;  %v3324_v56 = vpack.c.bf16 %v478_v36, %v478_v36  ;;  %v1515_v58 = vshll.u32 %v4271_v44, 16  ;;  %v1496_v59 = vsel %vm4107_vm13, %v1491_v6, %v1495_v13  ;;  %v196_v50 = vld [vmem:[%s3848_s30 + $0xcc] sm:$0x1] }
  0xa5   : > { %v1507_v29 = vshll.u32 %v3320_v31, 16  ;;  %v1521_v46 = vshll.u32 %v3322_v40, 16  ;;  %v1526_v24 = vshrl.u32 %v4286_v32, 16  ;;  %v3112_v14 = vcombine.low %v1482_v2, %v1496_v59 }
  0xa6   : > { %v1517_v10 = vrot.slane %v1515_v58, 5  ;;  %v1529_v27 = vshll.u32 %v4286_v32, 16  ;;  %v1535_v41 = vshll.u32 %v3324_v56, 16  ;;  %v1846_v44 = vsel %vm577_vm0, %v4334_v4, 0  ;;  %v200_v58 = vld [vmem:[%s3848_s30 + $0xdc] sm:$0x1] }
  0xa7   : > { %v1509_v30 = vrot.slane %v1507_v29, 5  ;;  %v1523_v21 = vrot.slane %v1521_v46, 5  ;;  %v1528_v53 = vrot.slane %v1526_v24, 4  ;;  %3521 = vmatprep.mubr.msk.bf16.mxu1 %vm564_vm1, %v3112_v14  ;;  %v2678_v43 = vsel %vm577_vm0, %v4350_v33, 0  ;;  %v202_v24 = vld [vmem:[%s3848_s30 + $0xe4] sm:$0x1] }
  0xa8   : > { %v1518_v6 = vor.u32 %v1517_v10, %v1514_v57  ;;  %v1531_v18 = vrot.slane %v1529_v27, 5  ;;  %v1537_v15 = vrot.slane %v1535_v41, 5  ;;  %v264_v16 = vunpack.c.l.bf16 %v192_v20 }
  0xa9   : > { %v1510_v32 = vsel %vm4107_vm13, %v1505_v22, %v1509_v30  ;;  %v1546_v0 = vor.u32 %v4300_v11, %v4298_v38  ;;  %v266_v61 = vunpack.c.l.bf16 %v194_v42  ;;  %v1560_v4 = vor.u32 %v4307_v19, %v4305_v3 }
  0xaa   : > { %v1519_v26 = vrot.slane %v1518_v6, 4  ;;  %v1532_v28 = vor.u32 %v1531_v18, %v1528_v53  ;;  %v3206_v60 = vcombine.low %v1496_v59, %v1510_v32  ;;  %vm336_vm10 = vcmp.ge.f32.partialorder %v264_v16, 0.0 }
  0xab   : > { %v408_v47 = vmul.f32 0.2, %v264_v16  ;;  %v1547_v33 = vrot.slane %v1546_v0, 4  ;;  %vm338_vm0 = vcmp.ge.f32.partialorder %v266_v61, 0.0  ;;  %v410_v38 = vmul.f32 0.2, %v266_v61 }
  0xac   : > { %v1524_v22 = vsel %vm4107_vm13, %v1519_v26, %v1523_v21  ;;  %v1533_v13 = vrot.slane %v1532_v28, 4  ;;  %3601 = vmatprep.mubr.msk.bf16.mxu0 %vm564_vm1, %v3206_v60  ;;  %v1561_v11 = vrot.slane %v1560_v4, 4  ;;  %v268_v40 = vunpack.c.l.bf16 %v196_v50 }
  0xad   : > { %v3113_v36 = vcombine.low %v1510_v32, %v1524_v22  ;;  %v480_v31 = vsel %vm336_vm10, %v264_v16, %v408_v47  ;;  %v1574_v3 = vor.u32 %v4315_v49, %v4309_v25  ;;  %v482_v56 = vsel %vm338_vm0, %v266_v61, %v410_v38  ;;  %v204_v61 = vld [vmem:[%s3848_s30 + $0xec] sm:$0x1] }
  0xae   : > { %v1538_v19 = vsel %vm4107_vm13, %v1533_v13, %v1537_v15  ;;  %v3326_v2 = vpack.c.bf16 %v480_v31, %v480_v31  ;;  %v270_v57 = vunpack.c.l.bf16 %v198_v12  ;;  %v3328_v29 = vpack.c.bf16 %v482_v56, %v482_v56  ;;  %v208_v13 = vld [vmem:[%s3848_s30 + $0xfc] sm:$0x1] }
  0xaf   : > { %v3207_v59 = vcombine.low %v1524_v22, %v1538_v19  ;;  %3522 = vmatmul.mubr.msk.bf16.vlgmr.msra.gmra.mrb[0].mxu1 %vm564_vm1, %v3113_v36  ;;  %vm340_vm11 = vcmp.ge.f32.partialorder %v268_v40, 0.0  ;;  %v412_v46 = vmul.f32 0.2, %v268_v40  ;;  %v1575_v14 = vrot.slane %v1574_v3, 4  ;;  %v206_v22 = vld [vmem:[%s3848_s30 + $0xf4] sm:$0x1] }
  0xb0   : > { %3530 = vmatpush3.bf16.msra.mxu1 %v1846_v44  ;;  %v1549_v20 = vshll.u32 %v3326_v2, 16  ;;  %vm342_vm12 = vcmp.ge.f32.partialorder %v270_v57, 0.0  ;;  %v414_v10 = vmul.f32 0.2, %v270_v57  ;;  %v1563_v25 = vshll.u32 %v3328_v29, 16 }
  0xb1   : > { %3602 = vmatmul.mubr.msk.bf16.vlgmr.msra.gmra.mrb[0].mxu0 %vm564_vm1, %v3207_v59  ;;  %v484_v49 = vsel %vm340_vm11, %v268_v40, %v412_v46  ;;  %v2539_v27 = vor.u32 %v4319_v23, %v4317_v62  ;;  %v272_v41 = vunpack.c.l.bf16 %v200_v58  ;;  %v274_v53 = vunpack.c.l.bf16 %v202_v24 }
  0xb2   : > { %3610 = vmatpush3.bf16.msra.mxu0 %v2678_v43  ;;  %v1551_v42 = vrot.slane %v1549_v20, 5  ;;  %v3330_v30 = vpack.c.bf16 %v484_v49, %v484_v49  ;;  %v486_v21 = vsel %vm342_vm12, %v270_v57, %v414_v10  ;;  %v1565_v6 = vrot.slane %v1563_v25, 5 }
  0xb3   : > { %v3368_v44 = vpack.c.bf16 %v486_v21, %v486_v21  ;;  %v2540_v18 = vrot.slane %v2539_v27, 4  ;;  %vm344_vm14 = vcmp.ge.f32.partialorder %v272_v41, 0.0  ;;  %vm346_vm15 = vcmp.ge.f32.partialorder %v274_v53, 0.0 }
  0xb4   : > { %v1552_v15 = vsel %vm4107_vm13, %v1547_v33, %v1551_v42  ;;  %v1577_v32 = vshll.u32 %v3330_v30, 16  ;;  %v416_v16 = vmul.f32 0.2, %v272_v41  ;;  %v1566_v23 = vsel %vm4107_vm13, %v1561_v11, %v1565_v6 }
  0xb5   : > { %v3114_v62 = vcombine.low %v1538_v19, %v1552_v15  ;;  %v2542_v43 = vshll.u32 %v3368_v44, 16  ;;  %v418_v0 = vmul.f32 0.2, %v274_v53  ;;  %v3208_v26 = vcombine.low %v1552_v15, %v1566_v23 }
  0xb6   : > { %v1579_v28 = vrot.slane %v1577_v32, 5  ;;  %v488_v60 = vsel %vm344_vm14, %v272_v41, %v416_v16  ;;  %v1714_v4 = vor.u32 %v4327_v45, %v4322_v5  ;;  %v1728_v33 = vor.u32 %v4336_v1, %v4329_v63 }
  0xb7   : > { %3525 = vmatprep.mubr.msk.bf16.mxu1 %vm564_vm1, %v3114_v62  ;;  %v2544_v50 = vrot.slane %v2542_v43, 5  ;;  %v490_v12 = vsel %vm346_vm15, %v274_v53, %v418_v0  ;;  %v3332_v47 = vpack.c.bf16 %v488_v60, %v488_v60  ;;  %3605 = vmatprep.mubr.msk.bf16.mxu0 %vm564_vm1, %v3208_v26  ;;  %v276_v31 = vunpack.c.l.bf16 %v204_v61  ;;  %v212_v61 = vld [vmem:[%s3848_s30 + $0x10c] sm:$0x1]  ;;  %v214_v60 = vld [vmem:[%s3848_s30 + $0x114] sm:$0x1] }
  0xb8   : > { %v1580_v38 = vsel %vm4107_vm13, %v1575_v14, %v1579_v28  ;;  %v3334_v11 = vpack.c.bf16 %v490_v12, %v490_v12  ;;  %v1715_v36 = vrot.slane %v1714_v4, 4  ;;  %v1729_v3 = vrot.slane %v1728_v33, 4 }
  0xb9   : > { %v3115_v40 = vcombine.low %v1566_v23, %v1580_v38  ;;  %v2545_v5 = vsel %vm4107_vm13, %v2540_v18, %v2544_v50  ;;  %v1717_v45 = vshll.u32 %v3332_v47, 16  ;;  %v278_v56 = vunpack.c.l.bf16 %v206_v22 }
  0xba   : > { %v3209_v19 = vcombine.low %v1580_v38, %v2545_v5  ;;  %v1731_v2 = vshll.u32 %v3334_v11, 16  ;;  %v280_v63 = vunpack.c.l.bf16 %v208_v13  ;;  %vm348_vm2 = vcmp.ge.f32.partialorder %v276_v31, 0.0 }
  0xbb   : > { %3526 = vmatmul.mubr.msk.bf16.gmra.mrb[4].mxu1 %vm564_vm1, %v3115_v40  ;;  %v1719_v1 = vrot.slane %v1717_v45, 5  ;;  %v420_v57 = vmul.f32 0.2, %v276_v31  ;;  %v1742_v58 = vor.u32 %v4364_v9, %v4360_v48  ;;  %vm350_vm3 = vcmp.ge.f32.partialorder %v278_v56, 0.0  ;;  %v210_v48 = vld [vmem:[%s3848_s30 + $0x104] sm:$0x1] }
  0xbc   : > { %3606 = vmatmul.mubr.msk.bf16.gmra.mrb[4].mxu0 %vm564_vm1, %v3209_v19  ;;  %v1733_v59 = vrot.slane %v1731_v2, 5  ;;  %vm352_vm4 = vcmp.ge.f32.partialorder %v280_v63, 0.0  ;;  %v422_v29 = vmul.f32 0.2, %v278_v56  ;;  %v424_v24 = vmul.f32 0.2, %v280_v63 }
  0xbd   : > { %v1720_v46 = vsel %vm4107_vm13, %v1715_v36, %v1719_v1  ;;  %v492_v20 = vsel %vm348_vm2, %v276_v31, %v420_v57  ;;  %v1743_v14 = vrot.slane %v1742_v58, 4  ;;  %v1750_v27 = vshrl.u32 %v4338_v17, 16 }
  0xbe   : > { %v1734_v10 = vsel %vm4107_vm13, %v1729_v3, %v1733_v59  ;;  %v494_v25 = vsel %vm350_vm3, %v278_v56, %v422_v29  ;;  %v3336_v49 = vpack.c.bf16 %v492_v20, %v492_v20  ;;  %v496_v41 = vsel %vm352_vm4, %v280_v63, %v424_v24  ;;  %v216_v3 = vld [vmem:[%s3848_s30 + $0x11c] sm:$0x1] }
  0xbf   : > { %v3137_v9 = vcombine.low %v1720_v46, %v1734_v10  ;;  %v3338_v42 = vpack.c.bf16 %v494_v25, %v494_v25  ;;  %v1753_v30 = vshll.u32 %v4338_v17, 16  ;;  %v3340_v21 = vpack.c.bf16 %v496_v41, %v496_v41 }
  0xc0   : > { %v1745_v53 = vshll.u32 %v3336_v49, 16  ;;  %v1752_v6 = vrot.slane %v1750_v27, 4  ;;  %v1764_v44 = vshrl.u32 %v4343_v34, 16  ;;  %v1767_v32 = vshll.u32 %v4343_v34, 16 }
  0xc1   : > { %3531 = vmatprep.mubr.msk.bf16.mxu1 %vm564_vm1, %v3137_v9  ;;  %v1755_v18 = vrot.slane %v1753_v30, 5  ;;  %v1759_v15 = vshll.u32 %v3338_v42, 16  ;;  %v282_v16 = vunpack.c.l.bf16 %v210_v48  ;;  %v2648_v62 = vshll.u32 %v4366_v52, 16 }
  0xc2   : > { %v1747_v23 = vrot.slane %v1745_v53, 5  ;;  %v1766_v43 = vrot.slane %v1764_v44, 4  ;;  %v1773_v0 = vshll.u32 %v3340_v21, 16  ;;  %v1769_v28 = vrot.slane %v1767_v32, 5 }
  0xc3   : > { %v1756_v17 = vor.u32 %v1755_v18, %v1752_v6  ;;  %v1761_v26 = vrot.slane %v1759_v15, 5  ;;  %vm354_vm5 = vcmp.ge.f32.partialorder %v282_v16, 0.0  ;;  %v426_v12 = vmul.f32 0.2, %v282_v16 }
  0xc4   : > { %v1748_v4 = vsel %vm4107_vm13, %v1743_v14, %v1747_v23  ;;  %v1775_v50 = vrot.slane %v1773_v0, 5  ;;  %v1784_v34 = vor.u32 %v4371_v37, %v4369_v7  ;;  %v1770_v33 = vor.u32 %v1769_v28, %v1766_v43 }
  0xc5   : > { %v1757_v47 = vrot.slane %v1756_v17, 4  ;;  %v3217_v22 = vcombine.low %v1734_v10, %v1748_v4  ;;  %v284_v13 = vunpack.c.l.bf16 %v212_v61  ;;  %v2647_v38 = vrot.slane %v2645_v55, 4 }
  0xc6   : > { %v2650_v11 = vrot.slane %v2648_v62, 5  ;;  %v498_v36 = vsel %vm354_vm5, %v282_v16, %v426_v12  ;;  %v286_v31 = vunpack.c.l.bf16 %v214_v60  ;;  %v1771_v5 = vrot.slane %v1770_v33, 4 }
  0xc7   : > { %v1762_v40 = vsel %vm4107_vm13, %v1757_v47, %v1761_v26  ;;  %3611 = vmatprep.mubr.msk.bf16.mxu0 %vm564_vm1, %v3217_v22  ;;  %v3342_v45 = vpack.c.bf16 %v498_v36, %v498_v36  ;;  %vm356_vm6 = vcmp.ge.f32.partialorder %v284_v13, 0.0  ;;  %v1785_v37 = vrot.slane %v1784_v34, 4 }
  0xc8   : > { %v3138_v7 = vcombine.low %v1748_v4, %v1762_v40  ;;  %v428_v19 = vmul.f32 0.2, %v284_v13  ;;  %vm358_vm7 = vcmp.ge.f32.partialorder %v286_v31, 0.0  ;;  %v1776_v52 = vsel %vm4107_vm13, %v1771_v5, %v1775_v50 }
  0xc9   : > { %v1787_v55 = vshll.u32 %v3342_v45, 16  ;;  %v1798_v2 = vor.u32 %v4376_v51, %v4373_v35  ;;  %v430_v56 = vmul.f32 0.2, %v286_v31  ;;  %v3218_v63 = vcombine.low %v1762_v40, %v1776_v52 }
  0xca   : > { %3532 = vmatmul.mubr.msk.bf16.vlgmr.msra.gmra.mrb[0].mxu1 %vm564_vm1, %v3138_v7  ;;  %v500_v1 = vsel %vm356_vm6, %v284_v13, %v428_v19  ;;  %v1812_v57 = vor.u32 %v4386_v54, %v4378_v39  ;;  %v288_v58 = vunpack.c.l.bf16 %v216_v3  ;;  %v2651_v10 = vor.u32 %v2650_v11, %v2647_v38 }
  0xcb   : > { %v1789_v59 = vrot.slane %v1787_v55, 5  ;;  %v3344_v29 = vpack.c.bf16 %v500_v1, %v500_v1  ;;  %v502_v46 = vsel %vm358_vm7, %v286_v31, %v430_v56  ;;  %3612 = vmatmul.mubr.msk.bf16.vlgmr.msra.gmra.mrb[0].mxu0 %vm564_vm1, %v3218_v63  ;;  %v1799_v51 = vrot.slane %v1798_v2, 4 }
  0xcc   : > { %v3346_v24 = vpack.c.bf16 %v502_v46, %v502_v46  ;;  %vm360_vm8 = vcmp.ge.f32.partialorder %v288_v58, 0.0  ;;  %v432_v20 = vmul.f32 0.2, %v288_v58  ;;  %v1813_v49 = vrot.slane %v1812_v57, 4 }
  0xcd   : > { %v1790_v35 = vsel %vm4107_vm13, %v1785_v37, %v1789_v59  ;;  %v1801_v14 = vshll.u32 %v3344_v29, 16  ;;  %v2652_v42 = vrot.slane %v2651_v10, 4  ;;  %v3774_v8 = vmov 0  }
  0xce   : > { %v3139_v25 = vcombine.low %v1776_v52, %v1790_v35  ;;  %v1815_v27 = vshll.u32 %v3346_v24, 16  ;;  %v504_v48 = vsel %vm360_vm8, %v288_v58, %v432_v20  ;;  %2767 = vst [vmem:[%s4495_s24 + $0x18] sm:$0xf] %v3774_v8  ;;  %2768 = vst [vmem:[%s4495_s24 + $0x1c] sm:$0x1] %v3774_v8  ;;  %vm2900_vm9 = vcmask 1040384  }
  0xcf   : > { %v1803_v39 = vrot.slane %v1801_v14, 5  ;;  %v3370_v54 = vpack.c.bf16 %v504_v48, %v504_v48  ;;  %2761 = vst [vmem:[%s4495_s24] sm:$0xf] %v3774_v8  ;;  %2762 = vst [vmem:[%s4495_s24 + $0x4] sm:$0x1] %v3774_v8  ;;  %vm2901_vm10 = vsmask.f32 256 }
  0xd0   : > { %3535 = vmatprep.mubr.msk.bf16.mxu1 %vm564_vm1, %v3139_v25  ;;  %v1817_v9 = vrot.slane %v1815_v27, 5  ;;  %2763 = vst [vmem:[%s4495_s24 + $0x8] sm:$0xf] %v3774_v8  ;;  %2764 = vst [vmem:[%s4495_s24 + $0xc] sm:$0x1] %v3774_v8 }
  0xd1   : > { %v1804_v41 = vsel %vm4107_vm13, %v1799_v51, %v1803_v39  ;;  %v2654_v30 = vshll.u32 %v3370_v54, 16  ;;  %2765 = vst [vmem:[%s4495_s24 + $0x10] sm:$0xf] %v3774_v8  ;;  %2766 = vst [vmem:[%s4495_s24 + $0x14] sm:$0x1] %v3774_v8 }
  0xd2   : > { %v3219_v21 = vcombine.low %v1790_v35, %v1804_v41  ;;  %v1818_v53 = vsel %vm4107_vm13, %v1813_v49, %v1817_v9  ;;  %2769 = vst [vmem:[%s4495_s24 + $0x20] sm:$0xf] %v3774_v8  ;;  %2770 = vst [vmem:[%s4495_s24 + $0x24] sm:$0x1] %v3774_v8 }
  0xd3   : > { %v3140_v6 = vcombine.low %v1804_v41, %v1818_v53  ;;  %v2656_v44 = vrot.slane %v2654_v30, 5  ;;  %2771 = vst [vmem:[%s4495_s24 + $0x28] sm:$0xf] %v3774_v8  ;;  %2772 = vst [vmem:[%s4495_s24 + $0x2c] sm:$0x1] %v3774_v8 }
  0xd4   : > { %3615 = vmatprep.mubr.msk.bf16.mxu0 %vm564_vm1, %v3219_v21  ;;  %2773 = vst [vmem:[%s4495_s24 + $0x30] sm:$0xf] %v3774_v8  ;;  %2774 = vst [vmem:[%s4495_s24 + $0x34] sm:$0x1] %v3774_v8 }
  0xd5   : > { %3536 = vmatmul.mubr.msk.bf16.gmra.mrb[4].mxu1 %vm564_vm1, %v3140_v6  ;;  %v2657_v18 = vsel %vm4107_vm13, %v2652_v42, %v2656_v44  ;;  %2775 = vst [vmem:[%s4495_s24 + $0x38] sm:$0xf] %v3774_v8  ;;  %2776 = vst [vmem:[%s4495_s24 + $0x3c] sm:$0x1] %v3774_v8  ;;  %vm2895_vm13 = vsmask.f32 7938 }
  0xd6   : > { %v3220_v15 = vcombine.low %v1818_v53, %v2657_v18  ;;  %2777 = vst [vmem:[%s4495_s24 + $0x40] sm:$0xf] %v3774_v8  ;;  %2778 = vst [vmem:[%s4495_s24 + $0x44] sm:$0x1] %v3774_v8  ;;  %v3241_v11 = vld [vmem:[%s4495_s24 + $0x18] sm:$0xf] }
  0xd7   : > { %2779 = vst [vmem:[%s4495_s24 + $0x48] sm:$0xf] %v3774_v8  ;;  %2780 = vst [vmem:[%s4495_s24 + $0x4c] sm:$0x1] %v3774_v8  ;;  %v3243_v36 = vld [vmem:[%s4495_s24 + $0x1c] sm:$0x1] }
  0xd8   : > { %3616 = vmatmul.mubr.msk.bf16.gmra.mrb[4].mxu0 %vm564_vm1, %v3220_v15  ;;  %vm2894_vm1 = vcmask 1043456   ;;  %v3233_v7 = vld [vmem:[%s4495_s24 + $0x8] sm:$0xf]  ;;  %v3235_v37 = vld [vmem:[%s4495_s24 + $0xc] sm:$0x1]  ;;  %vm4525_vm11 = vmand %vm2900_vm9, %vm2901_vm10 }
  0xd9   : > { %vm4519_vm0 = vmand %vm2894_vm1, %vm2895_vm13  ;;  %v3245_v63 = vld [vmem:[%s4495_s24 + $0x20] sm:$0xf]  ;;  %v3247_v24 = vld [vmem:[%s4495_s24 + $0x24] sm:$0x1] }
  0xda   : > { %v3237_v9 = vld [vmem:[%s4495_s24 + $0x10] sm:$0xf]  ;;  %v3239_v41 = vld [vmem:[%s4495_s24 + $0x14] sm:$0x1] }
 0x19d   : > { %v3533_v32 = vpop.f32.mrb[0].mxu1 }
 0x19e   : > { %v1882_v16 = vpop.f32.mrb[1].mxu1  ;;  %v3613_v62 = vpop.f32.mrb[0].mxu0 }
 0x19f   : > { %v3534_v23 = vpop.f32.mrb[2].mxu1  ;;  %v3619_v43 = vadd.f32 %v3613_v62, %v3533_v32  ;;  %v2714_v0 = vpop.f32.mrb[1].mxu0 }
 0x1a0   : > { %v1885_v61 = vpop.f32.mrb[3].mxu1  ;;  %v3620_v17 = vadd.f32 %v2714_v0, %v1882_v16  ;;  %v3614_v26 = vpop.f32.mrb[2].mxu0 }
 0x1a1   : > { %v2755_v28 = vmax.f32 %v3619_v43, 0.0  ;;  %v3621_v60 = vadd.f32 %v3614_v26, %v3534_v23  ;;  %v2717_v4 = vpop.f32.mrb[3].mxu0 }
 0x1a2   : > { %v2753_v50 = vmax.f32 %v3620_v17, 0.0  ;;  %v3622_v12 = vadd.f32 %v2717_v4, %v1885_v61 }
 0x1a3   : > { %v3373_v34 = vpack.c.bf16 %v2755_v28, %v2755_v28  ;;  %v2756_v47 = vmax.f32 %v3621_v60, 0.0 }
 0x1a4   : > { %v3371_v33 = vpack.c.bf16 %v2753_v50, %v2753_v50  ;;  %v2754_v22 = vmax.f32 %v3622_v12, 0.0 }
 0x1a5   : > { %v2830_v13 = vshrl.u32 %v3373_v34, 16  ;;  %v3374_v38 = vpack.c.bf16 %v2756_v47, %v2756_v47  ;;  %v2833_v45 = vshll.u32 %v3373_v34, 16 }
 0x1a6   : > { %v2814_v31 = vshrl.u32 %v3371_v33, 16  ;;  %v3372_v40 = vpack.c.bf16 %v2754_v22, %v2754_v22  ;;  %v2817_v56 = vshll.u32 %v3371_v33, 16  ;;  %v3257_v33 = vld [vmem:[%s4495_s24 + $0x38] sm:$0xf]  ;;  %v3259_v22 = vld [vmem:[%s4495_s24 + $0x3c] sm:$0x1] }
 0x1a7   : > { %v2832_v5 = vrot.slane %v2830_v13, 7  ;;  %v2838_v19 = vshrl.u32 %v3374_v38, 16  ;;  %v2841_v46 = vshll.u32 %v3374_v38, 16  ;;  %v3249_v13 = vld [vmem:[%s4495_s24 + $0x28] sm:$0xf] }
 0x1a8   : > { %v3537_v52 = vpop.f32.mrb[4].mxu1  ;;  %v2816_v2 = vrot.slane %v2814_v31, 7  ;;  %v2822_v1 = vshrl.u32 %v3372_v40, 16  ;;  %v2825_v10 = vshll.u32 %v3372_v40, 16  ;;  %v3251_v38 = vld [vmem:[%s4495_s24 + $0x2c] sm:$0x1] }
 0x1a9   : > { %v1898_v57 = vpop.f32.mrb[5].mxu1  ;;  %v2835_v58 = vor.u32 %v2833_v45, %v2832_v5  ;;  %v2836_v59 = vrot.slane %v2832_v5, 4  ;;  %v2840_v29 = vrot.slane %v2838_v19, 7 }
 0x1aa   : > { %v3538_v20 = vpop.f32.mrb[6].mxu1  ;;  %v2819_v35 = vor.u32 %v2817_v56, %v2816_v2  ;;  %v2820_v51 = vrot.slane %v2816_v2, 4  ;;  %v2824_v14 = vrot.slane %v2822_v1, 7 }
 0x1ab   : > { %v3617_v25 = vpop.f32.mrb[4].mxu0  ;;  %v1901_v49 = vpop.f32.mrb[7].mxu1  ;;  %v2913_v27 = vsel %vm4519_vm0, %v2835_v58, %v3241_v11  ;;  %v2916_v48 = vsel %vm4525_vm11, %v2836_v59, %v3243_v36  ;;  %v2843_v39 = vor.u32 %v2841_v46, %v2840_v29  ;;  %v2844_v54 = vrot.slane %v2840_v29, 4  ;;  %v3253_v59 = vld [vmem:[%s4495_s24 + $0x30] sm:$0xf] }
 0x1ac   : > { %v2730_v42 = vpop.f32.mrb[5].mxu0  ;;  %3242 = vst [vmem:[%s4495_s24 + $0x18] sm:$0xf] %v2913_v27  ;;  %3244 = vst [vmem:[%s4495_s24 + $0x1c] sm:$0x1] %v2916_v48  ;;  %v2898_v30 = vsel %vm4519_vm0, %v2819_v35, %v3233_v7  ;;  %v2904_v21 = vsel %vm4525_vm11, %v2820_v51, %v3235_v37  ;;  %v2827_v53 = vor.u32 %v2825_v10, %v2824_v14  ;;  %v2828_v6 = vrot.slane %v2824_v14, 4 }
 0x1ad   : > { %v3618_v44 = vpop.f32.mrb[6].mxu0  ;;  %3234 = vst [vmem:[%s4495_s24 + $0x8] sm:$0xf] %v2898_v30  ;;  %3236 = vst [vmem:[%s4495_s24 + $0xc] sm:$0x1] %v2904_v21  ;;  %v2919_v18 = vsel %vm4519_vm0, %v2843_v39, %v3245_v63  ;;  %v2922_v15 = vsel %vm4525_vm11, %v2844_v54, %v3247_v24  ;;  %v3623_v8 = vadd.f32 %v3617_v25, %v3537_v52 }
 0x1ae   : > { %v3624_v32 = vadd.f32 %v2730_v42, %v1898_v57  ;;  %v2733_v16 = vpop.f32.mrb[7].mxu0  ;;  %3246 = vst [vmem:[%s4495_s24 + $0x20] sm:$0xf] %v2919_v18  ;;  %3248 = vst [vmem:[%s4495_s24 + $0x24] sm:$0x1] %v2922_v15  ;;  %v2907_v62 = vsel %vm4519_vm0, %v2827_v53, %v3237_v9  ;;  %v2910_v23 = vsel %vm4525_vm11, %v2828_v6, %v3239_v41 }
 0x1af   : > { %v3625_v43 = vadd.f32 %v3618_v44, %v3538_v20  ;;  %v3626_v0 = vadd.f32 %v2733_v16, %v1901_v49  ;;  %3238 = vst [vmem:[%s4495_s24 + $0x10] sm:$0xf] %v2907_v62  ;;  %3240 = vst [vmem:[%s4495_s24 + $0x14] sm:$0x1] %v2910_v23  ;;  %v2759_v61 = vmax.f32 %v3623_v8, 0.0 }
 0x1b0   : > { %v2757_v17 = vmax.f32 %v3624_v32, 0.0  ;;  %v3261_v7 = vld [vmem:[%s4495_s24 + $0x40] sm:$0xf]  ;;  %v3263_v52 = vld [vmem:[%s4495_s24 + $0x44] sm:$0x1] }
 0x1b1   : > { %v2760_v26 = vmax.f32 %v3625_v43, 0.0  ;;  %v2758_v28 = vmax.f32 %v3626_v0, 0.0  ;;  %v3377_v60 = vpack.c.bf16 %v2759_v61, %v2759_v61  ;;  %v3255_v29 = vld [vmem:[%s4495_s24 + $0x34] sm:$0x1] }
 0x1b2   : > { %v3375_v4 = vpack.c.bf16 %v2757_v17, %v2757_v17 }
 0x1b3   : > { %v3378_v50 = vpack.c.bf16 %v2760_v26, %v2760_v26  ;;  %v3376_v12 = vpack.c.bf16 %v2758_v28, %v2758_v28  ;;  %v2862_v34 = vshrl.u32 %v3377_v60, 16  ;;  %v2865_v40 = vshll.u32 %v3377_v60, 16 }
 0x1b4   : > { %v2846_v47 = vshrl.u32 %v3375_v4, 16  ;;  %v2849_v45 = vshll.u32 %v3375_v4, 16 }
 0x1b5   : > { %v2870_v11 = vshrl.u32 %v3378_v50, 16  ;;  %v2854_v36 = vshrl.u32 %v3376_v12, 16  ;;  %v2864_v31 = vrot.slane %v2862_v34, 7  ;;  %v2873_v19 = vshll.u32 %v3378_v50, 16 }
 0x1b6   : > { %v2848_v5 = vrot.slane %v2846_v47, 7  ;;  %v2857_v56 = vshll.u32 %v3376_v12, 16 }
 0x1b7   : > { %v2872_v37 = vrot.slane %v2870_v11, 7  ;;  %v2856_v2 = vrot.slane %v2854_v36, 7  ;;  %v2867_v63 = vor.u32 %v2865_v40, %v2864_v31  ;;  %v2868_v1 = vrot.slane %v2864_v31, 4 }
 0x1b8   : > { %v2851_v57 = vor.u32 %v2849_v45, %v2848_v5  ;;  %v2852_v58 = vrot.slane %v2848_v5, 4 }
 0x1b9   : > { %v2875_v46 = vor.u32 %v2873_v19, %v2872_v37  ;;  %v2876_v24 = vrot.slane %v2872_v37, 4  ;;  %v2859_v20 = vor.u32 %v2857_v56, %v2856_v2  ;;  %v2860_v35 = vrot.slane %v2856_v2, 4 }
 0x1ba   : > { %v2937_v51 = vsel %vm4519_vm0, %v2867_v63, %v3257_v33  ;;  %v2940_v14 = vsel %vm4525_vm11, %v2868_v1, %v3259_v22  ;;  %v2925_v10 = vsel %vm4519_vm0, %v2851_v57, %v3249_v13  ;;  %v2928_v25 = vsel %vm4525_vm11, %v2852_v58, %v3251_v38 }
 0x1bb   : > { %3258 = vst [vmem:[%s4495_s24 + $0x38] sm:$0xf] %v2937_v51  ;;  %3260 = vst [vmem:[%s4495_s24 + $0x3c] sm:$0x1] %v2940_v14  ;;  %v2943_v49 = vsel %vm4519_vm0, %v2875_v46, %v3261_v7  ;;  %v2946_v27 = vsel %vm4525_vm11, %v2876_v24, %v3263_v52  ;;  %v2931_v48 = vsel %vm4519_vm0, %v2859_v20, %v3253_v59 }
 0x1bc   : > { %3250 = vst [vmem:[%s4495_s24 + $0x28] sm:$0xf] %v2925_v10  ;;  %3252 = vst [vmem:[%s4495_s24 + $0x2c] sm:$0x1] %v2928_v25  ;;  %v2934_v39 = vsel %vm4525_vm11, %v2860_v35, %v3255_v29 }
 0x1bd   : > { %3262 = vst [vmem:[%s4495_s24 + $0x40] sm:$0xf] %v2943_v49  ;;  %3264 = vst [vmem:[%s4495_s24 + $0x44] sm:$0x1] %v2946_v27 }
 0x1be   : > { %3254 = vst [vmem:[%s4495_s24 + $0x30] sm:$0xf] %v2931_v48  ;;  %3256 = vst [vmem:[%s4495_s24 + $0x34] sm:$0x1] %v2934_v39 }
 0x1bf PF: > { %s12_s9 = sadd.s32 1, %s3772_s9  }
 0x1c0   : > { %p9_p4 = scmp.ge.s32.totalorder %s12_s9, 4  }
 0x1c2   :  { %11 = sbr.rel (!%p9_p4) target bundleno = 1 (0x1), region = 74 }

// kernel: unet_innermost_forward.4
= control target key start
LH: loop header
LB: loop body
LE: loop exit
PB: predicated region body
PF: predicated region fallthrough
CT: control target
= control target key end

     0   :  { %s4190_s12 = smov 0   ;;  %s4951_s0 = inlined_call_operand.vmem [shape: bf16[2,10,10,128], index: 0, kind: input, shape index: {}]   ;;  %s4952_s1 = inlined_call_operand.vmem [shape: bf16[16,128,128], index: 1, kind: input, shape index: {}]   ;;  %s4953_s2 = inlined_call_operand.vmem [shape: f32[2,2,2,8,8,128], index: 2, kind: output, shape index: {0}]   ;;  %s4954_s3 = inlined_call_operand.vmem [shape: f32[2,2,128], index: 3, kind: output, shape index: {1}]  }
   0x1 LB: > { %s2903_s13 = sadd.s32 4294967295, %s4168_s12   ;;  %p2907_p0 = scmp.ge.s32.totalorder %s4168_s12, 1  ;;  %s4168_s12 = sphi %s4190_s12, %s14_s12  }
   0x2   : > { %p140_p1 = scmp.lt.s32.totalorder %s4168_s12, 3 }
   0x4   : > { %p141_p2 = pnand %p2907_p0, %p140_p1 }
   0x5   : > { %v4025_v0 = vld [vmem:[%s4952_s1 + $0x80] sm:$0xff] (!%p141_p2)   ;;  %v4027_v2 = vld [vmem:[%s4952_s1 + $0x88] sm:$0xff] (!%p141_p2)   ;;  %p168_p3 = scmp.lt.s32.totalorder (!%p141_p2), %s2903_s13, 1  ;;  %v4029_v4 = vld [vmem:[%s4952_s1 + $0x90] sm:$0xff] (!%p141_p2)   ;;  %vm995_vm0 = vcmask (!%p141_p2), 1042432   ;;  %vm996_vm1 = vcmask (!%p141_p2), 1046532  }
   0x6   : > { %144 = sbr.rel (%p141_p2) target bundleno = 511 (0x1ff), region = 28  ;;  %v4026_v1 = vld [vmem:[%s4952_s1 + $0xc0] sm:$0xff] (!%p141_p2)   ;;  %3536 = vmatprep.subr.bf16.mxu0 (!%p141_p2), %v4025_v0  ;;  %v4028_v3 = vld [vmem:[%s4952_s1 + $0xc8] sm:$0xff] (!%p141_p2)   ;;  %v4030_v5 = vld [vmem:[%s4952_s1 + $0xd0] sm:$0xff] (!%p141_p2)   ;;  %vm219_vm2 = vsmask.f32 (!%p141_p2), 3328 }
   0x7   : > { %3632 = vmatprep.subr.bf16.mxu1 (!%p141_p2), %v4026_v1  ;;  %3537 = vmatpush3.bf16.msra.mxu0 (!%p141_p2), %v4025_v0  ;;  %v4031_v6 = vld [vmem:[%s4952_s1 + $0x98] sm:$0xff] (!%p141_p2)   ;;  %v4033_v8 = vld [vmem:[%s4952_s1 + $0xa0] sm:$0xff] (!%p141_p2)   ;;  %v4035_v10 = vld [vmem:[%s4952_s1 + $0xa8] sm:$0xff] (!%p141_p2)   ;;  %vm220_vm3 = vsmask.f32 (!%p141_p2), 7440 }
   0x8   : > { %3633 = vmatpush3.bf16.msra.mxu1 (!%p141_p2), %v4026_v1  ;;  %3538 = vmatprep.subr.bf16.mxu0 (!%p141_p2), %v4027_v2  ;;  %v4032_v7 = vld [vmem:[%s4952_s1 + $0xd8] sm:$0xff] (!%p141_p2)   ;;  %v4034_v9 = vld [vmem:[%s4952_s1 + $0xe0] sm:$0xff] (!%p141_p2)   ;;  %v4036_v11 = vld [vmem:[%s4952_s1 + $0xe8] sm:$0xff] (!%p141_p2)  }
   0x9   : > { %3634 = vmatprep.subr.bf16.mxu1 (!%p141_p2), %v4028_v3  ;;  %v4037_v15 = vld [vmem:[%s4952_s1 + $0xb0] sm:$0xff] (!%p141_p2)   ;;  %v4039_v30 = vld [vmem:[%s4952_s1 + $0xb8] sm:$0xff] (!%p141_p2)   ;;  %vm4297_vm4 = vmor (!%p141_p2), %vm219_vm2, %vm220_vm3 }
   0xa   : > { %v4038_v18 = vld [vmem:[%s4952_s1 + $0xf0] sm:$0xff] (!%p141_p2)   ;;  %v4040_v41 = vld [vmem:[%s4952_s1 + $0xf8] sm:$0xff] (!%p141_p2)   ;;  %vm4305_vm5 = vmor (!%p141_p2), %vm995_vm0, %vm996_vm1 }
   0xb   : > { %3539 = vmatpush3.bf16.msra.mxu0 (!%p141_p2), %v4027_v2  ;;  %v4041_v0 = vld [vmem:[%s4952_s1] sm:$0xff] (!%p141_p2)   ;;  %v4152_v46 = vld [vmem:[%s4952_s1 + $0x3d8] sm:$0xff] (!%p141_p2)  }
   0xc   : > { %3635 = vmatpush3.bf16.msra.mxu1 (!%p141_p2), %v4028_v3  ;;  %3540 = vmatprep.subr.bf16.mxu0 (!%p141_p2), %v4029_v4  ;;  %v4042_v1 = vld [vmem:[%s4952_s1 + $0x40] sm:$0xff] (!%p141_p2)  }
   0xd   : > { %s4960_s13 = smov (!%p168_p3, %s2903_s13), 1  ;;  %3636 = vmatprep.subr.bf16.mxu1 %v4030_v5 }
   0xe   : > { %s4016_s30 = smul.u32 80, %s4960_s13  ;;  %s3343_s4 = sshll.u32 %s4960_s13, 8 }
   0xf   : > { %3541 = vmatpush3.bf16.msra.mxu0 %v4029_v4  ;;  %s4904_s7 = scalar_lea.vmem %s4953_s2, %s3343_s4  ;;  %s2911_s8 = sshll.u32 %s4960_s13, 1 }
  0x10   : > { %3637 = vmatpush3.bf16.msra.mxu1 %v4030_v5  ;;  %3542 = vmatprep.subr.bf16.mxu0 %v4031_v6  ;;  %s4234_s10 = scalar_lea.vmem %s4951_s0, %s4016_s30  ;;  %s181_s14 = scalar_lea.vmem %s4954_s3, %s2911_s8 }
  0x11   : > { %3638 = vmatprep.subr.bf16.mxu1 %v4032_v7  ;;  %v4243_v12 = vld [vmem:[%s4234_s10] sm:$0xf]  ;;  %v4246_v13 = vld [vmem:[%s4234_s10 + $0x4] sm:$0x1]  ;;  %v4249_v14 = vld [vmem:[%s4234_s10 + $0x8] sm:$0xf] }
  0x12   : > { %v4255_v16 = vld [vmem:[%s4234_s10 + $0xc] sm:$0x1]  ;;  %v4258_v17 = vld [vmem:[%s4234_s10 + $0x10] sm:$0xf]  ;;  %v4264_v19 = vld [vmem:[%s4234_s10 + $0x14] sm:$0x1] }
  0x13   : > { %3543 = vmatpush3.bf16.msra.mxu0 %v4031_v6  ;;  %v4267_v20 = vld [vmem:[%s4234_s10 + $0x18] sm:$0xf]  ;;  %v4270_v21 = vld [vmem:[%s4234_s10 + $0x1c] sm:$0x1]  ;;  %v223_v22 = vshrl.u32 %v4243_v12, 16  ;;  %v226_v23 = vshll.u32 %v4243_v12, 16 }
  0x14   : > { %3639 = vmatpush3.bf16.msra.mxu1 %v4032_v7  ;;  %3544 = vmatprep.subr.bf16.mxu0 %v4033_v8  ;;  %v232_v24 = vshll.u32 %v4246_v13, 16  ;;  %v237_v25 = vshrl.u32 %v4249_v14, 16  ;;  %v240_v26 = vshll.u32 %v4249_v14, 16  ;;  %v246_v27 = vshll.u32 %v4255_v16, 16  ;;  %v4284_v31 = vld [vmem:[%s4234_s10 + $0x20] sm:$0xf] }
  0x15   : > { %3640 = vmatprep.subr.bf16.mxu1 %v4034_v9  ;;  %v251_v28 = vshrl.u32 %v4258_v17, 16  ;;  %v254_v29 = vshll.u32 %v4258_v17, 16  ;;  %v225_v32 = vrot.slane %v223_v22, 4  ;;  %v228_v33 = vrot.slane %v226_v23, 5  ;;  %v4287_v36 = vld [vmem:[%s4234_s10 + $0x24] sm:$0x1] }
  0x16   : > { %v234_v34 = vrot.slane %v232_v24, 5  ;;  %v239_v35 = vrot.slane %v237_v25, 4  ;;  %v242_v37 = vrot.slane %v240_v26, 5  ;;  %v248_v38 = vrot.slane %v246_v27, 5  ;;  %v4043_v23 = vld [vmem:[%s4952_s1 + $0x8] sm:$0xff]  }
  0x17   : > { %3545 = vmatpush3.bf16.msra.mxu0 %v4033_v8  ;;  %v253_v39 = vrot.slane %v251_v28, 4  ;;  %v256_v40 = vrot.slane %v254_v29, 5  ;;  %v229_v42 = vor.u32 %v228_v33, %v225_v32  ;;  %v260_v43 = vshll.u32 %v4264_v19, 16  ;;  %v4045_v33 = vld [vmem:[%s4952_s1 + $0x10] sm:$0xff]  }
  0x18   : > { %3641 = vmatpush3.bf16.msra.mxu1 %v4034_v9  ;;  %3546 = vmatprep.subr.bf16.mxu0 %v4035_v10  ;;  %v265_v44 = vshrl.u32 %v4267_v20, 16  ;;  %v268_v45 = vshll.u32 %v4267_v20, 16  ;;  %v243_v47 = vor.u32 %v242_v37, %v239_v35  ;;  %v274_v49 = vshll.u32 %v4270_v21, 16 }
  0x19   : > { %3642 = vmatprep.subr.bf16.mxu1 %v4036_v11  ;;  %v257_v48 = vor.u32 %v256_v40, %v253_v39  ;;  %v279_v50 = vshrl.u32 %v4284_v31, 16  ;;  %v230_v51 = vrot.slane %v229_v42, 4  ;;  %v262_v52 = vrot.slane %v260_v43, 5  ;;  %v194_v39 = vld [vmem:[%s4234_s10 + $0x2c] sm:$0x1] }
  0x1a   : > { %v267_v53 = vrot.slane %v265_v44, 4  ;;  %v270_v54 = vrot.slane %v268_v45, 5  ;;  %v244_v55 = vrot.slane %v243_v47, 4  ;;  %v276_v57 = vrot.slane %v274_v49, 5 }
  0x1b   : > { %3547 = vmatpush3.bf16.msra.mxu0 %v4035_v10  ;;  %v258_v56 = vrot.slane %v257_v48, 4  ;;  %v281_v58 = vrot.slane %v279_v50, 4  ;;  %v235_v60 = vsel %vm4297_vm4, %v230_v51, %v234_v34  ;;  %v282_v62 = vshll.u32 %v4284_v31, 16  ;;  %v4047_v51 = vld [vmem:[%s4952_s1 + $0x18] sm:$0xff]  }
  0x1c   : > { %3643 = vmatpush3.bf16.msra.mxu1 %v4036_v11  ;;  %3548 = vmatprep.subr.bf16.mxu0 %v4037_v15  ;;  %v271_v61 = vor.u32 %v270_v54, %v267_v53  ;;  %v288_v63 = vshll.u32 %v4287_v36, 16  ;;  %v4321_v2 = vsel %vm4297_vm4, %v244_v55, %v248_v38  ;;  %v3024_v3 = vrot.slane %v4243_v12, 9  ;;  %v4372_v38 = vld [vmem:[%s4234_s10 + $0x28] sm:$0xf]  ;;  %v4396_v54 = vld [vmem:[%s4234_s10 + $0x30] sm:$0xf] }
  0x1d   : > { %3644 = vmatprep.subr.bf16.mxu1 %v4038_v18  ;;  %v1000_v4 = vrot.slane %v4246_v13, 5  ;;  %v4327_v5 = vsel %vm4297_vm4, %v258_v56, %v262_v52  ;;  %v284_v7 = vrot.slane %v282_v62, 5  ;;  %v4330_v8 = vcombine.low %v235_v60, %v4321_v2  ;;  %v196_v55 = vld [vmem:[%s4234_s10 + $0x34] sm:$0x1]  ;;  %v4048_v56 = vld [vmem:[%s4952_s1 + $0x58] sm:$0xff]  }
  0x1e   : > { %v272_v6 = vrot.slane %v271_v61, 4  ;;  %v3025_v10 = vrot.slane %v4249_v14, 9  ;;  %v1004_v11 = vrot.slane %v4255_v16, 5  ;;  %v1008_v22 = vrot.slane %v4264_v19, 5  ;;  %v4405_v60 = vld [vmem:[%s4234_s10 + $0x38] sm:$0xf] }
  0x1f   : > { %3549 = vmatpush3.bf16.msra.mxu0 %v4037_v15  ;;  %v1001_v9 = vsel %vm4305_vm5, %v3024_v3, %v1000_v4  ;;  %v285_v15 = vor.u32 %v284_v7, %v281_v58  ;;  %3552 = vmatprep.mubr.bf16.mxu0 %v4330_v8  ;;  %v3027_v25 = vrot.slane %v4267_v20, 9  ;;  %v1012_v26 = vrot.slane %v4270_v21, 5  ;;  %v198_v61 = vld [vmem:[%s4234_s10 + $0x3c] sm:$0x1] }
  0x20   : > { %3645 = vmatpush3.bf16.msra.mxu1 %v4038_v18  ;;  %3550 = vmatprep.subr.bf16.mxu0 %v4039_v30  ;;  %v4338_v13 = vsel %vm4297_vm4, %v272_v6, %v276_v57  ;;  %v3026_v18 = vrot.slane %v4258_v17, 9  ;;  %v1005_v16 = vsel %vm4305_vm5, %v3025_v10, %v1004_v11  ;;  %v3028_v32 = vrot.slane %v4284_v31, 9  ;;  %v4049_v11 = vld [vmem:[%s4952_s1 + $0x20] sm:$0xff]  }
  0x21   : > { %3646 = vmatprep.subr.bf16.mxu1 %v4040_v41  ;;  %v4348_v24 = vcombine.low %v4327_v5, %v4338_v13  ;;  %v3048_v27 = vcombine.low %v1001_v9, %v1005_v16  ;;  %v1013_v29 = vsel %vm4305_vm5, %v3027_v25, %v1012_v26  ;;  %v1016_v34 = vrot.slane %v4287_v36, 5  ;;  %v4046_v36 = vld [vmem:[%s4952_s1 + $0x50] sm:$0xff]  }
  0x22   : > { %v1009_v19 = vsel %vm4305_vm5, %v3026_v18, %v1008_v22  ;;  %v286_v35 = vrot.slane %v285_v15, 4  ;;  %v290_v37 = vrot.slane %v288_v63, 5  ;;  %v293_v40 = vshrl.u32 %v4372_v38, 16 }
  0x23   : > { %3551 = vmatpush3.bf16.msra.mxu0 %v4039_v30  ;;  %v4356_v28 = vcombine.low %v1005_v16, %v1009_v19  ;;  %v4044_v30 = vld [vmem:[%s4952_s1 + $0x48] sm:$0xff]   ;;  %3648 = vmatprep.mubr.bf16.mxu1 %v3048_v27  ;;  %v4365_v21 = vcombine.low %v1009_v19, %v1013_v29  ;;  %v1017_v42 = vsel %vm4305_vm5, %v3028_v32, %v1016_v34  ;;  %v302_v43 = vshll.u32 %v194_v39, 16  ;;  %v4050_v32 = vld [vmem:[%s4952_s1 + $0x60] sm:$0xff]  }
  0x24   : > { %3647 = vmatpush3.bf16.msra.mxu1 %v4040_v41  ;;  %3560 = vmatprep.subr.bf16.mxu0 %v4041_v0  ;;  %v296_v41 = vshll.u32 %v4372_v38, 16  ;;  %v3029_v44 = vrot.slane %v4372_v38, 9  ;;  %v1020_v45 = vrot.slane %v194_v39, 5  ;;  %v4384_v47 = vcombine.low %v1013_v29, %v1017_v42 }
  0x25   : > { %3656 = vmatprep.subr.bf16.mxu1 %v4042_v1  ;;  %v295_v48 = vrot.slane %v293_v40, 4  ;;  %v4388_v50 = vsel %vm4297_vm4, %v286_v35, %v290_v37  ;;  %v304_v52 = vrot.slane %v302_v43, 5  ;;  %v307_v62 = vshrl.u32 %v4396_v54, 16  ;;  %v4051_v35 = vld [vmem:[%s4952_s1 + $0x28] sm:$0xff]  }
  0x26   : > { %3553 = vmatmul.mubr.bf16.vlgmr.msra.gmra.mrb[0].mxu0 %v4348_v24  ;;  %v298_v49 = vrot.slane %v296_v41, 5  ;;  %v1021_v53 = vsel %vm4305_vm5, %v3029_v44, %v1020_v45  ;;  %v310_v63 = vshll.u32 %v4396_v54, 16  ;;  %v324_v3 = vshll.u32 %v4405_v60, 16  ;;  %v4052_v44 = vld [vmem:[%s4952_s1 + $0x68] sm:$0xff]  }
  0x27   : > { %3561 = vmatpush3.bf16.msra.mxu0 %v4041_v0  ;;  %3649 = vmatmul.mubr.bf16.vlgmr.msra.gmra.mrb[0].mxu1 %v4365_v21  ;;  %v4402_v58 = vcombine.low %v1017_v42, %v1021_v53  ;;  %v316_v0 = vshll.u32 %v196_v55, 16  ;;  %v330_v4 = vshll.u32 %v198_v61, 16  ;;  %v309_v7 = vrot.slane %v307_v62, 4 }
  0x28   : > { %3562 = vmatprep.subr.bf16.mxu0 %v4043_v23  ;;  %3657 = vmatpush3.bf16.msra.mxu1 %v4042_v1  ;;  %v299_v57 = vor.u32 %v298_v49, %v295_v48  ;;  %v321_v1 = vshrl.u32 %v4405_v60, 16  ;;  %v312_v9 = vrot.slane %v310_v63, 5  ;;  %v3030_v10 = vrot.slane %v4396_v54, 9  ;;  %v4053_v48 = vld [vmem:[%s4952_s1 + $0x30] sm:$0xff]   ;;  %v4055_v49 = vld [vmem:[%s4952_s1 + $0x38] sm:$0xff]  }
  0x29   : > { %3658 = vmatprep.subr.bf16.mxu1 %v4044_v30  ;;  %3652 = vmatprep.mubr.bf16.mxu1 %v4402_v58  ;;  %v318_v15 = vrot.slane %v316_v0, 5  ;;  %v326_v22 = vrot.slane %v324_v3, 5  ;;  %v1024_v25 = vrot.slane %v196_v55, 5  ;;  %v3031_v26 = vrot.slane %v4405_v60, 9  ;;  %v4061_v55 = vld [vmem:[%s4952_s1 + $0x208] sm:$0xff]   ;;  %v4064_v63 = vld [vmem:[%s4952_s1 + $0x250] sm:$0xff]  }
  0x2a   : > { %v300_v6 = vrot.slane %v299_v57, 4  ;;  %v323_v18 = vrot.slane %v321_v1, 4  ;;  %v313_v16 = vor.u32 %v312_v9, %v309_v7  ;;  %v332_v29 = vrot.slane %v330_v4, 5  ;;  %v4062_v57 = vld [vmem:[%s4952_s1 + $0x248] sm:$0xff]   ;;  %v4065_v0 = vld [vmem:[%s4952_s1 + $0x218] sm:$0xff]   ;;  %v4072_v7 = vld [vmem:[%s4952_s1 + $0x230] sm:$0xff]  }
  0x2b   : > { %3563 = vmatpush3.bf16.msra.mxu0 %v4043_v23  ;;  %v1025_v34 = vsel %vm4305_vm5, %v3030_v10, %v1024_v25  ;;  %v2940_v43 = vcombine.low %v4243_v12, %v4249_v14  ;;  %v4054_v12 = vld [vmem:[%s4952_s1 + $0x70] sm:$0xff]   ;;  %v4505_v62 = vcombine.low %v4396_v54, %v4405_v60  ;;  %v4515_v1 = vcombine.low %v4249_v14, %v4258_v17  ;;  %v4066_v4 = vld [vmem:[%s4952_s1 + $0x258] sm:$0xff]   ;;  %v4067_v14 = vld [vmem:[%s4952_s1 + $0x220] sm:$0xff]  }
  0x2c   : > { %3564 = vmatprep.subr.bf16.mxu0 %v4045_v33  ;;  %3659 = vmatpush3.bf16.msra.mxu1 %v4044_v30  ;;  %v4419_v23 = vsel %vm4297_vm4, %v300_v6, %v304_v52  ;;  %v327_v27 = vor.u32 %v326_v22, %v323_v18  ;;  %v1028_v30 = vrot.slane %v198_v61, 5  ;;  %v4439_v40 = vcombine.low %v1021_v53, %v1025_v34  ;;  %v4059_v53 = vld [vmem:[%s4952_s1 + $0x240] sm:$0xff]   ;;  %v4063_v61 = vld [vmem:[%s4952_s1 + $0x210] sm:$0xff]   ;;  %v4076_v18 = vld [vmem:[%s4952_s1 + $0x278] sm:$0xff]  }
  0x2d   : > { %3660 = vmatprep.subr.bf16.mxu1 %v4046_v36  ;;  %v4424_v19 = vcombine.low %v4388_v50, %v4419_v23  ;;  %v4481_v52 = vcombine.low %v4258_v17, %v4267_v20  ;;  %v4519_v3 = vcombine.low %v4321_v2, %v4327_v5  ;;  %v4068_v17 = vld [vmem:[%s4952_s1 + $0x260] sm:$0xff]   ;;  %v4069_v2 = vld [vmem:[%s4952_s1 + $0x228] sm:$0xff]  }
  0x2e   : > { %v328_v37 = vrot.slane %v327_v27, 4  ;;  %v4437_v39 = vsel %vm4305_vm5, %v3031_v26, %v1028_v30  ;;  %v4070_v5 = vld [vmem:[%s4952_s1 + $0x268] sm:$0xff]   ;;  %v4541_v6 = vld [vmem:[%s4234_s10 + $0x40] sm:$0xf]  ;;  %v4558_v25 = vld [vmem:[%s4234_s10 + $0x44] sm:$0x1]  ;;  %v4565_v27 = vcombine.low %v4267_v20, %v4284_v31  ;;  %v4580_v20 = vcombine.low %v4338_v13, %v4388_v50 }
  0x2f   : > { %3565 = vmatpush3.bf16.msra.mxu0 %v4045_v33  ;;  %v314_v33 = vrot.slane %v313_v16, 4  ;;  %3556 = vmatprep.mubr.bf16.mxu0 %v4424_v19  ;;  %v4446_v42 = vcombine.low %v1025_v34, %v4437_v39  ;;  %v766_v9 = vshrl.u32 %v4541_v6, 16  ;;  %v769_v10 = vshll.u32 %v4541_v6, 16  ;;  %v4078_v26 = vld [vmem:[%s4952_s1 + $0x280] sm:$0xff]   ;;  %v4083_v13 = vld [vmem:[%s4952_s1 + $0x290] sm:$0xff]  }
  0x30   : > { %3566 = vmatprep.subr.bf16.mxu0 %v4047_v51  ;;  %3661 = vmatpush3.bf16.msra.mxu1 %v4046_v36  ;;  %v4450_v36 = vsel %vm4297_vm4, %v328_v37, %v332_v29  ;;  %v775_v30 = vshll.u32 %v4558_v25, 16  ;;  %v4576_v34 = vcombine.low %v4372_v38, %v4396_v54  ;;  %v4598_v50 = vcombine.low %v4405_v60, %v4541_v6  ;;  %v4086_v60 = vld [vmem:[%s4952_s1 + $0x2d8] sm:$0xff]  }
  0x31   : > { %3662 = vmatprep.subr.bf16.mxu1 %v4048_v56  ;;  %v4443_v41 = vsel %vm4297_vm4, %v314_v33, %v318_v15  ;;  %3653 = vmatmul.mubr.bf16.gmra.mrb[4].mxu1 %v4446_v42  ;;  %v4075_v15 = vld [vmem:[%s4952_s1 + $0x238] sm:$0xff]   ;;  %v768_v22 = vrot.slane %v766_v9, 4  ;;  %v771_v16 = vrot.slane %v769_v10, 5  ;;  %v4081_v33 = vld [vmem:[%s4952_s1 + $0x288] sm:$0xff]   ;;  %v4105_v10 = vld [vmem:[%s4952_s1 + $0x1a0] sm:$0xff]  }
  0x32   : > { %v4459_v45 = vcombine.low %v4443_v41, %v4450_v36  ;;  %3672 = vmatprep.mubr.bf16.mxu1 %v4330_v8  ;;  %v4056_v8 = vld [vmem:[%s4952_s1 + $0x78] sm:$0xff]   ;;  %v777_v37 = vrot.slane %v775_v30, 5  ;;  %v4116_v30 = vld [vmem:[%s4952_s1 + $0x148] sm:$0xff]  }
  0x33   : > { %3567 = vmatpush3.bf16.msra.mxu0 %v4047_v51  ;;  %v4058_v51 = vld [vmem:[%s4952_s1 + $0x200] sm:$0xff]   ;;  %v772_v29 = vor.u32 %v771_v16, %v768_v22  ;;  %v4104_v9 = vld [vmem:[%s4952_s1 + $0x1d8] sm:$0xff]  }
  0x34   : > { %3568 = vmatprep.subr.bf16.mxu0 %v4049_v11  ;;  %3663 = vmatpush3.bf16.msra.mxu1 %v4048_v56  ;;  %v4491_v56 = vcombine.low %v4284_v31, %v4372_v38  ;;  %v4585_v31 = vcombine.low %v4419_v23, %v4443_v41  ;;  %v4082_v38 = vld [vmem:[%s4952_s1 + $0x2c8] sm:$0xff]   ;;  %v4084_v23 = vld [vmem:[%s4952_s1 + $0x2d0] sm:$0xff]   ;;  %v4085_v41 = vld [vmem:[%s4952_s1 + $0x298] sm:$0xff]  }
  0x35   : > { %3664 = vmatprep.subr.bf16.mxu1 %v4050_v32  ;;  %3557 = vmatmul.mubr.bf16.gmra.mrb[4].mxu0 %v4459_v45  ;;  %v4111_v22 = vld [vmem:[%s4952_s1 + $0x1b8] sm:$0xff]  }
  0x36   : > { %3576 = vmatprep.mubr.bf16.mxu0 %v2940_v43  ;;  %v4112_v16 = vld [vmem:[%s4952_s1 + $0x1f8] sm:$0xff]  }
  0x37   : > { %3569 = vmatpush3.bf16.msra.mxu0 %v4049_v11  ;;  %v4073_v11 = vld [vmem:[%s4952_s1 + $0x270] sm:$0xff]  }
  0x38   : > { %3570 = vmatprep.subr.bf16.mxu0 %v4051_v35  ;;  %3665 = vmatpush3.bf16.msra.mxu1 %v4050_v32  ;;  %v4079_v32 = vld [vmem:[%s4952_s1 + $0x2c0] sm:$0xff]  }
  0x39   : > { %3666 = vmatprep.subr.bf16.mxu1 %v4052_v44 }
  0x3b   : > { %3571 = vmatpush3.bf16.msra.mxu0 %v4051_v35  ;;  %v773_v35 = vrot.slane %v772_v29, 4  ;;  %v4115_v29 = vld [vmem:[%s4952_s1 + $0x108] sm:$0xff]  }
  0x3c   : > { %3572 = vmatprep.subr.bf16.mxu0 %v4053_v48  ;;  %3667 = vmatpush3.bf16.msra.mxu1 %v4052_v44  ;;  %v4087_v44 = vld [vmem:[%s4952_s1 + $0x2a0] sm:$0xff]  }
  0x3d   : > { %3668 = vmatprep.subr.bf16.mxu1 %v4054_v12  ;;  %v4602_v54 = vsel %vm4297_vm4, %v773_v35, %v777_v37  ;;  %v4119_v35 = vld [vmem:[%s4952_s1 + $0x118] sm:$0xff]   ;;  %v4122_v37 = vld [vmem:[%s4952_s1 + $0x160] sm:$0xff]  }
  0x3e   : > { %v4612_v43 = vcombine.low %v4450_v36, %v4602_v54  ;;  %v4088_v36 = vld [vmem:[%s4952_s1 + $0x2e0] sm:$0xff]  }
  0x3f   : > { %3573 = vmatpush3.bf16.msra.mxu0 %v4053_v48  ;;  %v4089_v48 = vld [vmem:[%s4952_s1 + $0x2a8] sm:$0xff]  }
  0x40   : > { %3574 = vmatprep.subr.bf16.mxu0 %v4055_v49  ;;  %3669 = vmatpush3.bf16.msra.mxu1 %v4054_v12  ;;  %v4090_v12 = vld [vmem:[%s4952_s1 + $0x2e8] sm:$0xff]  }
  0x41   : > { %3670 = vmatprep.subr.bf16.mxu1 %v4056_v8 }
  0x43   : > { %3575 = vmatpush3.bf16.msra.mxu0 %v4055_v49  ;;  %v4093_v49 = vld [vmem:[%s4952_s1 + $0x2b0] sm:$0xff]  }
  0x44   : > { %3584 = vmatprep.subr.bf16.mxu0 %v4058_v51  ;;  %3671 = vmatpush3.bf16.msra.mxu1 %v4056_v8  ;;  %v4094_v8 = vld [vmem:[%s4952_s1 + $0x2f0] sm:$0xff]  }
  0x45   : > { %3680 = vmatprep.subr.bf16.mxu1 %v4059_v53 }
  0x46   : > { %3577 = vmatmul.mubr.bf16.vlgmr.msra.gmra.mrb[0].mxu0 %v4481_v52 }
  0x47   : > { %3585 = vmatpush3.bf16.msra.mxu0 %v4058_v51  ;;  %3580 = vmatprep.mubr.bf16.mxu0 %v4491_v56  ;;  %v4095_v51 = vld [vmem:[%s4952_s1 + $0x2b8] sm:$0xff]  }
  0x48   : > { %3586 = vmatprep.subr.bf16.mxu0 %v4061_v55  ;;  %3673 = vmatmul.mubr.bf16.vlgmr.msra.gmra.mrb[0].mxu1 %v4348_v24 }
  0x49   : > { %3681 = vmatpush3.bf16.msra.mxu1 %v4059_v53  ;;  %3676 = vmatprep.mubr.bf16.mxu1 %v4424_v19  ;;  %v4096_v53 = vld [vmem:[%s4952_s1 + $0x2f8] sm:$0xff]  }
  0x4a   : > { %3682 = vmatprep.subr.bf16.mxu1 %v4062_v57 }
  0x4b   : > { %3587 = vmatpush3.bf16.msra.mxu0 %v4061_v55  ;;  %v4097_v55 = vld [vmem:[%s4952_s1 + $0x180] sm:$0xff]  }
  0x4c   : > { %3588 = vmatprep.subr.bf16.mxu0 %v4063_v61 }
  0x4d   : > { %3683 = vmatpush3.bf16.msra.mxu1 %v4062_v57  ;;  %v4098_v57 = vld [vmem:[%s4952_s1 + $0x1c0] sm:$0xff]  }
  0x4e   : > { %3581 = vmatmul.mubr.bf16.gmra.mrb[4].mxu0 %v4505_v62  ;;  %3684 = vmatprep.subr.bf16.mxu1 %v4064_v63 }
  0x4f   : > { %3589 = vmatpush3.bf16.msra.mxu0 %v4063_v61  ;;  %3600 = vmatprep.mubr.bf16.mxu0 %v4515_v1  ;;  %v4099_v61 = vld [vmem:[%s4952_s1 + $0x188] sm:$0xff]  }
  0x50   : > { %3590 = vmatprep.subr.bf16.mxu0 %v4065_v0  ;;  %3677 = vmatmul.mubr.bf16.gmra.mrb[4].mxu1 %v4459_v45 }
  0x51   : > { %3685 = vmatpush3.bf16.msra.mxu1 %v4064_v63  ;;  %3696 = vmatprep.mubr.bf16.mxu1 %v4519_v3  ;;  %v3092_v63 = vrot.slane %v4541_v6, 9 }
  0x52   : > { %3686 = vmatprep.subr.bf16.mxu1 %v4066_v4 }
  0x53   : > { %3591 = vmatpush3.bf16.msra.mxu0 %v4065_v0  ;;  %v1430_v0 = vrot.slane %v4558_v25, 5  ;;  %v4113_v25 = vld [vmem:[%s4952_s1 + $0x100] sm:$0xff]  }
  0x54   : > { %3592 = vmatprep.subr.bf16.mxu0 %v4067_v14 }
  0x55   : > { %3687 = vmatpush3.bf16.msra.mxu1 %v4066_v4  ;;  %v4100_v4 = vld [vmem:[%s4952_s1 + $0x1c8] sm:$0xff]  }
  0x56   : > { %3688 = vmatprep.subr.bf16.mxu1 %v4068_v17 }
  0x57   : > { %3593 = vmatpush3.bf16.msra.mxu0 %v4067_v14  ;;  %v4101_v14 = vld [vmem:[%s4952_s1 + $0x190] sm:$0xff]  }
  0x58   : > { %3594 = vmatprep.subr.bf16.mxu0 %v4069_v2 }
  0x59   : > { %3689 = vmatpush3.bf16.msra.mxu1 %v4068_v17  ;;  %v4668_v17 = vsel %vm4305_vm5, %v3092_v63, %v1430_v0  ;;  %v4144_v0 = vld [vmem:[%s4952_s1 + $0x378] sm:$0xff]  }
  0x5a   : > { %3690 = vmatprep.subr.bf16.mxu1 %v4070_v5 }
  0x5b   : > { %3595 = vmatpush3.bf16.msra.mxu0 %v4069_v2  ;;  %v4102_v2 = vld [vmem:[%s4952_s1 + $0x1d0] sm:$0xff]  }
  0x5c   : > { %3596 = vmatprep.subr.bf16.mxu0 %v4072_v7 }
  0x5d   : > { %3691 = vmatpush3.bf16.msra.mxu1 %v4070_v5  ;;  %v4103_v5 = vld [vmem:[%s4952_s1 + $0x198] sm:$0xff]  }
  0x5e   : > { %3692 = vmatprep.subr.bf16.mxu1 %v4073_v11 }
  0x5f   : > { %3597 = vmatpush3.bf16.msra.mxu0 %v4072_v7  ;;  %v4678_v7 = vcombine.low %v4437_v39, %v4668_v17  ;;  %v4106_v39 = vld [vmem:[%s4952_s1 + $0x1e0] sm:$0xff]  }
  0x60   : > { %3598 = vmatprep.subr.bf16.mxu0 %v4075_v15 }
  0x61   : > { %3693 = vmatpush3.bf16.msra.mxu1 %v4073_v11  ;;  %v4107_v11 = vld [vmem:[%s4952_s1 + $0x1a8] sm:$0xff]  }
  0x62   : > { %3694 = vmatprep.subr.bf16.mxu1 %v4076_v18 }
  0x63   : > { %3599 = vmatpush3.bf16.msra.mxu0 %v4075_v15  ;;  %v4108_v15 = vld [vmem:[%s4952_s1 + $0x1e8] sm:$0xff]  }
  0x64   : > { %3608 = vmatprep.subr.bf16.mxu0 %v4078_v26 }
  0x65   : > { %3695 = vmatpush3.bf16.msra.mxu1 %v4076_v18  ;;  %v4110_v18 = vld [vmem:[%s4952_s1 + $0x1f0] sm:$0xff]  }
  0x66   : > { %3601 = vmatmul.mubr.bf16.vlgmr.msra.gmra.mrb[0].mxu0 %v4565_v27  ;;  %3704 = vmatprep.subr.bf16.mxu1 %v4079_v32 }
  0x67   : > { %3609 = vmatpush3.bf16.msra.mxu0 %v4078_v26  ;;  %3604 = vmatprep.mubr.bf16.mxu0 %v4576_v34  ;;  %v4114_v26 = vld [vmem:[%s4952_s1 + $0x140] sm:$0xff]  }
  0x68   : > { %3610 = vmatprep.subr.bf16.mxu0 %v4081_v33  ;;  %3697 = vmatmul.mubr.bf16.vlgmr.msra.gmra.mrb[0].mxu1 %v4580_v20 }
  0x69   : > { %3705 = vmatpush3.bf16.msra.mxu1 %v4079_v32  ;;  %3700 = vmatprep.mubr.bf16.mxu1 %v4585_v31  ;;  %v4117_v32 = vld [vmem:[%s4952_s1 + $0x110] sm:$0xff]  }
  0x6a   : > { %3706 = vmatprep.subr.bf16.mxu1 %v4082_v38 }
  0x6b   : > { %3611 = vmatpush3.bf16.msra.mxu0 %v4081_v33  ;;  %v4118_v33 = vld [vmem:[%s4952_s1 + $0x150] sm:$0xff]  }
  0x6c   : > { %3612 = vmatprep.subr.bf16.mxu0 %v4083_v13 }
  0x6d   : > { %3707 = vmatpush3.bf16.msra.mxu1 %v4082_v38  ;;  %v4123_v38 = vld [vmem:[%s4952_s1 + $0x128] sm:$0xff]  }
  0x6e   : > { %3605 = vmatmul.mubr.bf16.gmra.mrb[4].mxu0 %v4598_v50  ;;  %3708 = vmatprep.subr.bf16.mxu1 %v4084_v23 }
  0x6f   : > { %3613 = vmatpush3.bf16.msra.mxu0 %v4083_v13  ;;  %3624 = vmatprep.mubr.bf16.mxu0 %v4519_v3  ;;  %v4126_v13 = vld [vmem:[%s4952_s1 + $0x170] sm:$0xff]  }
  0x70   : > { %3614 = vmatprep.subr.bf16.mxu0 %v4085_v41  ;;  %3701 = vmatmul.mubr.bf16.gmra.mrb[4].mxu1 %v4612_v43 }
  0x71   : > { %3709 = vmatpush3.bf16.msra.mxu1 %v4084_v23  ;;  %3720 = vmatprep.mubr.bf16.mxu1 %v4356_v28  ;;  %v4127_v23 = vld [vmem:[%s4952_s1 + $0x138] sm:$0xff]  }
  0x72   : > { %3710 = vmatprep.subr.bf16.mxu1 %v4086_v60 }
  0x73   : > { %3615 = vmatpush3.bf16.msra.mxu0 %v4085_v41  ;;  %v4128_v41 = vld [vmem:[%s4952_s1 + $0x178] sm:$0xff]  }
  0x74   : > { %3616 = vmatprep.subr.bf16.mxu0 %v4087_v44 }
  0x75   : > { %3711 = vmatpush3.bf16.msra.mxu1 %v4086_v60  ;;  %v4129_v60 = vld [vmem:[%s4952_s1 + $0x300] sm:$0xff]  }
  0x76   : > { %3712 = vmatprep.subr.bf16.mxu1 %v4088_v36 }
  0x77   : > { %3617 = vmatpush3.bf16.msra.mxu0 %v4087_v44  ;;  %v4130_v44 = vld [vmem:[%s4952_s1 + $0x340] sm:$0xff]  }
  0x78   : > { %3618 = vmatprep.subr.bf16.mxu0 %v4089_v48 }
  0x79   : > { %3713 = vmatpush3.bf16.msra.mxu1 %v4088_v36  ;;  %v4131_v36 = vld [vmem:[%s4952_s1 + $0x308] sm:$0xff]  }
  0x7a   : > { %3714 = vmatprep.subr.bf16.mxu1 %v4090_v12 }
  0x7b   : > { %3619 = vmatpush3.bf16.msra.mxu0 %v4089_v48  ;;  %v4132_v48 = vld [vmem:[%s4952_s1 + $0x348] sm:$0xff]  }
  0x7c   : > { %3620 = vmatprep.subr.bf16.mxu0 %v4093_v49 }
  0x7d   : > { %3715 = vmatpush3.bf16.msra.mxu1 %v4090_v12  ;;  %v4133_v12 = vld [vmem:[%s4952_s1 + $0x310] sm:$0xff]  }
  0x7e   : > { %3716 = vmatprep.subr.bf16.mxu1 %v4094_v8 }
  0x7f   : > { %3621 = vmatpush3.bf16.msra.mxu0 %v4093_v49  ;;  %v4135_v49 = vld [vmem:[%s4952_s1 + $0x318] sm:$0xff]  }
  0x80   : > { %3622 = vmatprep.subr.bf16.mxu0 %v4095_v51 }
  0x81   : > { %3717 = vmatpush3.bf16.msra.mxu1 %v4094_v8  ;;  %v4141_v8 = vld [vmem:[%s4952_s1 + $0x330] sm:$0xff]  }
  0x82   : > { %3718 = vmatprep.subr.bf16.mxu1 %v4096_v53 }
  0x83   : > { %3623 = vmatpush3.bf16.msra.mxu0 %v4095_v51 }
  0x84   : > { %3728 = vmatprep.subr.bf16.mxu0 %v4097_v55 }
  0x85   : > { %3719 = vmatpush3.bf16.msra.mxu1 %v4096_v53 }
  0x86   : > { %3625 = vmatmul.mubr.bf16.vlgmr.msra.gmra.mrb[0].mxu0 %v4580_v20  ;;  %3824 = vmatprep.subr.bf16.mxu1 %v4098_v57 }
  0x87   : > { %3729 = vmatpush3.bf16.msra.mxu0 %v4097_v55  ;;  %3628 = vmatprep.mubr.bf16.mxu0 %v4585_v31  ;;  %v4142_v55 = vld [vmem:[%s4952_s1 + $0x370] sm:$0xff]  }
  0x88   : > { %3730 = vmatprep.subr.bf16.mxu0 %v4099_v61  ;;  %3721 = vmatmul.mubr.bf16.vlgmr.msra.gmra.mrb[0].mxu1 %v4384_v47 }
  0x89   : > { %3825 = vmatpush3.bf16.msra.mxu1 %v4098_v57  ;;  %3724 = vmatprep.mubr.bf16.mxu1 %v4439_v40  ;;  %v4143_v57 = vld [vmem:[%s4952_s1 + $0x338] sm:$0xff]  }
  0x8a   : > { %3826 = vmatprep.subr.bf16.mxu1 %v4100_v4 }
  0x8b   : > { %3731 = vmatpush3.bf16.msra.mxu0 %v4099_v61 }
  0x8c   : > { %3732 = vmatprep.subr.bf16.mxu0 %v4101_v14 }
  0x8d   : > { %3827 = vmatpush3.bf16.msra.mxu1 %v4100_v4  ;;  %v4829_v4 = vld [vmem:[%s4234_s10 + $0x4c] sm:$0x1] }
  0x8e   : > { %3629 = vmatmul.mubr.bf16.gmra.mrb[4].mxu0 %v4612_v43  ;;  %3828 = vmatprep.subr.bf16.mxu1 %v4102_v2 }
  0x8f   : > { %3733 = vmatpush3.bf16.msra.mxu0 %v4101_v14  ;;  %3744 = vmatprep.mubr.bf16.mxu0 %v4519_v3  ;;  %v4145_v14 = vld [vmem:[%s4952_s1 + $0x380] sm:$0xff]  }
  0x90   : > { %3734 = vmatprep.subr.bf16.mxu0 %v4103_v5  ;;  %3725 = vmatmul.mubr.bf16.gmra.mrb[4].mxu1 %v4678_v7 }
  0x91   : > { %3829 = vmatpush3.bf16.msra.mxu1 %v4102_v2  ;;  %3840 = vmatprep.mubr.bf16.mxu1 %v4356_v28  ;;  %v4109_v28 = vld [vmem:[%s4952_s1 + $0x1b0] sm:$0xff]  }
  0x92   : > { %3830 = vmatprep.subr.bf16.mxu1 %v4104_v9 }
  0x93   : > { %3735 = vmatpush3.bf16.msra.mxu0 %v4103_v5  ;;  %v2036_v5 = vshll.u32 %v4829_v4, 16 }
  0x94   : > { %3736 = vmatprep.subr.bf16.mxu0 %v4105_v10 }
  0x95   : > { %3831 = vmatpush3.bf16.msra.mxu1 %v4104_v9  ;;  %v4147_v9 = vld [vmem:[%s4952_s1 + $0x388] sm:$0xff]  }
  0x96   : > { %3832 = vmatprep.subr.bf16.mxu1 %v4106_v39 }
  0x97   : > { %3737 = vmatpush3.bf16.msra.mxu0 %v4105_v10 }
  0x98   : > { %3738 = vmatprep.subr.bf16.mxu0 %v4107_v11 }
  0x99   : > { %3833 = vmatpush3.bf16.msra.mxu1 %v4106_v39  ;;  %v2038_v39 = vrot.slane %v2036_v5, 5 }
  0x9a   : > { %3834 = vmatprep.subr.bf16.mxu1 %v4108_v15 }
  0x9b   : > { %3739 = vmatpush3.bf16.msra.mxu0 %v4107_v11  ;;  %v4148_v11 = vld [vmem:[%s4952_s1 + $0x3c8] sm:$0xff]  }
  0x9c   : > { %3740 = vmatprep.subr.bf16.mxu0 %v4109_v28 }
  0x9d   : > { %3835 = vmatpush3.bf16.msra.mxu1 %v4108_v15  ;;  %v4149_v15 = vld [vmem:[%s4952_s1 + $0x390] sm:$0xff]  }
  0x9e   : > { %3836 = vmatprep.subr.bf16.mxu1 %v4110_v18 }
  0x9f   : > { %3741 = vmatpush3.bf16.msra.mxu0 %v4109_v28 }
  0xa0   : > { %3742 = vmatprep.subr.bf16.mxu0 %v4111_v22 }
  0xa1   : > { %3837 = vmatpush3.bf16.msra.mxu1 %v4110_v18  ;;  %v4150_v18 = vld [vmem:[%s4952_s1 + $0x3d0] sm:$0xff]  }
  0xa2   : > { %3838 = vmatprep.subr.bf16.mxu1 %v4112_v16 }
  0xa3   : > { %3743 = vmatpush3.bf16.msra.mxu0 %v4111_v22 }
  0xa4   : > { %3752 = vmatprep.subr.bf16.mxu0 %v4113_v25 }
  0xa5   : > { %3839 = vmatpush3.bf16.msra.mxu1 %v4112_v16  ;;  %v4155_v16 = vld [vmem:[%s4952_s1 + $0x3a8] sm:$0xff]  }
  0xa6   : > { %3745 = vmatmul.mubr.bf16.vlgmr.msra.gmra.mrb[8].mxu0 %v4580_v20  ;;  %3848 = vmatprep.subr.bf16.mxu1 %v4114_v26 }
  0xa7   : > { %3753 = vmatpush3.bf16.msra.mxu0 %v4113_v25  ;;  %3748 = vmatprep.mubr.bf16.mxu0 %v4585_v31  ;;  %v4159_v25 = vld [vmem:[%s4952_s1 + $0x3f0] sm:$0xff]  }
  0xa8   : > { %3754 = vmatprep.subr.bf16.mxu0 %v4115_v29  ;;  %3841 = vmatmul.mubr.bf16.vlgmr.msra.gmra.mrb[8].mxu1 %v4384_v47  ;;  %v4120_v47 = vld [vmem:[%s4952_s1 + $0x158] sm:$0xff]  }
  0xa9   : > { %3849 = vmatpush3.bf16.msra.mxu1 %v4114_v26  ;;  %3844 = vmatprep.mubr.bf16.mxu1 %v4439_v40  ;;  %v4121_v40 = vld [vmem:[%s4952_s1 + $0x120] sm:$0xff]   ;;  %v4160_v26 = vld [vmem:[%s4952_s1 + $0x3b8] sm:$0xff]  }
  0xaa   : > { %3850 = vmatprep.subr.bf16.mxu1 %v4116_v30 }
  0xab   : > { %3755 = vmatpush3.bf16.msra.mxu0 %v4115_v29  ;;  %v4161_v29 = vld [vmem:[%s4952_s1 + $0x3f8] sm:$0xff]  }
  0xac   : > { %3756 = vmatprep.subr.bf16.mxu0 %v4117_v32 }
  0xad   : > { %3851 = vmatpush3.bf16.msra.mxu1 %v4116_v30 }
  0xae   : > { %3749 = vmatmul.mubr.bf16.gmra.mrb[12].mxu0 %v4612_v43  ;;  %3852 = vmatprep.subr.bf16.mxu1 %v4118_v33 }
  0xaf   : > { %3757 = vmatpush3.bf16.msra.mxu0 %v4117_v32  ;;  %3768 = vmatprep.mubr.bf16.mxu0 %v4515_v1  ;;  %v4124_v1 = vld [vmem:[%s4952_s1 + $0x168] sm:$0xff]   ;;  %v2627_v32 = vrot.slane %v4829_v4, 5 }
  0xb0   : > { %3758 = vmatprep.subr.bf16.mxu0 %v4119_v35  ;;  %3845 = vmatmul.mubr.bf16.gmra.mrb[12].mxu1 %v4678_v7  ;;  %v4146_v7 = vld [vmem:[%s4952_s1 + $0x3c0] sm:$0xff]  }
  0xb1   : > { %3853 = vmatpush3.bf16.msra.mxu1 %v4118_v33  ;;  %3864 = vmatprep.mubr.bf16.mxu1 %v4519_v3  ;;  %v4125_v3 = vld [vmem:[%s4952_s1 + $0x130] sm:$0xff]  }
  0xb2   : > { %3854 = vmatprep.subr.bf16.mxu1 %v4120_v47 }
  0xb3   : > { %3759 = vmatpush3.bf16.msra.mxu0 %v4119_v35 }
  0xb4   : > { %3760 = vmatprep.subr.bf16.mxu0 %v4121_v40 }
  0xb5   : > { %3855 = vmatpush3.bf16.msra.mxu1 %v4120_v47 }
  0xb6   : > { %3856 = vmatprep.subr.bf16.mxu1 %v4122_v37 }
  0xb7   : > { %3761 = vmatpush3.bf16.msra.mxu0 %v4121_v40 }
  0xb8   : > { %3762 = vmatprep.subr.bf16.mxu0 %v4123_v38 }
  0xb9   : > { %3857 = vmatpush3.bf16.msra.mxu1 %v4122_v37 }
  0xba   : > { %3858 = vmatprep.subr.bf16.mxu1 %v4124_v1 }
  0xbb   : > { %3763 = vmatpush3.bf16.msra.mxu0 %v4123_v38 }
  0xbc   : > { %3764 = vmatprep.subr.bf16.mxu0 %v4125_v3 }
  0xbd   : > { %3859 = vmatpush3.bf16.msra.mxu1 %v4124_v1 }
  0xbe   : > { %3860 = vmatprep.subr.bf16.mxu1 %v4126_v13 }
  0xbf   : > { %3765 = vmatpush3.bf16.msra.mxu0 %v4125_v3 }
  0xc0   : > { %3766 = vmatprep.subr.bf16.mxu0 %v4127_v23 }
  0xc1   : > { %3861 = vmatpush3.bf16.msra.mxu1 %v4126_v13 }
  0xc2   : > { %3862 = vmatprep.subr.bf16.mxu1 %v4128_v41 }
  0xc3   : > { %3767 = vmatpush3.bf16.msra.mxu0 %v4127_v23 }
  0xc4   : > { %3776 = vmatprep.subr.bf16.mxu0 %v4129_v60 }
  0xc5   : > { %3863 = vmatpush3.bf16.msra.mxu1 %v4128_v41 }
  0xc6   : > { %3769 = vmatmul.mubr.bf16.vlgmr.msra.gmra.mrb[8].mxu0 %v4565_v27  ;;  %3872 = vmatprep.subr.bf16.mxu1 %v4130_v44  ;;  %v4134_v27 = vld [vmem:[%s4952_s1 + $0x350] sm:$0xff]  }
  0xc7   : > { %3777 = vmatpush3.bf16.msra.mxu0 %v4129_v60  ;;  %3772 = vmatprep.mubr.bf16.mxu0 %v4576_v34  ;;  %v4136_v34 = vld [vmem:[%s4952_s1 + $0x358] sm:$0xff]  }
  0xc8   : > { %3778 = vmatprep.subr.bf16.mxu0 %v4131_v36  ;;  %3865 = vmatmul.mubr.bf16.vlgmr.msra.gmra.mrb[8].mxu1 %v4580_v20  ;;  %v4137_v20 = vld [vmem:[%s4952_s1 + $0x320] sm:$0xff]  }
  0xc9   : > { %3873 = vmatpush3.bf16.msra.mxu1 %v4130_v44  ;;  %3868 = vmatprep.mubr.bf16.mxu1 %v4585_v31  ;;  %v4138_v31 = vld [vmem:[%s4952_s1 + $0x360] sm:$0xff]  }
  0xca   : > { %3874 = vmatprep.subr.bf16.mxu1 %v4132_v48 }
  0xcb   : > { %3779 = vmatpush3.bf16.msra.mxu0 %v4131_v36 }
  0xcc   : > { %3780 = vmatprep.subr.bf16.mxu0 %v4133_v12 }
  0xcd   : > { %3875 = vmatpush3.bf16.msra.mxu1 %v4132_v48 }
  0xce   : > { %3773 = vmatmul.mubr.bf16.gmra.mrb[12].mxu0 %v4598_v50  ;;  %3876 = vmatprep.subr.bf16.mxu1 %v4134_v27  ;;  %v4139_v50 = vld [vmem:[%s4952_s1 + $0x328] sm:$0xff]  }
  0xcf   : > { %3781 = vmatpush3.bf16.msra.mxu0 %v4133_v12  ;;  %3792 = vmatprep.mubr.bf16.mxu0 %v4481_v52  ;;  %v4140_v52 = vld [vmem:[%s4952_s1 + $0x368] sm:$0xff]  }
  0xd0   : > { %3782 = vmatprep.subr.bf16.mxu0 %v4135_v49  ;;  %3869 = vmatmul.mubr.bf16.gmra.mrb[12].mxu1 %v4612_v43  ;;  %v4812_v43 = vld [vmem:[%s4234_s10 + $0x48] sm:$0xf] }
  0xd1   : > { %3877 = vmatpush3.bf16.msra.mxu1 %v4134_v27  ;;  %3888 = vmatprep.mubr.bf16.mxu1 %v4348_v24  ;;  %v2027_v51 = vshrl.u32 %v4812_v43, 16  ;;  %v2030_v53 = vshll.u32 %v4812_v43, 16  ;;  %v3307_v30 = vrot.slane %v4812_v43, 9 }
  0xd2   : > { %3878 = vmatprep.subr.bf16.mxu1 %v4136_v34 }
  0xd3   : > { %3783 = vmatpush3.bf16.msra.mxu0 %v4135_v49  ;;  %v2029_v61 = vrot.slane %v2027_v51, 4  ;;  %v2032_v63 = vrot.slane %v2030_v53, 5  ;;  %v2628_v33 = vsel %vm4305_vm5, %v3307_v30, %v2627_v32 }
  0xd4   : > { %3784 = vmatprep.subr.bf16.mxu0 %v4137_v20  ;;  %v3324_v35 = vcombine.low %v4668_v17, %v2628_v33 }
  0xd5   : > { %3879 = vmatpush3.bf16.msra.mxu1 %v4136_v34  ;;  %v2033_v2 = vor.u32 %v2032_v63, %v2029_v61 }
  0xd6   : > { %3880 = vmatprep.subr.bf16.mxu1 %v4138_v31 }
  0xd7   : > { %3785 = vmatpush3.bf16.msra.mxu0 %v4137_v20  ;;  %v2034_v10 = vrot.slane %v2033_v2, 4 }
  0xd8   : > { %3786 = vmatprep.subr.bf16.mxu0 %v4139_v50 }
  0xd9   : > { %3881 = vmatpush3.bf16.msra.mxu1 %v4138_v31  ;;  %v2039_v28 = vsel %vm4297_vm4, %v2034_v10, %v2038_v39 }
  0xda   : > { %3882 = vmatprep.subr.bf16.mxu1 %v4140_v52  ;;  %v3218_v22 = vcombine.low %v4602_v54, %v2039_v28  ;;  %v4154_v54 = vld [vmem:[%s4952_s1 + $0x3e0] sm:$0xff]  }
  0xdb   : > { %3787 = vmatpush3.bf16.msra.mxu0 %v4139_v50 }
  0xdc   : > { %3788 = vmatprep.subr.bf16.mxu0 %v4141_v8 }
  0xdd   : > { %3883 = vmatpush3.bf16.msra.mxu1 %v4140_v52 }
  0xde   : > { %3884 = vmatprep.subr.bf16.mxu1 %v4142_v55 }
  0xdf   : > { %3789 = vmatpush3.bf16.msra.mxu0 %v4141_v8 }
  0xe0   : > { %3790 = vmatprep.subr.bf16.mxu0 %v4143_v57 }
  0xe1   : > { %3885 = vmatpush3.bf16.msra.mxu1 %v4142_v55 }
  0xe2   : > { %3886 = vmatprep.subr.bf16.mxu1 %v4144_v0 }
  0xe3   : > { %3791 = vmatpush3.bf16.msra.mxu0 %v4143_v57 }
  0xe4   : > { %3800 = vmatprep.subr.bf16.mxu0 %v4145_v14 }
  0xe5   : > { %3887 = vmatpush3.bf16.msra.mxu1 %v4144_v0 }
  0xe6   : > { %3793 = vmatmul.mubr.bf16.vlgmr.msra.gmra.mrb[8].mxu0 %v4491_v56  ;;  %3896 = vmatprep.subr.bf16.mxu1 %v4146_v7  ;;  %v3193_v56 = vcombine.low %v4541_v6, %v4812_v43  ;;  %v4153_v6 = vld [vmem:[%s4952_s1 + $0x3a0] sm:$0xff]  }
  0xe7   : > { %3801 = vmatpush3.bf16.msra.mxu0 %v4145_v14  ;;  %3796 = vmatprep.mubr.bf16.mxu0 %v4505_v62  ;;  %v4151_v62 = vld [vmem:[%s4952_s1 + $0x398] sm:$0xff]  }
  0xe8   : > { %3802 = vmatprep.subr.bf16.mxu0 %v4147_v9  ;;  %3889 = vmatmul.mubr.bf16.vlgmr.msra.gmra.mrb[8].mxu1 %v4424_v19 }
  0xe9   : > { %3897 = vmatpush3.bf16.msra.mxu1 %v4146_v7  ;;  %3892 = vmatprep.mubr.bf16.mxu1 %v4459_v45 }
  0xea   : > { %3898 = vmatprep.subr.bf16.mxu1 %v4148_v11 }
  0xeb   : > { %3803 = vmatpush3.bf16.msra.mxu0 %v4147_v9 }
  0xec   : > { %3804 = vmatprep.subr.bf16.mxu0 %v4149_v15 }
  0xed   : > { %3899 = vmatpush3.bf16.msra.mxu1 %v4148_v11 }
  0xee   : > { %3797 = vmatmul.mubr.bf16.gmra.mrb[12].mxu0 %v3193_v56  ;;  %3900 = vmatprep.subr.bf16.mxu1 %v4150_v18 }
  0xef   : > { %3805 = vmatpush3.bf16.msra.mxu0 %v4149_v15  ;;  %3816 = vmatprep.mubr.bf16.mxu0 %v4348_v24  ;;  %v4156_v24 = vld [vmem:[%s4952_s1 + $0x3e8] sm:$0xff]  }
  0xf0   : > { %3806 = vmatprep.subr.bf16.mxu0 %v4151_v62  ;;  %3893 = vmatmul.mubr.bf16.gmra.mrb[12].mxu1 %v3218_v22 }
  0xf1   : > { %3901 = vmatpush3.bf16.msra.mxu1 %v4150_v18  ;;  %3912 = vmatprep.mubr.bf16.mxu1 %v4365_v21  ;;  %v4158_v21 = vld [vmem:[%s4952_s1 + $0x3b0] sm:$0xff]  }
  0xf2   : > { %3902 = vmatprep.subr.bf16.mxu1 %v4152_v46 }
  0xf3   : > { %3807 = vmatpush3.bf16.msra.mxu0 %v4151_v62 }
  0xf4   : > { %3808 = vmatprep.subr.bf16.mxu0 %v4153_v6 }
  0xf5   : > { %3903 = vmatpush3.bf16.msra.mxu1 %v4152_v46 }
  0xf6   : > { %3904 = vmatprep.subr.bf16.mxu1 %v4154_v54 }
  0xf7   : > { %3809 = vmatpush3.bf16.msra.mxu0 %v4153_v6 }
  0xf8   : > { %3810 = vmatprep.subr.bf16.mxu0 %v4155_v16 }
  0xf9   : > { %3905 = vmatpush3.bf16.msra.mxu1 %v4154_v54 }
  0xfa   : > { %3906 = vmatprep.subr.bf16.mxu1 %v4156_v24 }
  0xfb   : > { %3811 = vmatpush3.bf16.msra.mxu0 %v4155_v16 }
  0xfc   : > { %3812 = vmatprep.subr.bf16.mxu0 %v4158_v21 }
  0xfd   : > { %3907 = vmatpush3.bf16.msra.mxu1 %v4156_v24 }
  0xfe   : > { %3908 = vmatprep.subr.bf16.mxu1 %v4159_v25 }
  0xff   : > { %3813 = vmatpush3.bf16.msra.mxu0 %v4158_v21 }
 0x100   : > { %3814 = vmatprep.subr.bf16.mxu0 %v4160_v26 }
 0x101   : > { %3909 = vmatpush3.bf16.msra.mxu1 %v4159_v25 }
 0x102   : > { %3910 = vmatprep.subr.bf16.mxu1 %v4161_v29 }
 0x103   : > { %3815 = vmatpush3.bf16.msra.mxu0 %v4160_v26 }
 0x105   : > { %3911 = vmatpush3.bf16.msra.mxu1 %v4161_v29 }
 0x106   : > { %3817 = vmatmul.mubr.bf16.vlgmr.msra.gmra.mrb[8].mxu0 %v4424_v19 }
 0x107   : > { %3820 = vmatprep.mubr.bf16.mxu0 %v4459_v45 }
 0x108   : > { %3913 = vmatmul.mubr.bf16.vlgmr.msra.gmra.mrb[8].mxu1 %v4402_v58 }
 0x109   : > { %3916 = vmatprep.mubr.bf16.mxu1 %v4446_v42 }
 0x10e   : > { %3821 = vmatmul.mubr.bf16.gmra.mrb[12].mxu0 %v3218_v22 }
 0x110   : > { %3917 = vmatmul.mubr.bf16.gmra.mrb[12].mxu1 %v3324_v35 }
 0x159   : > { %v3626_v58 = vpop.f32.mrb[0].mxu0 }
 0x15a   : > { %928 = vst [vmem:[%s4904_s7 + $0x10] sm:$0xff] %v3626_v58  ;;  %v887_v59 = vpop.f32.mrb[1].mxu0  ;;  %v950_v1 = vmul.f32 %v3626_v58, %v3626_v58 }
 0x15b   : > { %926 = vst [vmem:[%s4904_s7] sm:$0xff] %v887_v59  ;;  %v3627_v19 = vpop.f32.mrb[2].mxu0  ;;  %v3722_v42 = vpop.f32.mrb[0].mxu1  ;;  %v948_v17 = vmul.f32 %v887_v59, %v887_v59 }
 0x15c   : > { %929 = vst [vmem:[%s4904_s7 + $0x18] sm:$0xff] %v3627_v19  ;;  %v890_v45 = vpop.f32.mrb[3].mxu0  ;;  %3123 = vst [vmem:[%s4904_s7 + $0x50] sm:$0xff] %v3722_v42  ;;  %v1540_v47 = vpop.f32.mrb[1].mxu1  ;;  %v951_v36 = vmul.f32 %v3627_v19, %v3627_v19  ;;  %v1604_v49 = vmul.f32 %v3722_v42, %v3722_v42 }
 0x15d   : > { %927 = vst [vmem:[%s4904_s7 + $0x8] sm:$0xff] %v890_v45  ;;  %v934_v40 = vadd.f32 %v890_v45, %v887_v59  ;;  %v949_v37 = vmul.f32 %v890_v45, %v890_v45  ;;  %3121 = vst [vmem:[%s4904_s7 + $0x40] sm:$0xff] %v1540_v47  ;;  %v3723_v38 = vpop.f32.mrb[2].mxu1  ;;  %v1602_v41 = vmul.f32 %v1540_v47, %v1540_v47 }
 0x15e   : > { %3124 = vst [vmem:[%s4904_s7 + $0x58] sm:$0xff] %v3723_v38  ;;  %v1543_v23 = vpop.f32.mrb[3].mxu1  ;;  %v1605_v51 = vmul.f32 %v3723_v38, %v3723_v38 }
 0x15f   : > { %v935_v3 = vadd.f32 %v3626_v58, %v934_v40  ;;  %v956_v13 = vadd.f32 %v949_v37, %v948_v17  ;;  %3122 = vst [vmem:[%s4904_s7 + $0x48] sm:$0xff] %v1543_v23  ;;  %v1588_v60 = vadd.f32 %v1543_v23, %v1540_v47  ;;  %v1603_v44 = vmul.f32 %v1543_v23, %v1543_v23 }
 0x161   : > { %v957_v48 = vadd.f32 %v956_v13, %v950_v1  ;;  %v3630_v12 = vpop.f32.mrb[4].mxu0  ;;  %v936_v27 = vadd.f32 %v3627_v19, %v935_v3  ;;  %v1589_v34 = vadd.f32 %v3722_v42, %v1588_v60  ;;  %v1610_v20 = vadd.f32 %v1603_v44, %v1602_v41 }
 0x162   : > { %932 = vst [vmem:[%s4904_s7 + $0x30] sm:$0xff] %v3630_v12  ;;  %v903_v31 = vpop.f32.mrb[5].mxu0  ;;  %v954_v10 = vmul.f32 %v3630_v12, %v3630_v12 }
 0x163   : > { %930 = vst [vmem:[%s4904_s7 + $0x20] sm:$0xff] %v903_v31  ;;  %v937_v50 = vadd.f32 %v936_v27, %v903_v31  ;;  %v952_v52 = vmul.f32 %v903_v31, %v903_v31  ;;  %v958_v43 = vadd.f32 %v957_v48, %v951_v36  ;;  %v3631_v8 = vpop.f32.mrb[6].mxu0  ;;  %v1611_v53 = vadd.f32 %v1610_v20, %v1604_v49  ;;  %v3726_v55 = vpop.f32.mrb[4].mxu1 }
 0x164   : > { %v1590_v57 = vadd.f32 %v3723_v38, %v1589_v34  ;;  %933 = vst [vmem:[%s4904_s7 + $0x38] sm:$0xff] %v3631_v8  ;;  %v906_v61 = vpop.f32.mrb[7].mxu0  ;;  %3127 = vst [vmem:[%s4904_s7 + $0x70] sm:$0xff] %v3726_v55  ;;  %v1556_v0 = vpop.f32.mrb[5].mxu1  ;;  %v955_v62 = vmul.f32 %v3631_v8, %v3631_v8  ;;  %v1608_v6 = vmul.f32 %v3726_v55, %v3726_v55 }
 0x165   : > { %v959_v63 = vadd.f32 %v958_v43, %v952_v52  ;;  %931 = vst [vmem:[%s4904_s7 + $0x28] sm:$0xff] %v906_v61  ;;  %v938_v4 = vadd.f32 %v937_v50, %v906_v61  ;;  %v953_v14 = vmul.f32 %v906_v61, %v906_v61  ;;  %3125 = vst [vmem:[%s4904_s7 + $0x60] sm:$0xff] %v1556_v0  ;;  %v3727_v9 = vpop.f32.mrb[6].mxu1 }
 0x166   : > { %v1591_v2 = vadd.f32 %v1590_v57, %v1556_v0  ;;  %v1606_v5 = vmul.f32 %v1556_v0, %v1556_v0  ;;  %v1612_v7 = vadd.f32 %v1611_v53, %v1605_v51  ;;  %3128 = vst [vmem:[%s4904_s7 + $0x78] sm:$0xff] %v3727_v9  ;;  %v1559_v15 = vpop.f32.mrb[7].mxu1  ;;  %v1609_v25 = vmul.f32 %v3727_v9, %v3727_v9 }
 0x167   : > { %v939_v39 = vadd.f32 %v3630_v12, %v938_v4  ;;  %v960_v11 = vadd.f32 %v959_v63, %v953_v14  ;;  %3126 = vst [vmem:[%s4904_s7 + $0x68] sm:$0xff] %v1559_v15  ;;  %v1607_v18 = vmul.f32 %v1559_v15, %v1559_v15 }
 0x168   : > { %v1613_v56 = vadd.f32 %v1612_v7, %v1606_v5  ;;  %v1592_v28 = vadd.f32 %v1591_v2, %v1559_v15 }
 0x169   : > { %v940_v22 = vadd.f32 %v3631_v8, %v939_v39  ;;  %v961_v46 = vadd.f32 %v960_v11, %v954_v10 }
 0x16a   : > { %v1593_v54 = vadd.f32 %v3726_v55, %v1592_v28  ;;  %v1614_v16 = vadd.f32 %v1613_v56, %v1607_v18 }
 0x16b   : > { %v941_v24 = vrot.slane %v940_v22, 4  ;;  %v962_v21 = vadd.f32 %v961_v46, %v955_v62 }
 0x16c   : > { %v1594_v26 = vadd.f32 %v3727_v9, %v1593_v54  ;;  %v1615_v29 = vadd.f32 %v1614_v16, %v1608_v6 }
 0x16d   : > { %v942_v30 = vadd.f32 %v941_v24, %v940_v22  ;;  %v963_v32 = vrot.slane %v962_v21, 4 }
 0x16e   : > { %v1595_v33 = vrot.slane %v1594_v26, 4  ;;  %v1616_v35 = vadd.f32 %v1615_v29, %v1609_v25 }
 0x16f   : > { %v943_v58 = vrot.slane %v942_v30, 2  ;;  %v964_v59 = vadd.f32 %v963_v32, %v962_v21 }
 0x170   : > { %v1596_v19 = vadd.f32 %v1595_v33, %v1594_v26  ;;  %v1617_v42 = vrot.slane %v1616_v35, 4 }
 0x171   : > { %v944_v45 = vadd.f32 %v943_v58, %v942_v30  ;;  %v965_v17 = vrot.slane %v964_v59, 2 }
 0x172   : > { %v1597_v47 = vrot.slane %v1596_v19, 2  ;;  %v1618_v40 = vadd.f32 %v1617_v42, %v1616_v35 }
 0x173   : > { %v945_v37 = vrot.slane %v944_v45, 1  ;;  %v966_v38 = vadd.f32 %v965_v17, %v964_v59 }
 0x174   : > { %v1598_v1 = vadd.f32 %v1597_v47, %v1596_v19  ;;  %v1619_v3 = vrot.slane %v1618_v40, 2 }
 0x175   : > { %v967_v13 = vrot.slane %v966_v38, 1  ;;  %v946_v23 = vadd.f32 %v945_v37, %v944_v45 }
 0x176   : > { %v1599_v41 = vrot.slane %v1598_v1, 1  ;;  %v1620_v60 = vadd.f32 %v1619_v3, %v1618_v40 }
 0x177   : > { %v968_v44 = vadd.f32 %v967_v13, %v966_v38 }
 0x178   : > { %v1600_v36 = vadd.f32 %v1599_v41, %v1598_v1  ;;  %v1621_v48 = vrot.slane %v1620_v60, 1 }
 0x17a   : > { %v4922_v12 = vadd.f32 %v1600_v36, %v946_v23  ;;  %v1622_v27 = vadd.f32 %v1621_v48, %v1620_v60 }
 0x17c   : > { %v4924_v49 = vadd.f32 %v1622_v27, %v968_v44 }
 0x1d9   : > { %v3818_v34 = vpop.f32.mrb[8].mxu0 }
 0x1da   : > { %3229 = vst [vmem:[%s4904_s7 + $0x90] sm:$0xff] %v3818_v34  ;;  %v2142_v20 = vpop.f32.mrb[9].mxu0  ;;  %v2206_v57 = vmul.f32 %v3818_v34, %v3818_v34 }
 0x1db   : > { %3227 = vst [vmem:[%s4904_s7 + $0x80] sm:$0xff] %v2142_v20  ;;  %v3819_v31 = vpop.f32.mrb[10].mxu0  ;;  %v3914_v50 = vpop.f32.mrb[8].mxu1  ;;  %v2204_v43 = vmul.f32 %v2142_v20, %v2142_v20 }
 0x1dc   : > { %3230 = vst [vmem:[%s4904_s7 + $0x98] sm:$0xff] %v3819_v31  ;;  %v2145_v52 = vpop.f32.mrb[11].mxu0  ;;  %3335 = vst [vmem:[%s4904_s7 + $0xd0] sm:$0xff] %v3914_v50  ;;  %v2731_v8 = vpop.f32.mrb[9].mxu1  ;;  %v2207_v5 = vmul.f32 %v3819_v31, %v3819_v31  ;;  %v2795_v39 = vmul.f32 %v3914_v50, %v3914_v50 }
 0x1dd   : > { %3228 = vst [vmem:[%s4904_s7 + $0x88] sm:$0xff] %v2145_v52  ;;  %v2190_v51 = vadd.f32 %v2145_v52, %v2142_v20  ;;  %v2205_v53 = vmul.f32 %v2145_v52, %v2145_v52  ;;  %3333 = vst [vmem:[%s4904_s7 + $0xc0] sm:$0xff] %v2731_v8  ;;  %v3915_v55 = vpop.f32.mrb[10].mxu1  ;;  %v2793_v4 = vmul.f32 %v2731_v8, %v2731_v8 }
 0x1de   : > { %3336 = vst [vmem:[%s4904_s7 + $0xd8] sm:$0xff] %v3915_v55  ;;  %v2734_v0 = vpop.f32.mrb[11].mxu1  ;;  %v2796_v46 = vmul.f32 %v3915_v55, %v3915_v55 }
 0x1df   : > { %v2191_v61 = vadd.f32 %v3818_v34, %v2190_v51  ;;  %v2212_v63 = vadd.f32 %v2205_v53, %v2204_v43  ;;  %3334 = vst [vmem:[%s4904_s7 + $0xc8] sm:$0xff] %v2734_v0  ;;  %v2779_v14 = vadd.f32 %v2734_v0, %v2731_v8  ;;  %v2794_v2 = vmul.f32 %v2734_v0, %v2734_v0 }
 0x1e1   : > { %v2213_v7 = vadd.f32 %v2212_v63, %v2206_v57  ;;  %v3822_v9 = vpop.f32.mrb[12].mxu0  ;;  %v2192_v10 = vadd.f32 %v3819_v31, %v2191_v61  ;;  %v2780_v11 = vadd.f32 %v3914_v50, %v2779_v14  ;;  %v2801_v15 = vadd.f32 %v2794_v2, %v2793_v4 }
 0x1e2   : > { %3233 = vst [vmem:[%s4904_s7 + $0xb0] sm:$0xff] %v3822_v9  ;;  %v2158_v56 = vpop.f32.mrb[13].mxu0  ;;  %v2210_v58 = vmul.f32 %v3822_v9, %v3822_v9 }
 0x1e3   : > { %3231 = vst [vmem:[%s4904_s7 + $0xa0] sm:$0xff] %v2158_v56  ;;  %v2193_v28 = vadd.f32 %v2192_v10, %v2158_v56  ;;  %v2208_v18 = vmul.f32 %v2158_v56, %v2158_v56  ;;  %v2214_v62 = vadd.f32 %v2213_v7, %v2207_v5  ;;  %v3823_v22 = vpop.f32.mrb[14].mxu0  ;;  %v2802_v6 = vadd.f32 %v2801_v15, %v2795_v39  ;;  %v3918_v54 = vpop.f32.mrb[12].mxu1 }
 0x1e4   : > { %v2781_v16 = vadd.f32 %v3915_v55, %v2780_v11  ;;  %3234 = vst [vmem:[%s4904_s7 + $0xb8] sm:$0xff] %v3823_v22  ;;  %v2161_v24 = vpop.f32.mrb[15].mxu0  ;;  %3339 = vst [vmem:[%s4904_s7 + $0xf0] sm:$0xff] %v3918_v54  ;;  %v2747_v25 = vpop.f32.mrb[13].mxu1  ;;  %v2211_v40 = vmul.f32 %v3823_v22, %v3823_v22  ;;  %v2799_v1 = vmul.f32 %v3918_v54, %v3918_v54 }
 0x1e5   : > { %v2215_v21 = vadd.f32 %v2214_v62, %v2208_v18  ;;  %3232 = vst [vmem:[%s4904_s7 + $0xa8] sm:$0xff] %v2161_v24  ;;  %v2194_v26 = vadd.f32 %v2193_v28, %v2161_v24  ;;  %v2209_v29 = vmul.f32 %v2161_v24, %v2161_v24  ;;  %3337 = vst [vmem:[%s4904_s7 + $0xe0] sm:$0xff] %v2747_v25  ;;  %v3919_v35 = vpop.f32.mrb[14].mxu1 }
 0x1e6   : > { %v2782_v30 = vadd.f32 %v2781_v16, %v2747_v25  ;;  %v2797_v32 = vmul.f32 %v2747_v25, %v2747_v25  ;;  %v2803_v33 = vadd.f32 %v2802_v6, %v2796_v46  ;;  %3340 = vst [vmem:[%s4904_s7 + $0xf8] sm:$0xff] %v3919_v35  ;;  %v2750_v42 = vpop.f32.mrb[15].mxu1  ;;  %v2800_v60 = vmul.f32 %v3919_v35, %v3919_v35 }
 0x1e7   : > { %v2195_v59 = vadd.f32 %v3822_v9, %v2194_v26  ;;  %v2216_v19 = vadd.f32 %v2215_v21, %v2209_v29  ;;  %3338 = vst [vmem:[%s4904_s7 + $0xe8] sm:$0xff] %v2750_v42  ;;  %v2798_v47 = vmul.f32 %v2750_v42, %v2750_v42 }
 0x1e8   : > { %v2804_v45 = vadd.f32 %v2803_v33, %v2797_v32  ;;  %v2783_v17 = vadd.f32 %v2782_v30, %v2750_v42 }
 0x1e9   : > { %v2196_v37 = vadd.f32 %v3823_v22, %v2195_v59  ;;  %v2217_v38 = vadd.f32 %v2216_v19, %v2210_v58 }
 0x1ea   : > { %v2784_v3 = vadd.f32 %v3918_v54, %v2783_v17  ;;  %v2805_v13 = vadd.f32 %v2804_v45, %v2798_v47 }
 0x1eb   : > { %v2197_v23 = vrot.slane %v2196_v37, 4  ;;  %v2218_v41 = vadd.f32 %v2217_v38, %v2211_v40 }
 0x1ec   : > { %v2785_v44 = vadd.f32 %v3919_v35, %v2784_v3  ;;  %v2806_v36 = vadd.f32 %v2805_v13, %v2799_v1 }
 0x1ed   : > { %v2198_v48 = vadd.f32 %v2197_v23, %v2196_v37  ;;  %v2219_v27 = vrot.slane %v2218_v41, 4 }
 0x1ee   : > { %v2786_v34 = vrot.slane %v2785_v44, 4  ;;  %v2807_v20 = vadd.f32 %v2806_v36, %v2800_v60 }
 0x1ef   : > { %v2199_v31 = vrot.slane %v2198_v48, 2  ;;  %v2220_v50 = vadd.f32 %v2219_v27, %v2218_v41 }
 0x1f0   : > { %v2787_v52 = vadd.f32 %v2786_v34, %v2785_v44  ;;  %v2808_v43 = vrot.slane %v2807_v20, 4 }
 0x1f1   : > { %v2200_v8 = vadd.f32 %v2199_v31, %v2198_v48  ;;  %v2221_v51 = vrot.slane %v2220_v50, 2 }
 0x1f2   : > { %v2788_v53 = vrot.slane %v2787_v52, 2  ;;  %v2809_v55 = vadd.f32 %v2808_v43, %v2807_v20 }
 0x1f3   : > { %v2201_v57 = vrot.slane %v2200_v8, 1  ;;  %v2222_v61 = vadd.f32 %v2221_v51, %v2220_v50 }
 0x1f4   : > { %v2789_v63 = vadd.f32 %v2788_v53, %v2787_v52  ;;  %v2810_v0 = vrot.slane %v2809_v55, 2 }
 0x1f5   : > { %v2202_v4 = vadd.f32 %v2201_v57, %v2200_v8  ;;  %v2223_v14 = vrot.slane %v2222_v61, 1 }
 0x1f6   : > { %v2790_v2 = vrot.slane %v2789_v63, 1  ;;  %v2811_v5 = vadd.f32 %v2810_v0, %v2809_v55 }
 0x1f7   : > { %v2203_v7 = vadd.f32 %v2202_v4, %v4922_v12  ;;  %v2224_v9 = vadd.f32 %v2223_v14, %v2222_v61 }
 0x1f8   : > { %v2791_v10 = vadd.f32 %v2790_v2, %v2789_v63  ;;  %v2812_v39 = vrot.slane %v2811_v5, 1 }
 0x1f9   : > { %v2225_v11 = vadd.f32 %v2224_v9, %v4924_v49 }
 0x1fa   : > { %v2792_v15 = vadd.f32 %v2791_v10, %v2203_v7  ;;  %v2813_v56 = vadd.f32 %v2812_v39, %v2811_v5 }
 0x1fc   : > { %v2814_v28 = vadd.f32 %v2813_v56, %v2225_v11  ;;  %2815 = vst [vmem:[%s181_s14] sm:$0x1] %v2792_v15 }
 0x1fe   : > { %2816 = vst [vmem:[%s181_s14 + $0x1] sm:$0x1] %v2814_v28 }
 0x1ff PF: > { %s14_s12 = sadd.s32 1, %s4168_s12  }
 0x200   : > { %p11_p4 = scmp.ge.s32.totalorder %s14_s12, 4  }
 0x202   :  { %13 = sbr.rel (!%p11_p4) target bundleno = 1 (0x1), region = 88 }

</bundles_post_ra>
